<compile_context>
chip_gen: v6e
topology: v6e:2x2x1
jax: 0.10.0
libtpu: 0.0.40
codegen_flags: <defaults>
</compile_context>

<pallas_src>
import functools

import jax
import jax.numpy as jnp
from jax.experimental import pallas as pl
from jax.experimental.pallas import tpu as pltpu


_SQRT_HALF = 0.7071067811865476
_SQRT_2_OVER_PI = 0.7978845608028654


def _erf(x, *, approx_recip=True):
    """erf via Abramowitz & Stegun 7.1.26 (max abs err ~1.5e-7).

    Built only from exp / mul / add / where (+ optional EUP reciprocal) so it
    lowers on every TPU generation; matches exact-erf GELU (PyTorch nn.GELU
    default) to ~1e-7 when approx_recip=False.
    """
    a1, a2, a3, a4, a5 = (0.254829592, -0.284496736, 1.421413741,
                          -1.453152027, 1.061405429)
    p = 0.3275911
    sgn = jnp.where(x < 0.0, -1.0, 1.0)
    ax = jnp.abs(x)
    z = 1.0 + p * ax
    # approx=True moves the reciprocal to the (otherwise idle) EUP slot,
    # off the VALU slot that the erf polynomial chain saturates.
    t = pl.reciprocal(z, approx=True) if approx_recip else 1.0 / z
    poly = ((((a5 * t + a4) * t + a3) * t + a2) * t + a1) * t
    return sgn * (1.0 - poly * jnp.exp(-ax * ax))


def _gelu(x, *, kind="exact", approx_recip=True):
    if kind == "tanh":
        # tanh-approx GELU: 1 EUP tanh + ~6 VALU ops/elem (v6e/v7x option when
        # the erf chain is the binding VALU load). |err vs exact| <~ 3e-4.
        inner = _SQRT_2_OVER_PI * (x + 0.044715 * x * x * x)
        return 0.5 * x * (1.0 + jnp.tanh(inner))
    return 0.5 * x * (1.0 + _erf(x * _SQRT_HALF, approx_recip=approx_recip))


def project_in_out_kernel(x_ref, w_in_ref, b_in_ref, w_fn_ref, b_fn_ref,
                          w_out_ref, b_out_ref, o_ref, *,
                          gelu_kind="exact", approx_recip=True):
    mxu_dt = w_in_ref.dtype           # f32, or bf16 on the fast path
    low_prec = mxu_dt != jnp.float32
    x = x_ref[...]                                                    # (tm, d_outer)
    # project_in: h = x @ W_in + b_in   (f32 accumulate on the MXU)
    h = jnp.dot(x, w_in_ref[...], preferred_element_type=jnp.float32)
    h = h + b_in_ref[...]                                             # f32 bias
    h_c = h.astype(mxu_dt)            # cast once; reused for matmul 2 + residual
    # fn(h): Linear + GELU  (bias add + GELU stay f32 regardless of MXU dtype)
    f = jnp.dot(h_c, w_fn_ref[...], preferred_element_type=jnp.float32)
    f = _gelu(f + b_fn_ref[...], kind=gelu_kind, approx_recip=approx_recip)
    # residual fused in place
    if low_prec:
        # Add in the MXU dtype: the sum is cast to it for the 3rd matmul
        # anyway, and bf16 adds run at 2x packed VALU throughput on v6e/v7x
        # (on v5e the compiler upcasts this add -- still correct, cost is one
        # pack, negligible vs the 2-3x bf16 MXU win there).
        y = f.astype(mxu_dt) + h_c
    else:
        y = f + h
    # project_out
    out = jnp.dot(y.astype(mxu_dt), w_out_ref[...],
                  preferred_element_type=jnp.float32)
    out = out + b_out_ref[...]
    o_ref[...] = out.astype(o_ref.dtype)


def _round_up(x, m):
    return ((x + m - 1) // m) * m


def _choose_tile(M, tm, sub):
    """Pick (tm, grid_m) with tm a multiple of `sub`, preferring even grid_m
    when the grid is short so both v7x TensorCores stay busy."""
    tm = max(sub, _round_up(min(tm, M), sub))
    grid_m = pl.cdiv(M, tm)
    if grid_m % 2 == 1 and grid_m < 8 and M > sub:
        gm2 = grid_m + 1
        tm2 = _round_up(pl.cdiv(M, gm2), sub)
        if pl.cdiv(M, tm2) == gm2:    # adjustment actually yields an even grid
            tm, grid_m = tm2, gm2
    return tm, grid_m


def _vmem_limit_bytes(tm, d_outer, d_inner, x_item, out_item, w_item):
    """Size the scoped-VMEM limit from actual buffers instead of a flat cap."""
    dbl = 2  # default double-buffering per pipelined operand
    tiles = dbl * tm * d_outer * (x_item + out_item)                  # x + out tiles
    consts = dbl * (2 * d_outer * d_inner + d_inner * d_inner) * w_item
    consts += dbl * 8 * (2 * d_inner + d_outer) * 4                   # (1,d) biases pad to (8,d)
    live = 4 * tm * d_inner * 4 + 2 * tm * d_outer * 4                # h, f (+ casts) f32 temps
    need = tiles + consts + live + (4 << 20)                          # compiler scratch slack
    return int(min(max(2 * need, 16 << 20), 64 << 20))                # stay inside v7x's 64 MiB


def project_in_out(x, w_in, b_in, w_fn, b_fn, w_out, b_out, *,
                   tm=512, mxu_dtype=None, out_dtype=None,
                   gelu="exact", approx_recip=True):
    """x: (B, S, dim_outer) -> (B, S, dim_outer).

    tm:          row tile; primary tuning knob. Sweep 512-2048 for large M
                 (per-step overhead ~0.35us dominates below ~512).
    mxu_dtype:   optional cast for x / weights feeding the MXU. jnp.bfloat16 is
                 the fast path on ALL generations (v5e/v6e/v7x MXUs are
                 bf16-native); accumulation, bias adds and GELU stay f32.
    out_dtype:   output dtype (default x.dtype). Use bfloat16 when downstream
                 keeps activations in bf16: halves writeback HBM traffic.
    gelu:        "exact" (erf, PyTorch nn.GELU default) or "tanh" (cheaper
                 epilogue on v6e/v7x).
    approx_recip: route the erf divide to the EUP (approx reciprocal).
    """
    B, S, d_outer = x.shape
    d_inner = w_in.shape[1]
    out_dt = jnp.dtype(out_dtype) if out_dtype is not None else jnp.dtype(x.dtype)
    x_dt = jnp.dtype(mxu_dtype) if mxu_dtype is not None else jnp.dtype(x.dtype)
    w_dt = jnp.dtype(mxu_dtype) if mxu_dtype is not None else jnp.dtype(w_in.dtype)
    M = B * S

    # Packed-sublane multiple of the tiled activation dtypes:
    # 8 (f32), 16 (bf16), 32 (int8/fp8).
    min_item = min(x_dt.itemsize, out_dt.itemsize)
    sub = max(8, 32 // min_item)
    assert tm % sub == 0, f"tm must be a multiple of {sub} for dtypes {x_dt}/{out_dt}"

    tm, grid_m = _choose_tile(M, tm, sub)
    Mp = grid_m * tm

    x2 = x.reshape(M, d_outer)
    if Mp != M:
        x2 = jnp.pad(x2, ((0, Mp - M), (0, 0)))   # pad rows; sliced off below

    if mxu_dtype is not None:
        x2 = x2.astype(mxu_dtype)
        w_in_c, w_fn_c, w_out_c = (w.astype(mxu_dtype)
                                   for w in (w_in, w_fn, w_out))
    else:
        w_in_c, w_fn_c, w_out_c = w_in, w_fn, w_out

    # biases stay f32 so the epilogue math is f32 even on the bf16 path
    b_in2 = b_in.astype(jnp.float32).reshape(1, d_inner)
    b_fn2 = b_fn.astype(jnp.float32).reshape(1, d_inner)
    b_out2 = b_out.astype(jnp.float32).reshape(1, d_outer)

    flops = 2 * Mp * (2 * d_outer * d_inner + d_inner * d_inner)
    const_bytes = sum(int(a.size) * a.dtype.itemsize
                      for a in (w_in_c, w_fn_c, w_out_c, b_in2, b_fn2, b_out2))
    bytes_accessed = (int(x2.size) * x2.dtype.itemsize
                      + Mp * d_outer * out_dt.itemsize
                      + const_bytes)

    kernel = functools.partial(project_in_out_kernel,
                               gelu_kind=gelu, approx_recip=approx_recip)

    out2 = pl.pallas_call(
        kernel,
        out_shape=jax.ShapeDtypeStruct((Mp, d_outer), out_dt),
        grid_spec=pltpu.PrefetchScalarGridSpec(
            num_scalar_prefetch=0,
            grid=(grid_m,),
            in_specs=[
                pl.BlockSpec((tm, d_outer), lambda i: (i, 0)),        # x rows
                # Constant operands (weights / biases): constant index_map ->
                # DMA'd once. Default buffering kept (<1.5 MiB total here);
                # consider pl.Buffered(1) on v7x when d_inner >~ 1k.
                pl.BlockSpec((d_outer, d_inner), lambda i: (0, 0)),   # W_in
                pl.BlockSpec((1, d_inner), lambda i: (0, 0)),         # b_in
                pl.BlockSpec((d_inner, d_inner), lambda i: (0, 0)),   # W_fn
                pl.BlockSpec((1, d_inner), lambda i: (0, 0)),         # b_fn
                pl.BlockSpec((d_inner, d_outer), lambda i: (0, 0)),   # W_out
                pl.BlockSpec((1, d_outer), lambda i: (0, 0)),         # b_out
            ],
            out_specs=pl.BlockSpec((tm, d_outer), lambda i: (i, 0)),
        ),
        compiler_params=pltpu.CompilerParams(
            dimension_semantics=("parallel",),
            vmem_limit_bytes=_vmem_limit_bytes(
                tm, d_outer, d_inner,
                x_dt.itemsize, out_dt.itemsize, w_dt.itemsize),
        ),
        cost_estimate=pl.CostEstimate(
            flops=flops,
            transcendentals=2 * Mp * d_inner,    # exp (+ recip/tanh) per elem
            bytes_accessed=bytes_accessed,
        ),
    )(x2, w_in_c, b_in2, w_fn_c, b_fn2, w_out_c, b_out2)
    return out2[:M].reshape(B, S, d_outer)


def _ref(x, w_in, b_in, w_fn, b_fn, w_out, b_out):
    hi = jax.lax.Precision.HIGHEST
    h = jnp.einsum("bsd,de->bse", x, w_in, precision=hi) + b_in
    f = jax.nn.gelu(jnp.einsum("bse,ef->bsf", h, w_fn, precision=hi) + b_fn,
                    approximate=False)   # PyTorch nn.GELU default (exact erf)
    y = f + h
    return jnp.einsum("bse,ed->bsd", y, w_out, precision=hi) + b_out


if __name__ == "__main__":
    # Small shapes consistent with the module (token activations, feature dim
    # last); dims kept distinct so project_in / project_out are real Linears,
    # and lane-aligned (multiples of 128) so stores are dense (no vst.msk).
    B, S = 2, 256                    # M = 512 rows -> even 2-step grid
    dim_outer, dim_inner = 128, 256

    key = jax.random.PRNGKey(0)
    ks = jax.random.split(key, 7)

    def uniform_linear(k, fan_in, shape):
        bound = 1.0 / (fan_in ** 0.5)   # PyTorch nn.Linear default init range
        return jax.random.uniform(k, shape, jnp.float32, -bound, bound)

    x = jax.random.normal(ks[0], (B, S, dim_outer), jnp.float32)
    w_in = uniform_linear(ks[1], dim_outer, (dim_outer, dim_inner))
    b_in = uniform_linear(ks[2], dim_outer, (dim_inner,))
    w_fn = uniform_linear(ks[3], dim_inner, (dim_inner, dim_inner))
    b_fn = uniform_linear(ks[4], dim_inner, (dim_inner,))
    w_out = uniform_linear(ks[5], dim_inner, (dim_inner, dim_outer))
    b_out = uniform_linear(ks[6], dim_inner, (dim_outer,))

    ref = _ref(x, w_in, b_in, w_fn, b_fn, w_out, b_out)

    # 1) f32 MXU path, exact erf + exact reciprocal: strict-precision check.
    out = project_in_out(x, w_in, b_in, w_fn, b_fn, w_out, b_out,
                         tm=512, approx_recip=False)
    out = jax.block_until_ready(out)
    assert out.shape == (B, S, dim_outer)
    assert jnp.allclose(out, ref, atol=1e-3, rtol=1e-3), "f32 mismatch vs ref"

    # 2) Fast path for all generations: bf16 MXU inputs, bf16 output, approx
    #    (EUP) reciprocal; f32 accumulate + f32 bias/GELU epilogue.
    out_bf16 = project_in_out(x, w_in, b_in, w_fn, b_fn, w_out, b_out,
                              tm=512, mxu_dtype=jnp.bfloat16,
                              out_dtype=jnp.bfloat16)
    out_bf16 = jax.block_until_ready(out_bf16)
    assert out_bf16.shape == (B, S, dim_outer)
    assert out_bf16.dtype == jnp.bfloat16
    assert jnp.allclose(out_bf16.astype(jnp.float32), ref,
                        atol=5e-2, rtol=5e-2), "bf16 mismatch vs ref"

    # 3) Same fast path with the cheaper tanh-GELU epilogue (v6e/v7x option).
    out_tanh = project_in_out(x, w_in, b_in, w_fn, b_fn, w_out, b_out,
                              tm=512, mxu_dtype=jnp.bfloat16,
                              out_dtype=jnp.bfloat16, gelu="tanh")
    out_tanh = jax.block_until_ready(out_tanh)
    assert jnp.allclose(out_tanh.astype(jnp.float32), ref,
                        atol=5e-2, rtol=5e-2), "tanh-gelu mismatch vs ref"

    print("KERNEL_OK")
</pallas_src>

<mosaic_0001>
module attributes {stable_mosaic.version = 11 : i64} {
  func.func @project_in_out_kernel(%arg0: i32, %arg1: memref<256x128xf32, #tpu.memory_space<vmem>>, %arg2: memref<128x256xf32, #tpu.memory_space<vmem>>, %arg3: memref<1x256xf32, #tpu.memory_space<vmem>>, %arg4: memref<256x256xf32, #tpu.memory_space<vmem>>, %arg5: memref<1x256xf32, #tpu.memory_space<vmem>>, %arg6: memref<256x128xf32, #tpu.memory_space<vmem>>, %arg7: memref<1x128xf32, #tpu.memory_space<vmem>>, %arg8: memref<256x128xf32, #tpu.memory_space<vmem>>) attributes {dimension_semantics = [#tpu.dimension_semantics<parallel>], iteration_bounds = array<i64: 2>, scalar_prefetch = 0 : i64, scratch_operands = 0 : i64, tpu.core_type = #tpu.core_type<tc>, window_params = [{transform_indices = @transform_0, window_bounds = array<i64: 256, 128>}, {pipeline_mode = #tpu.pipeline_mode<synchronous>, transform_indices = @transform_1, window_bounds = array<i64: 128, 256>}, {pipeline_mode = #tpu.pipeline_mode<synchronous>, transform_indices = @transform_2, window_bounds = array<i64: 1, 256>}, {pipeline_mode = #tpu.pipeline_mode<synchronous>, transform_indices = @transform_3, window_bounds = array<i64: 256, 256>}, {pipeline_mode = #tpu.pipeline_mode<synchronous>, transform_indices = @transform_4, window_bounds = array<i64: 1, 256>}, {pipeline_mode = #tpu.pipeline_mode<synchronous>, transform_indices = @transform_5, window_bounds = array<i64: 256, 128>}, {pipeline_mode = #tpu.pipeline_mode<synchronous>, transform_indices = @transform_6, window_bounds = array<i64: 1, 128>}, {transform_indices = @transform_7, window_bounds = array<i64: 256, 128>}]} {
    %c0 = arith.constant 0 : index
    %c0_0 = arith.constant 0 : index
    %0 = vector.load %arg1[%c0, %c0_0] : memref<256x128xf32, #tpu.memory_space<vmem>>, vector<256x128xf32>
    %c0_1 = arith.constant 0 : index
    %c0_2 = arith.constant 0 : index
    %1 = vector.load %arg2[%c0_1, %c0_2] : memref<128x256xf32, #tpu.memory_space<vmem>>, vector<128x256xf32>
    %cst = arith.constant dense<0.000000e+00> : vector<256x256xf32>
    %2 = tpu.matmul %0, %1, %cst {dimension_numbers = #tpu.dot_dimension_numbers<[1], [0], [0], [1], [0, 0, 1, 1], [], []>} : vector<256x128xf32>, vector<128x256xf32>, vector<256x256xf32> -> vector<256x256xf32>
    %c0_3 = arith.constant 0 : index
    %c0_4 = arith.constant 0 : index
    %3 = vector.load %arg3[%c0_3, %c0_4] : memref<1x256xf32, #tpu.memory_space<vmem>>, vector<1x256xf32>
    %4 = vector.broadcast %3 : vector<1x256xf32> to vector<256x256xf32>
    %5 = arith.addf %2, %4 : vector<256x256xf32>
    %c0_5 = arith.constant 0 : index
    %c0_6 = arith.constant 0 : index
    %6 = vector.load %arg4[%c0_5, %c0_6] : memref<256x256xf32, #tpu.memory_space<vmem>>, vector<256x256xf32>
    %cst_7 = arith.constant dense<0.000000e+00> : vector<256x256xf32>
    %7 = tpu.matmul %5, %6, %cst_7 {dimension_numbers = #tpu.dot_dimension_numbers<[1], [0], [0], [1], [0, 0, 1, 1], [], []>} : vector<256x256xf32>, vector<256x256xf32>, vector<256x256xf32> -> vector<256x256xf32>
    %c0_8 = arith.constant 0 : index
    %c0_9 = arith.constant 0 : index
    %8 = vector.load %arg5[%c0_8, %c0_9] : memref<1x256xf32, #tpu.memory_space<vmem>>, vector<1x256xf32>
    %9 = vector.broadcast %8 : vector<1x256xf32> to vector<256x256xf32>
    %10 = arith.addf %7, %9 : vector<256x256xf32>
    %cst_10 = arith.constant 5.000000e-01 : f32
    %11 = vector.broadcast %cst_10 : f32 to vector<256x256xf32>
    %12 = arith.mulf %11, %10 : vector<256x256xf32>
    %cst_11 = arith.constant 0.707106769 : f32
    %13 = vector.broadcast %cst_11 : f32 to vector<256x256xf32>
    %14 = arith.mulf %10, %13 : vector<256x256xf32>
    %cst_12 = arith.constant 0.000000e+00 : f32
    %15 = vector.broadcast %cst_12 : f32 to vector<256x256xf32>
    %16 = arith.cmpf olt, %14, %15 : vector<256x256xf32>
    %cst_13 = arith.constant -1.000000e+00 : f32
    %cst_14 = arith.constant 1.000000e+00 : f32
    %17 = vector.broadcast %cst_13 : f32 to vector<256x256xf32>
    %18 = vector.broadcast %cst_14 : f32 to vector<256x256xf32>
    %19 = arith.select %16, %17, %18 : vector<256x256xi1>, vector<256x256xf32>
    %20 = math.absf %14 : vector<256x256xf32>
    %cst_15 = arith.constant 0.327591091 : f32
    %21 = vector.broadcast %cst_15 : f32 to vector<256x256xf32>
    %22 = arith.mulf %21, %20 : vector<256x256xf32>
    %cst_16 = arith.constant 1.000000e+00 : f32
    %23 = vector.broadcast %cst_16 : f32 to vector<256x256xf32>
    %24 = arith.addf %23, %22 : vector<256x256xf32>
    %cst_17 = arith.constant 1.000000e+00 : f32
    %25 = vector.broadcast %cst_17 : f32 to vector<256x256xf32>
    %26 = arith.divf %25, %24 : vector<256x256xf32>
    %cst_18 = arith.constant 1.06140542 : f32
    %27 = vector.broadcast %cst_18 : f32 to vector<256x256xf32>
    %28 = arith.mulf %27, %26 : vector<256x256xf32>
    %cst_19 = arith.constant -1.45315206 : f32
    %29 = vector.broadcast %cst_19 : f32 to vector<256x256xf32>
    %30 = arith.addf %28, %29 : vector<256x256xf32>
    %31 = arith.mulf %30, %26 : vector<256x256xf32>
    %cst_20 = arith.constant 1.42141378 : f32
    %32 = vector.broadcast %cst_20 : f32 to vector<256x256xf32>
    %33 = arith.addf %31, %32 : vector<256x256xf32>
    %34 = arith.mulf %33, %26 : vector<256x256xf32>
    %cst_21 = arith.constant -0.284496725 : f32
    %35 = vector.broadcast %cst_21 : f32 to vector<256x256xf32>
    %36 = arith.addf %34, %35 : vector<256x256xf32>
    %37 = arith.mulf %36, %26 : vector<256x256xf32>
    %cst_22 = arith.constant 0.254829586 : f32
    %38 = vector.broadcast %cst_22 : f32 to vector<256x256xf32>
    %39 = arith.addf %37, %38 : vector<256x256xf32>
    %40 = arith.mulf %39, %26 : vector<256x256xf32>
    %cst_23 = arith.constant 0.000000e+00 : f32
    %41 = vector.broadcast %cst_23 : f32 to vector<256x256xf32>
    %42 = arith.subf %41, %20 : vector<256x256xf32>
    %43 = arith.mulf %42, %20 : vector<256x256xf32>
    %44 = math.exp %43 : vector<256x256xf32>
    %45 = arith.mulf %40, %44 : vector<256x256xf32>
    %cst_24 = arith.constant 1.000000e+00 : f32
    %46 = vector.broadcast %cst_24 : f32 to vector<256x256xf32>
    %47 = arith.subf %46, %45 : vector<256x256xf32>
    %48 = arith.mulf %19, %47 : vector<256x256xf32>
    %cst_25 = arith.constant 1.000000e+00 : f32
    %49 = vector.broadcast %cst_25 : f32 to vector<256x256xf32>
    %50 = arith.addf %49, %48 : vector<256x256xf32>
    %51 = arith.mulf %12, %50 : vector<256x256xf32>
    %52 = arith.addf %51, %5 : vector<256x256xf32>
    %c0_26 = arith.constant 0 : index
    %c0_27 = arith.constant 0 : index
    %53 = vector.load %arg6[%c0_26, %c0_27] : memref<256x128xf32, #tpu.memory_space<vmem>>, vector<256x128xf32>
    %cst_28 = arith.constant dense<0.000000e+00> : vector<256x128xf32>
    %54 = tpu.matmul %52, %53, %cst_28 {dimension_numbers = #tpu.dot_dimension_numbers<[1], [0], [0], [1], [0, 0, 1, 1], [], []>} : vector<256x256xf32>, vector<256x128xf32>, vector<256x128xf32> -> vector<256x128xf32>
    %c0_29 = arith.constant 0 : index
    %c0_30 = arith.constant 0 : index
    %55 = vector.load %arg7[%c0_29, %c0_30] : memref<1x128xf32, #tpu.memory_space<vmem>>, vector<1x128xf32>
    %56 = vector.broadcast %55 : vector<1x128xf32> to vector<256x128xf32>
    %57 = arith.addf %54, %56 : vector<256x128xf32>
    %c0_31 = arith.constant 0 : index
    %c0_32 = arith.constant 0 : index
    %58 = vector.load %arg8[%c0_31, %c0_32] : memref<256x128xf32, #tpu.memory_space<vmem>>, vector<256x128xf32>
    tpu.vector_store %arg8[%c0_31, %c0_32], %57 {strides = array<i32>} : memref<256x128xf32, #tpu.memory_space<vmem>>, vector<256x128xf32>,
    return
  }
  func.func @transform_0(%arg0: i32) -> (i32, i32) {
    %c0_i32 = arith.constant 0 : i32
    %c0_i32_0 = arith.constant 0 : i32
    return %arg0, %c0_i32 : i32, i32
  }
  func.func @transform_1(%arg0: i32) -> (i32, i32) {
    %c0_i32 = arith.constant 0 : i32
    %c0_i32_0 = arith.constant 0 : i32
    %c0_i32_1 = arith.constant 0 : i32
    return %c0_i32, %c0_i32_0 : i32, i32
  }
  func.func @transform_2(%arg0: i32) -> (i32, i32) {
    %c0_i32 = arith.constant 0 : i32
    %c0_i32_0 = arith.constant 0 : i32
    %c0_i32_1 = arith.constant 0 : i32
    return %c0_i32, %c0_i32_0 : i32, i32
  }
  func.func @transform_3(%arg0: i32) -> (i32, i32) {
    %c0_i32 = arith.constant 0 : i32
    %c0_i32_0 = arith.constant 0 : i32
    %c0_i32_1 = arith.constant 0 : i32
    return %c0_i32, %c0_i32_0 : i32, i32
  }
  func.func @transform_4(%arg0: i32) -> (i32, i32) {
    %c0_i32 = arith.constant 0 : i32
    %c0_i32_0 = arith.constant 0 : i32
    %c0_i32_1 = arith.constant 0 : i32
    return %c0_i32, %c0_i32_0 : i32, i32
  }
  func.func @transform_5(%arg0: i32) -> (i32, i32) {
    %c0_i32 = arith.constant 0 : i32
    %c0_i32_0 = arith.constant 0 : i32
    %c0_i32_1 = arith.constant 0 : i32
    return %c0_i32, %c0_i32_0 : i32, i32
  }
  func.func @transform_6(%arg0: i32) -> (i32, i32) {
    %c0_i32 = arith.constant 0 : i32
    %c0_i32_0 = arith.constant 0 : i32
    %c0_i32_1 = arith.constant 0 : i32
    return %c0_i32, %c0_i32_0 : i32, i32
  }
  func.func @transform_7(%arg0: i32) -> (i32, i32) {
    %c0_i32 = arith.constant 0 : i32
    %c0_i32_0 = arith.constant 0 : i32
    return %arg0, %c0_i32 : i32, i32
  }
}

</mosaic_0001>

<bundles_post_ra>
// kernel: tpu_custom_call.1
= control target key start
LH: loop header
LB: loop body
LE: loop exit
PB: predicated region body
PF: predicated region fallthrough
CT: control target
= control target key end

     0   :  { %s6665_s0 = inlined_call_operand.hbm [shape: f32[512,128], index: 0, kind: input, shape index: {}]   ;;  %s6666_s1 = inlined_call_operand.hbm [shape: f32[128,256], index: 1, kind: input, shape index: {}]   ;;  %s6667_s2 = inlined_call_operand.vmem [shape: f32[1,256], index: 2, kind: input, shape index: {}]   ;;  %s6668_s3 = inlined_call_operand.hbm [shape: f32[256,256], index: 3, kind: input, shape index: {}]   ;;  %s6669_s4 = inlined_call_operand.vmem [shape: f32[1,256], index: 4, kind: input, shape index: {}]   ;;  %s6670_s5 = inlined_call_operand.hbm [shape: f32[256,128], index: 5, kind: input, shape index: {}]   ;;  %s6671_s6 = inlined_call_operand.vmem [shape: f32[1,128], index: 6, kind: input, shape index: {}]   ;;  %s6672_s7 = inlined_call_operand.hbm [shape: f32[512,128], index: 7, kind: output, shape index: {}]  }
   0x1   :  { %6761 = sst [smem:[#allocation97_spill]] %s6666_s1 }
   0x2   :  { %12 = vsyncpa [#allocation3], 0 }
   0x3   :  { %14 = vsyncpa [#allocation3 + $0x1], 0 }
   0x4   :  { %15 = vsyncpa [#allocation6], 0 }
   0x5   :  { %16 = vsyncpa [#allocation9], 0 }
   0x6   :  { %17 = vsyncpa [#allocation4], 0 }
   0x7   :  { %19 = vsyncpa [#allocation4 + $0x1], 0  ;;  %s3842_s24 = smov 0   ;;  %s3844_s25 = smov 0  }
   0x8   :  { %s3846_s26 = smov 0   ;;  %s3848_s27 = smov 0  }
   0x9 LB: > { %s3863_s28 = sadd.s32 4294967295, %s3787_s27   ;;  %s3213_s29 = sadd.s32 4294967294, %s3787_s27   ;;  %s3787_s27 = sphi %s3848_s27, %s7036_s27   ;;  %s3783_s26 = sphi %s3846_s26, %s7035_s26   ;;  %s3779_s25 = sphi %s3844_s25, %s7034_s25   ;;  %s3775_s24 = sphi %s3842_s24, %s7033_s24  }
   0xa   : > { %p45_p0 = scmp.ne.s32.totalorder %s3779_s25, %s3775_s24  ;;  %p6673_p1 = scmp.eq.s32.totalorder %s3863_s28, 0 }
   0xb   : > { %p201_p3 = scmp.eq.s32.totalorder %s3213_s29, 1  ;;  %p3214_p5 = scmp.ge.s32.totalorder %s3787_s27, 1 }
   0xc   : > { %p3872_p4 = por %p6673_p1, %p45_p0  ;;  %p208_p7 = scmp.lt.s32.totalorder %s3787_s27, 3 }
   0xd   : > { %p3877_p6 = por %p201_p3, %p45_p0  ;;  %s3789_s10 = smov [#allocation5]  }
   0xe   : > { %s6762_s30 = scalar_select %p3872_p4, 1, 0 }
   0xf   : > { %s6763_s8 = scalar_select %p3877_p6, 1, 0 }
  0x10   : > { %p3882_p8 = pnand %p3214_p5, %p208_p7  ;;  %s220_s11 = sshll.u32 %s3789_s10, 4  ;;  %s221_s11 = int_to_ptr.vmem [resolvable:$true] %s220_s11 }
  0x11   : > { %s3790_s13 = smov [#allocation7]   ;;  %s3791_s15 = smov [#allocation8]  }
  0x12   : > { %s6764_s9 = scalar_select %p3882_p8, 1, 0 }
  0x13   : > { %p3284_p9 = pneg %p3882_p8  ;;  %s236_s14 = sshll.u32 %s3790_s13, 4  ;;  %s237_s14 = int_to_ptr.vmem [resolvable:$true] %s236_s14 }
  0x14   : > { %s252_s16 = sshll.u32 %s3791_s15, 4  ;;  %s3620_s17 = scalar_lea.vmem %s221_s11, 4096  ;;  %s253_s16 = int_to_ptr.vmem [resolvable:$true] %s252_s16 }
  0x15   : > { %p3891_p11 = pnand %p3284_p9, %p6673_p1  ;;  %p3621_p13 = scmp.ne.s32.totalorder %s221_s11, %s3620_s17 }
  0x16   : > { %p3628_p5 = scmp.lt.s32.totalorder %s221_s11, %s221_s11  ;;  %p3629_p7 = scmp.lt.s32.totalorder %s3620_s17, %s3620_s17 }
  0x17   : > { %p3611_p12 = pneg %p3891_p11 }
  0x18   : > { %p3630_p9 = por %p3629_p7, %p3628_p5 }
  0x19   : > { %p3623_p0 = pnand %p3621_p13, %p3611_p12 }
  0x1b   : > { %p3624_p3 = pneg %p3623_p0 }
  0x1d   : > { %p3631_p10 = pnand %p3630_p9, %p3624_p3 }
  0x1f   : > { %3634 = shalt.err (!%p3631_p10)
}
  0x20   : > { %s3792_s18 = smov 256   ;;  %s3793_s19 = smov 16  }
  0x21   : > { %s6766_s1 = sld [smem:[#allocation97_spill]]  ;;  %s3646_s22 = scalar_lea.vmem %s237_s14, 8192 }
  0x22   : > { %p3647_p1 = scmp.ne.s32.totalorder %s237_s14, %s3646_s22  ;;  %p3654_p2 = scmp.lt.s32.totalorder %s237_s14, %s237_s14 }
  0x23   : > { %p3655_p6 = scmp.lt.s32.totalorder %s3646_s22, %s3646_s22 }
  0x24   : > { %p3649_p13 = pnand %p3647_p1, %p3611_p12 }
  0x25   : > { %p3656_p5 = por %p3655_p6, %p3654_p2 }
  0x26   : > { %p3650_p0 = pneg %p3649_p13 }
  0x27   : > { %3287 = dma.hbm_to_vmem [thread:$0]  (!%p3891_p11), %s6766_s1, 4096, %s221_s11, [#allocation6], %s3792_s18, %s3792_s18, %s3793_s19  }
  0x28   : > { %p3657_p3 = pnand %p3656_p5, %p3650_p0 }
  0x2a   : > { %3660 = shalt.err (!%p3657_p3)
}
  0x2b   : > { %3290 = dma.hbm_to_vmem [thread:$0]  (!%p3891_p11), %s6668_s3, 8192, %s237_s14, [#allocation6], %s3792_s18, %s3792_s18, %s3793_s19  }
  0x2c   : > { %s3672_s10 = scalar_lea.vmem %s253_s16, 4096  ;;  %p3680_p9 = scmp.lt.s32.totalorder %s253_s16, %s253_s16 }
  0x2d   : > { %p3673_p10 = scmp.ne.s32.totalorder %s253_s16, %s3672_s10  ;;  %p3681_p13 = scmp.lt.s32.totalorder %s3672_s10, %s3672_s10 }
  0x2f   : > { %p3675_p7 = pnand %p3673_p10, %p3611_p12  ;;  %p3682_p4 = por %p3681_p13, %p3680_p9 }
  0x31   : > { %p3676_p1 = pneg %p3675_p7 }
  0x33   : > { %p3683_p2 = pnand %p3682_p4, %p3676_p1 }
  0x35   : > { %3686 = shalt.err (!%p3683_p2)
}
  0x36   : > { %s6675_s11 = smov 128   ;;  %s6676_s13 = smov 8  }
  0x37   : > { %3293 = dma.hbm_to_vmem [thread:$0]  (!%p3891_p11), %s6670_s5, 4096, %s253_s16, [#allocation9], %s6675_s11, %s6675_s11, %s6676_s13  }
  0x38   : > { %s3925_s17 = sadd.s32 1, %s3787_s27   ;;  %s32_s19 = sadd.s32 1, %s3783_s26 }
  0x39   : > { %s29_s18 = ssub.s32 %s3787_s27, %s3925_s17  ;;  %p39_p6 = scmp.ne.s32.totalorder %s3783_s26, %s3779_s25 }
  0x3a   : > { %p30_p4 = scmp.eq.s32.totalorder %s29_s18, 0  ;;  %p40_p12 = scmp.eq.s32.totalorder %s3787_s27, 0 }
  0x3b   : > { %p3305_p0 = scmp.lt.s32.totalorder %s3787_s27, 2  ;;  %p6767_p3 = scmp.eq.s32.totalorder %s3863_s28, 1 }
  0x3c   : > { %s3935_s20 = scalar_select %p30_p4, %s3783_s26, %s32_s19  }
  0x3d   : > { %p41_p5 = por %p40_p12, %p39_p6  ;;  %p3939_p10 = por %p6767_p3, %p39_p6 }
  0x3e   : > { %s269_s21 = sand.u32 1, %s3783_s26   ;;  %s3234_s22 = sshll.u32 %s3787_s27, 12 }
  0x3f   : > { %s6768_s12 = scalar_select %p3939_p10, 1, 0 }
  0x40   : > { %s3219_s16 = sshll.u32 %s269_s21, 8  ;;  %s3948_s10 = scalar_lea.hbm %s6665_s0, %s3234_s22 }
  0x41   : > { %s273_s14 = scalar_lea.vmem [#allocation2], %s3219_s16  ;;  %p3950_p11 = pnand %p3305_p0, %p41_p5 }
  0x42   : > { %s280_s15 = sshll.u32 %s273_s14, 4  ;;  %s3956_s19 = scalar_lea.sflag [#allocation3], %s269_s21  ;;  %s3954_s15 = int_to_ptr.vmem [resolvable:$true] %s280_s15 }
  0x43   : > { %s3687_s11 = scalar_lea.hbm %s3948_s10, 4096  ;;  %p3689_p1 = pneg %p3950_p11 }
  0x44   : > { %p3688_p7 = scmp.ne.s32.totalorder %s3948_s10, %s3687_s11  ;;  %s3692_s16 = scalar_lea.hbm %s6665_s0, 8192 }
  0x45   : > { %p3693_p2 = scmp.lt.s32.totalorder %s3948_s10, %s6665_s0  ;;  %p3694_p4 = scmp.lt.s32.totalorder %s3692_s16, %s3687_s11 }
  0x46   : > { %p3690_p9 = pnand %p3689_p1, %p3688_p7 }
  0x47   : > { %p3695_p6 = por %p3694_p4, %p3693_p2 }
  0x48   : > { %p3691_p13 = pneg %p3690_p9 }
  0x4a   : > { %p3696_p12 = pnand %p3695_p6, %p3691_p13 }
  0x4c   : > { %3699 = shalt.err (!%p3696_p12)
}
  0x4d   : > { %s3700_s21 = scalar_lea.vmem %s3954_s15, 4096  ;;  %s3796_s13 = smov [#allocation2]  }
  0x4e   : > { %p3701_p0 = scmp.ne.s32.totalorder %s3954_s15, %s3700_s21  ;;  %s3705_s1 = sshll.u32 %s3796_s13, 4  ;;  %s3706_s1 = int_to_ptr.vmem [resolvable:$false] %s3705_s1 }
  0x4f   : > { %s3707_s22 = scalar_lea.vmem %s3706_s1, 8192  ;;  %p3708_p7 = scmp.lt.s32.totalorder %s3954_s15, %s3706_s1 }
  0x50   : > { %p3703_p5 = pnand %p3701_p0, %p3689_p1  ;;  %p3709_p9 = scmp.lt.s32.totalorder %s3707_s22, %s3700_s21 }
  0x52   : > { %p3704_p3 = pneg %p3703_p5  ;;  %p3710_p10 = por %p3709_p9, %p3708_p7 }
  0x54   : > { %p3711_p8 = pnand %p3710_p10, %p3704_p3 }
  0x56   : > { %3714 = shalt.err (!%p3711_p8)
}
  0x57   : > { %s6770_s11 = smov 8   ;;  %s6771_s23 = smov 128  }
  0x58   : > { %3297 = dma.hbm_to_vmem [thread:$0]  (!%p3950_p11), %s3948_s10, 4096, %s3954_s15, %s3956_s19, %s6771_s23, %s6771_s23, %s6770_s11  }
  0x59   : > { %p6772_p1 = scmp.ne.s32.totalorder %s6764_s9, 0 }
  0x5b   : > { %292 = sbr.rel (%p6772_p1) target bundleno = 1210 (0x4ba), region = 48 }
  0x60   : > { %s3983_s13 = sand.u32 1, %s3779_s25   ;;  %p6773_p8 = scmp.ne.s32.totalorder %s6762_s30, 0 }
  0x61   : > { %s3223_s1 = sshll.u32 %s3983_s13, 8  ;;  %s295_s16 = scalar_lea.sflag [#allocation3], %s3983_s13 }
  0x62   : > { %s3989_s18 = scalar_lea.vmem [#allocation2], %s3223_s1 }
  0x63   : > { %3758 = dma.done.wait (%p6773_p8), %s295_s16, 4096  }
  0x64   : > { %3760 = vsyncadd (%p6773_p8), %s295_s16, 4294963200  ;;  %p6774_p10 = scmp.eq.s32.totalorder %s3863_s28, 0 }
  0x66   : > { %3762 = dma.done.wait (%p6774_p10), [#allocation6], 12288   ;;  %p6775_p11 = pmov %p6774_p10 }
  0x67   : > { %p6776_p13 = pmov %p6774_p10 }
  0x68   : > { %3764 = vsyncadd (%p6775_p11), [#allocation6], 4294955008 }
  0x69   : > { %3766 = dma.done.wait (%p6776_p13), [#allocation9], 4096   ;;  %p6777_p2 = pmov %p6774_p10 }
  0x6a   : > { %v6683_v0 = vmov 0.0   ;;  %v406_v1 = vld [vmem:[#allocation5 + $0xf8] sm:$0xff]  ;;  %v405_v2 = vld [vmem:[#allocation5 + $0xf0] sm:$0xff]  ;;  %v404_v3 = vld [vmem:[#allocation5 + $0xe8] sm:$0xff]  ;;  %s6464_s14 = scalar_lea.vmem [#allocation10], %s3223_s1  ;;  %s3235_s21 = sshll.u32 %s3863_s28, 12 }
  0x6b   : > { %3768 = vsyncadd (%p6777_p2), [#allocation9], 4294963200  ;;  %483 = vmatprep.mubr.f32.mxu0 %v6683_v0  ;;  %579 = vmatprep.mubr.f32.mxu1 %v6683_v0  ;;  %v403_v4 = vld [vmem:[#allocation5 + $0xe0] sm:$0xff]  ;;  %v402_v5 = vld [vmem:[#allocation5 + $0xd8] sm:$0xff]  ;;  %s3111_s22 = sshll.u32 %s6464_s14, 4  ;;  %s6618_s1 = scalar_lea.hbm %s6672_s7, %s3235_s21  ;;  %s6620_s22 = int_to_ptr.vmem [resolvable:$true] %s3111_s22 }
  0x6c   : > { %419 = vmatprep.subr.mxu0 %v406_v1  ;;  %3236 = vmatprep.subr.mxu1 %v406_v1  ;;  %v401_v6 = vld [vmem:[#allocation5 + $0xd0] sm:$0xff]  ;;  %v400_v7 = vld [vmem:[#allocation5 + $0xc8] sm:$0xff]  ;;  %v399_v8 = vld [vmem:[#allocation5 + $0xc0] sm:$0xff]  ;;  %s3098_s16 = scalar_lea.sflag [#allocation4], %s3983_s13  ;;  %s3715_s28 = scalar_lea.vmem %s6620_s22, 4096 }
  0x6d   : > { %420 = vmatpush1.msra.mxu0 %v405_v2  ;;  %3252 = vmatpush1.msra.mxu1 %v405_v2  ;;  %v398_v9 = vld [vmem:[#allocation5 + $0xb8] sm:$0xff]  ;;  %v397_v10 = vld [vmem:[#allocation5 + $0xb0] sm:$0xff]  ;;  %v396_v11 = vld [vmem:[#allocation5 + $0xa8] sm:$0xff]  ;;  %p3716_p4 = scmp.ne.s32.totalorder %s6620_s22, %s3715_s28  ;;  %p7030_p6 = scmp.ne.s32.totalorder %s6768_s12, 0 }
  0x6e   : > { %421 = vmatprep.subr.mxu0 %v404_v3  ;;  %3237 = vmatprep.subr.mxu1 %v404_v3  ;;  %v395_v12 = vld [vmem:[#allocation5 + $0xa0] sm:$0xff]  ;;  %v394_v13 = vld [vmem:[#allocation5 + $0x98] sm:$0xff]  ;;  %v393_v14 = vld [vmem:[#allocation5 + $0x90] sm:$0xff] }
  0x6f   : > { %422 = vmatpush1.msra.mxu0 %v403_v4  ;;  %3253 = vmatpush1.msra.mxu1 %v403_v4  ;;  %v392_v15 = vld [vmem:[#allocation5 + $0x88] sm:$0xff]  ;;  %v391_v16 = vld [vmem:[#allocation5 + $0x80] sm:$0xff]  ;;  %v390_v17 = vld [vmem:[#allocation5 + $0x78] sm:$0xff]  ;;  %p3717_p12 = pnand %p3716_p4, %p7030_p6 }
  0x70   : > { %423 = vmatprep.subr.mxu0 %v402_v5  ;;  %3238 = vmatprep.subr.mxu1 %v402_v5  ;;  %v389_v18 = vld [vmem:[#allocation5 + $0x70] sm:$0xff]  ;;  %v388_v19 = vld [vmem:[#allocation5 + $0x68] sm:$0xff]  ;;  %v387_v20 = vld [vmem:[#allocation5 + $0x60] sm:$0xff] }
  0x71   : > { %424 = vmatpush1.msra.mxu0 %v401_v6  ;;  %3254 = vmatpush1.msra.mxu1 %v401_v6  ;;  %v386_v21 = vld [vmem:[#allocation5 + $0x58] sm:$0xff]  ;;  %v385_v22 = vld [vmem:[#allocation5 + $0x50] sm:$0xff]  ;;  %v384_v23 = vld [vmem:[#allocation5 + $0x48] sm:$0xff]  ;;  %p3718_p0 = pneg %p3717_p12 }
  0x72   : > { %425 = vmatprep.subr.mxu0 %v400_v7  ;;  %3239 = vmatprep.subr.mxu1 %v400_v7  ;;  %v383_v24 = vld [vmem:[#allocation5 + $0x40] sm:$0xff]  ;;  %v382_v25 = vld [vmem:[#allocation5 + $0x38] sm:$0xff]  ;;  %v381_v26 = vld [vmem:[#allocation5 + $0x30] sm:$0xff] }
  0x73   : > { %426 = vmatpush1.msra.mxu0 %v399_v8  ;;  %3255 = vmatpush1.msra.mxu1 %v399_v8  ;;  %v380_v27 = vld [vmem:[#allocation5 + $0x28] sm:$0xff]  ;;  %v379_v28 = vld [vmem:[#allocation5 + $0x20] sm:$0xff]  ;;  %v378_v29 = vld [vmem:[#allocation5 + $0x18] sm:$0xff] }
  0x74   : > { %427 = vmatprep.subr.mxu0 %v398_v9  ;;  %3240 = vmatprep.subr.mxu1 %v398_v9  ;;  %v377_v30 = vld [vmem:[#allocation5 + $0x10] sm:$0xff]  ;;  %v376_v31 = vld [vmem:[#allocation5 + $0x8] sm:$0xff]  ;;  %v375_v32 = vld [vmem:[#allocation5] sm:$0xff] }
  0x75   : > { %428 = vmatpush1.msra.mxu0 %v397_v10  ;;  %3256 = vmatpush1.msra.mxu1 %v397_v10  ;;  %v343_v33 = vld [vmem:[%s3989_s18] sm:$0xff]  ;;  %v707_v35 = vld [vmem:[#allocation7 + $0xf8] sm:$0xff]  ;;  %v706_v36 = vld [vmem:[#allocation7 + $0xf0] sm:$0xff] }
  0x76   : > { %429 = vmatprep.subr.mxu0 %v396_v11  ;;  %3241 = vmatprep.subr.mxu1 %v396_v11  ;;  %v359_v34 = vld [vmem:[%s3989_s18 + $0x80] sm:$0xff]  ;;  %v344_v37 = vld [vmem:[%s3989_s18 + $0x8] sm:$0xff]  ;;  %v345_v41 = vld [vmem:[%s3989_s18 + $0x10] sm:$0xff] }
  0x77   : > { %430 = vmatpush1.msra.mxu0 %v395_v12  ;;  %3257 = vmatpush1.msra.mxu1 %v395_v12  ;;  %v360_v38 = vld [vmem:[%s3989_s18 + $0x88] sm:$0xff]  ;;  %v704_v40 = vld [vmem:[#allocation7 + $0xe0] sm:$0xff]  ;;  %v361_v42 = vld [vmem:[%s3989_s18 + $0x90] sm:$0xff] }
  0x78   : > { %431 = vmatprep.subr.mxu0 %v394_v13  ;;  %3242 = vmatprep.subr.mxu1 %v394_v13  ;;  %v705_v39 = vld [vmem:[#allocation7 + $0xe8] sm:$0xff]  ;;  %v703_v43 = vld [vmem:[#allocation7 + $0xd8] sm:$0xff]  ;;  %v702_v44 = vld [vmem:[#allocation7 + $0xd0] sm:$0xff] }
  0x79   : > { %432 = vmatpush1.msra.mxu0 %v393_v14  ;;  %3258 = vmatpush1.msra.mxu1 %v393_v14  ;;  %v346_v45 = vld [vmem:[%s3989_s18 + $0x18] sm:$0xff]  ;;  %v701_v47 = vld [vmem:[#allocation7 + $0xc8] sm:$0xff]  ;;  %v700_v48 = vld [vmem:[#allocation7 + $0xc0] sm:$0xff] }
  0x7a   : > { %433 = vmatprep.subr.mxu0 %v392_v15  ;;  %3243 = vmatprep.subr.mxu1 %v392_v15  ;;  %v362_v46 = vld [vmem:[%s3989_s18 + $0x98] sm:$0xff]  ;;  %v347_v49 = vld [vmem:[%s3989_s18 + $0x20] sm:$0xff]  ;;  %v698_v52 = vld [vmem:[#allocation7 + $0xb0] sm:$0xff] }
  0x7b   : > { %434 = vmatpush1.msra.mxu0 %v391_v16  ;;  %3259 = vmatpush1.msra.mxu1 %v391_v16  ;;  %v363_v50 = vld [vmem:[%s3989_s18 + $0xa0] sm:$0xff]  ;;  %v699_v51 = vld [vmem:[#allocation7 + $0xb8] sm:$0xff]  ;;  %v348_v53 = vld [vmem:[%s3989_s18 + $0x28] sm:$0xff] }
  0x7c   : > { %435 = vmatprep.subr.mxu0 %v390_v17  ;;  %3244 = vmatprep.subr.mxu1 %v390_v17  ;;  %v364_v54 = vld [vmem:[%s3989_s18 + $0xa8] sm:$0xff]  ;;  %v696_v56 = vld [vmem:[#allocation7 + $0xa0] sm:$0xff]  ;;  %v349_v57 = vld [vmem:[%s3989_s18 + $0x30] sm:$0xff] }
  0x7d   : > { %436 = vmatpush1.msra.mxu0 %v389_v18  ;;  %3260 = vmatpush1.msra.mxu1 %v389_v18  ;;  %v697_v55 = vld [vmem:[#allocation7 + $0xa8] sm:$0xff]  ;;  %v365_v58 = vld [vmem:[%s3989_s18 + $0xb0] sm:$0xff]  ;;  %v695_v59 = vld [vmem:[#allocation7 + $0x98] sm:$0xff] }
  0x7e   : > { %437 = vmatprep.subr.mxu0 %v388_v19  ;;  %3245 = vmatprep.subr.mxu1 %v388_v19  ;;  %v694_v60 = vld [vmem:[#allocation7 + $0x90] sm:$0xff]  ;;  %v350_v61 = vld [vmem:[%s3989_s18 + $0x38] sm:$0xff]  ;;  %v693_v63 = vld [vmem:[#allocation7 + $0x88] sm:$0xff] }
  0x7f   : > { %438 = vmatpush1.msra.mxu0 %v387_v20  ;;  %3261 = vmatpush1.msra.mxu1 %v387_v20  ;;  %v366_v62 = vld [vmem:[%s3989_s18 + $0xb8] sm:$0xff]  ;;  %v692_v1 = vld [vmem:[#allocation7 + $0x80] sm:$0xff]  ;;  %v690_v5 = vld [vmem:[#allocation7 + $0x70] sm:$0xff] }
  0x80   : > { %439 = vmatprep.subr.mxu0 %v386_v21  ;;  %3246 = vmatprep.subr.mxu1 %v386_v21  ;;  %v351_v2 = vld [vmem:[%s3989_s18 + $0x40] sm:$0xff]  ;;  %v691_v4 = vld [vmem:[#allocation7 + $0x78] sm:$0xff]  ;;  %v352_v6 = vld [vmem:[%s3989_s18 + $0x48] sm:$0xff] }
  0x81   : > { %440 = vmatpush1.msra.mxu0 %v385_v22  ;;  %3262 = vmatpush1.msra.mxu1 %v385_v22  ;;  %v367_v3 = vld [vmem:[%s3989_s18 + $0xc0] sm:$0xff]  ;;  %v368_v7 = vld [vmem:[%s3989_s18 + $0xc8] sm:$0xff]  ;;  %v353_v10 = vld [vmem:[%s3989_s18 + $0x50] sm:$0xff] }
  0x82   : > { %441 = vmatprep.subr.mxu0 %v384_v23  ;;  %3247 = vmatprep.subr.mxu1 %v384_v23  ;;  %v689_v8 = vld [vmem:[#allocation7 + $0x68] sm:$0xff]  ;;  %v688_v9 = vld [vmem:[#allocation7 + $0x60] sm:$0xff]  ;;  %v369_v11 = vld [vmem:[%s3989_s18 + $0xd0] sm:$0xff] }
  0x83   : > { %442 = vmatpush1.msra.mxu0 %v383_v24  ;;  %3263 = vmatpush1.msra.mxu1 %v383_v24  ;;  %v687_v12 = vld [vmem:[#allocation7 + $0x58] sm:$0xff]  ;;  %v686_v13 = vld [vmem:[#allocation7 + $0x50] sm:$0xff]  ;;  %v685_v16 = vld [vmem:[#allocation7 + $0x48] sm:$0xff] }
  0x84   : > { %443 = vmatprep.subr.mxu0 %v382_v25  ;;  %3248 = vmatprep.subr.mxu1 %v382_v25  ;;  %v354_v14 = vld [vmem:[%s3989_s18 + $0x58] sm:$0xff]  ;;  %v684_v17 = vld [vmem:[#allocation7 + $0x40] sm:$0xff]  ;;  %v682_v21 = vld [vmem:[#allocation7 + $0x30] sm:$0xff] }
  0x85   : > { %444 = vmatpush1.msra.mxu0 %v381_v26  ;;  %3264 = vmatpush1.msra.mxu1 %v381_v26  ;;  %v370_v15 = vld [vmem:[%s3989_s18 + $0xd8] sm:$0xff]  ;;  %v355_v18 = vld [vmem:[%s3989_s18 + $0x60] sm:$0xff]  ;;  %v356_v22 = vld [vmem:[%s3989_s18 + $0x68] sm:$0xff] }
  0x86   : > { %445 = vmatprep.subr.mxu0 %v380_v27  ;;  %3249 = vmatprep.subr.mxu1 %v380_v27  ;;  %v371_v19 = vld [vmem:[%s3989_s18 + $0xe0] sm:$0xff]  ;;  %v683_v20 = vld [vmem:[#allocation7 + $0x38] sm:$0xff]  ;;  %v372_v23 = vld [vmem:[%s3989_s18 + $0xe8] sm:$0xff] }
  0x87   : > { %446 = vmatpush1.msra.mxu0 %v379_v28  ;;  %3265 = vmatpush1.msra.mxu1 %v379_v28  ;;  %v681_v24 = vld [vmem:[#allocation7 + $0x28] sm:$0xff]  ;;  %v680_v25 = vld [vmem:[#allocation7 + $0x20] sm:$0xff]  ;;  %v357_v26 = vld [vmem:[%s3989_s18 + $0x70] sm:$0xff] }
  0x88   : > { %447 = vmatprep.subr.mxu0 %v378_v29  ;;  %3250 = vmatprep.subr.mxu1 %v378_v29  ;;  %v373_v27 = vld [vmem:[%s3989_s18 + $0xf0] sm:$0xff]  ;;  %v679_v28 = vld [vmem:[#allocation7 + $0x18] sm:$0xff] }
  0x89   : > { %448 = vmatpush1.msra.mxu0 %v377_v30  ;;  %3266 = vmatpush1.msra.mxu1 %v377_v30  ;;  %v678_v29 = vld [vmem:[#allocation7 + $0x10] sm:$0xff]  ;;  %v358_v30 = vld [vmem:[%s3989_s18 + $0x78] sm:$0xff] }
  0x8a   : > { %449 = vmatprep.subr.mxu0 %v376_v31  ;;  %3251 = vmatprep.subr.mxu1 %v376_v31  ;;  %v374_v31 = vld [vmem:[%s3989_s18 + $0xf8] sm:$0xff]  ;;  %s3799_s18 = smov [#allocation10]  }
  0x8b   : > { %450 = vmatpush1.msra.mxu0 %v375_v32  ;;  %3267 = vmatpush1.msra.mxu1 %v375_v32  ;;  %v677_v32 = vld [vmem:[#allocation7 + $0x8] sm:$0xff]  ;;  %s3719_s30 = sshll.u32 %s3799_s18, 4  ;;  %s3720_s30 = int_to_ptr.vmem [resolvable:$false] %s3719_s30 }
  0x8c   : > { %484 = vmatmul.mubr.f32.vlgmr.msra.gmra.mxu0 %v343_v33  ;;  %580 = vmatmul.mubr.f32.vlgmr.msra.gmra.mxu1 %v359_v34  ;;  %v676_v33 = vld [vmem:[#allocation7] sm:$0xff]  ;;  %v739_v34 = vld [vmem:[#allocation7 + $0x1f8] sm:$0xff]  ;;  %s3721_s9 = scalar_lea.vmem %s3720_s30, 8192  ;;  %p3722_p5 = scmp.lt.s32.totalorder %s6620_s22, %s3720_s30 }
  0x8d   : > { %489 = vmatprep.mubr.f32.mxu0 %v6683_v0  ;;  %585 = vmatprep.mubr.f32.mxu1 %v6683_v0  ;;  %p3723_p3 = scmp.lt.s32.totalorder %s3721_s9, %s3715_s28 }
  0x8e   : > { %752 = vmatprep.subr.mxu1 %v707_v35  ;;  %2840 = vmatprep.subr.mxu0 %v6683_v0  ;;  %v738_v35 = vld [vmem:[#allocation7 + $0x1f0] sm:$0xff] }
  0x8f   : > { %753 = vmatpush1.msra.mxu1 %v706_v36  ;;  %v737_v36 = vld [vmem:[#allocation7 + $0x1e8] sm:$0xff]  ;;  %p3724_p7 = por %p3723_p3, %p3722_p5 }
  0x90   : > { %490 = vmatmul.mubr.f32.gmra.mxu0 %v344_v37  ;;  %586 = vmatmul.mubr.f32.gmra.mxu1 %v360_v38  ;;  %v736_v37 = vld [vmem:[#allocation7 + $0x1e0] sm:$0xff]  ;;  %v735_v38 = vld [vmem:[#allocation7 + $0x1d8] sm:$0xff] }
  0x91   : > { %495 = vmatprep.mubr.f32.mxu0 %v6683_v0  ;;  %591 = vmatprep.mubr.f32.mxu1 %v6683_v0  ;;  %p3725_p9 = pnand %p3724_p7, %p3718_p0 }
  0x92   : > { %754 = vmatprep.subr.mxu1 %v705_v39  ;;  %v734_v39 = vld [vmem:[#allocation7 + $0x1d0] sm:$0xff] }
  0x93   : > { %755 = vmatpush1.msra.mxu1 %v704_v40  ;;  %v733_v40 = vld [vmem:[#allocation7 + $0x1c8] sm:$0xff] }
  0x94   : > { %496 = vmatmul.mubr.f32.gmra.mxu0 %v345_v41  ;;  %592 = vmatmul.mubr.f32.gmra.mxu1 %v361_v42  ;;  %v732_v41 = vld [vmem:[#allocation7 + $0x1c0] sm:$0xff]  ;;  %v731_v42 = vld [vmem:[#allocation7 + $0x1b8] sm:$0xff] }
  0x95   : > { %501 = vmatprep.mubr.f32.mxu0 %v6683_v0  ;;  %597 = vmatprep.mubr.f32.mxu1 %v6683_v0 }
  0x96   : > { %756 = vmatprep.subr.mxu1 %v703_v43  ;;  %v730_v43 = vld [vmem:[#allocation7 + $0x1b0] sm:$0xff] }
  0x97   : > { %757 = vmatpush1.msra.mxu1 %v702_v44  ;;  %v729_v44 = vld [vmem:[#allocation7 + $0x1a8] sm:$0xff] }
  0x98   : > { %502 = vmatmul.mubr.f32.gmra.mxu0 %v346_v45  ;;  %598 = vmatmul.mubr.f32.gmra.mxu1 %v362_v46  ;;  %v728_v45 = vld [vmem:[#allocation7 + $0x1a0] sm:$0xff]  ;;  %v727_v46 = vld [vmem:[#allocation7 + $0x198] sm:$0xff] }
  0x99   : > { %507 = vmatprep.mubr.f32.mxu0 %v6683_v0  ;;  %603 = vmatprep.mubr.f32.mxu1 %v6683_v0 }
  0x9a   : > { %758 = vmatprep.subr.mxu1 %v701_v47  ;;  %v726_v47 = vld [vmem:[#allocation7 + $0x190] sm:$0xff] }
  0x9b   : > { %759 = vmatpush1.msra.mxu1 %v700_v48  ;;  %v725_v48 = vld [vmem:[#allocation7 + $0x188] sm:$0xff] }
  0x9c   : > { %508 = vmatmul.mubr.f32.gmra.mxu0 %v347_v49  ;;  %604 = vmatmul.mubr.f32.gmra.mxu1 %v363_v50  ;;  %v724_v49 = vld [vmem:[#allocation7 + $0x180] sm:$0xff]  ;;  %v723_v50 = vld [vmem:[#allocation7 + $0x178] sm:$0xff] }
  0x9d   : > { %513 = vmatprep.mubr.f32.mxu0 %v6683_v0  ;;  %609 = vmatprep.mubr.f32.mxu1 %v6683_v0 }
  0x9e   : > { %760 = vmatprep.subr.mxu1 %v699_v51  ;;  %v722_v51 = vld [vmem:[#allocation7 + $0x170] sm:$0xff] }
  0x9f   : > { %761 = vmatpush1.msra.mxu1 %v698_v52  ;;  %v721_v52 = vld [vmem:[#allocation7 + $0x168] sm:$0xff] }
  0xa0   : > { %514 = vmatmul.mubr.f32.gmra.mxu0 %v348_v53  ;;  %610 = vmatmul.mubr.f32.gmra.mxu1 %v364_v54  ;;  %v720_v53 = vld [vmem:[#allocation7 + $0x160] sm:$0xff]  ;;  %v719_v54 = vld [vmem:[#allocation7 + $0x158] sm:$0xff] }
  0xa1   : > { %519 = vmatprep.mubr.f32.mxu0 %v6683_v0  ;;  %615 = vmatprep.mubr.f32.mxu1 %v6683_v0 }
  0xa2   : > { %762 = vmatprep.subr.mxu1 %v697_v55  ;;  %v718_v55 = vld [vmem:[#allocation7 + $0x150] sm:$0xff] }
  0xa3   : > { %763 = vmatpush1.msra.mxu1 %v696_v56  ;;  %v717_v56 = vld [vmem:[#allocation7 + $0x148] sm:$0xff] }
  0xa4   : > { %520 = vmatmul.mubr.f32.gmra.mxu0 %v349_v57  ;;  %616 = vmatmul.mubr.f32.gmra.mxu1 %v365_v58  ;;  %v716_v57 = vld [vmem:[#allocation7 + $0x140] sm:$0xff]  ;;  %v715_v58 = vld [vmem:[#allocation7 + $0x138] sm:$0xff] }
  0xa5   : > { %525 = vmatprep.mubr.f32.mxu0 %v6683_v0  ;;  %621 = vmatprep.mubr.f32.mxu1 %v6683_v0 }
  0xa6   : > { %764 = vmatprep.subr.mxu1 %v695_v59  ;;  %v714_v59 = vld [vmem:[#allocation7 + $0x130] sm:$0xff] }
  0xa7   : > { %765 = vmatpush1.msra.mxu1 %v694_v60  ;;  %v713_v60 = vld [vmem:[#allocation7 + $0x128] sm:$0xff] }
  0xa8   : > { %526 = vmatmul.mubr.f32.gmra.mxu0 %v350_v61  ;;  %622 = vmatmul.mubr.f32.gmra.mxu1 %v366_v62  ;;  %v712_v61 = vld [vmem:[#allocation7 + $0x120] sm:$0xff]  ;;  %v711_v62 = vld [vmem:[#allocation7 + $0x118] sm:$0xff] }
  0xa9   : > { %531 = vmatprep.mubr.f32.mxu0 %v6683_v0  ;;  %627 = vmatprep.mubr.f32.mxu1 %v6683_v0 }
  0xaa   : > { %766 = vmatprep.subr.mxu1 %v693_v63  ;;  %v710_v63 = vld [vmem:[#allocation7 + $0x110] sm:$0xff] }
  0xab   : > { %767 = vmatpush1.msra.mxu1 %v692_v1  ;;  %v709_v1 = vld [vmem:[#allocation7 + $0x108] sm:$0xff] }
  0xac   : > { %532 = vmatmul.mubr.f32.gmra.mxu0 %v351_v2  ;;  %628 = vmatmul.mubr.f32.gmra.mxu1 %v367_v3  ;;  %v708_v2 = vld [vmem:[#allocation7 + $0x100] sm:$0xff]  ;;  %v409_v3 = vlaneseq }
  0xad   : > { %537 = vmatprep.mubr.f32.mxu0 %v6683_v0  ;;  %633 = vmatprep.mubr.f32.mxu1 %v6683_v0 }
  0xae   : > { %768 = vmatprep.subr.mxu1 %v691_v4  ;;  %v4068_v4 = vshrl.u32 %v409_v3, 7 }
  0xaf   : > { %769 = vmatpush1.msra.mxu1 %v690_v5 }
  0xb0   : > { %538 = vmatmul.mubr.f32.gmra.mxu0 %v352_v6  ;;  %634 = vmatmul.mubr.f32.gmra.mxu1 %v368_v7  ;;  %v6679_v5 = vsub.s32 1, %v4068_v4  ;;  %v6680_v6 = vsub.s32 0, %v4068_v4  ;;  %v407_v7 = vld [vmem:[%s6667_s2] sm:$0x3] }
  0xb1   : > { %543 = vmatprep.mubr.f32.mxu0 %v6683_v0  ;;  %639 = vmatprep.mubr.f32.mxu1 %v6683_v0 }
  0xb2   : > { %770 = vmatprep.subr.mxu1 %v689_v8  ;;  %v4077_v8 = vrot.slane %v407_v7, %v6679_v5  ;;  %v2809_v5 = vld [vmem:[#allocation8 + $0x40] sm:$0xff] }
  0xb3   : > { %771 = vmatpush1.msra.mxu1 %v688_v9  ;;  %v4081_v9 = vrot.slane %v407_v7, %v6680_v6 }
  0xb4   : > { %544 = vmatmul.mubr.f32.gmra.mxu0 %v353_v10  ;;  %640 = vmatmul.mubr.f32.gmra.mxu1 %v369_v11 }
  0xb5   : > { %549 = vmatprep.mubr.f32.mxu0 %v6683_v0  ;;  %645 = vmatprep.mubr.f32.mxu1 %v6683_v0 }
  0xb6   : > { %772 = vmatprep.subr.mxu1 %v687_v12 }
  0xb7   : > { %773 = vmatpush1.msra.mxu1 %v686_v13 }
  0xb8   : > { %550 = vmatmul.mubr.f32.gmra.mxu0 %v354_v14  ;;  %646 = vmatmul.mubr.f32.gmra.mxu1 %v370_v15  ;;  %v2816_v14 = vld [vmem:[#allocation8 + $0x78] sm:$0xff]  ;;  %v2815_v15 = vld [vmem:[#allocation8 + $0x70] sm:$0xff] }
  0xb9   : > { %555 = vmatprep.mubr.f32.mxu0 %v6683_v0  ;;  %651 = vmatprep.mubr.f32.mxu1 %v6683_v0 }
  0xba   : > { %774 = vmatprep.subr.mxu1 %v685_v16  ;;  %2841 = vmatpush1.msra.mxu0 %v2816_v14 }
  0xbb   : > { %775 = vmatpush1.msra.mxu1 %v684_v17  ;;  %2842 = vmatprep.subr.mxu0 %v6683_v0 }
  0xbc   : > { %556 = vmatmul.mubr.f32.gmra.mxu0 %v355_v18  ;;  %652 = vmatmul.mubr.f32.gmra.mxu1 %v371_v19 }
  0xbd   : > { %561 = vmatprep.mubr.f32.mxu0 %v6683_v0  ;;  %657 = vmatprep.mubr.f32.mxu1 %v6683_v0 }
  0xbe   : > { %776 = vmatprep.subr.mxu1 %v683_v20  ;;  %v2814_v20 = vld [vmem:[#allocation8 + $0x68] sm:$0xff]  ;;  %2843 = vmatpush1.msra.mxu0 %v2815_v15 }
  0xbf   : > { %777 = vmatpush1.msra.mxu1 %v682_v21  ;;  %2844 = vmatprep.subr.mxu0 %v6683_v0 }
  0xc0   : > { %562 = vmatmul.mubr.f32.gmra.mxu0 %v356_v22  ;;  %658 = vmatmul.mubr.f32.gmra.mxu1 %v372_v23 }
  0xc1   : > { %567 = vmatprep.mubr.f32.mxu0 %v6683_v0  ;;  %663 = vmatprep.mubr.f32.mxu1 %v6683_v0 }
  0xc2   : > { %778 = vmatprep.subr.mxu1 %v681_v24  ;;  %2845 = vmatpush1.msra.mxu0 %v2814_v20 }
  0xc3   : > { %779 = vmatpush1.msra.mxu1 %v680_v25  ;;  %2846 = vmatprep.subr.mxu0 %v6683_v0 }
  0xc4   : > { %568 = vmatmul.mubr.f32.gmra.mxu0 %v357_v26  ;;  %664 = vmatmul.mubr.f32.gmra.mxu1 %v373_v27 }
  0xc5   : > { %573 = vmatprep.mubr.f32.mxu0 %v6683_v0  ;;  %669 = vmatprep.mubr.f32.mxu1 %v6683_v0 }
  0xc6   : > { %780 = vmatprep.subr.mxu1 %v679_v28 }
  0xc7   : > { %781 = vmatpush1.msra.mxu1 %v678_v29 }
  0xc8   : > { %574 = vmatmul.mubr.f32.gmra.mxu0 %v358_v30  ;;  %670 = vmatmul.mubr.f32.gmra.mxu1 %v374_v31 }
  0xc9   : > { %782 = vmatprep.subr.mxu1 %v677_v32 }
  0xca   : > { %783 = vmatpush1.msra.mxu1 %v676_v33 }
  0xcb   : > { %784 = vmatprep.subr.mxu1 %v739_v34 }
  0xcc   : > { %785 = vmatpush2.msra.mxu1 %v738_v35 }
  0xcd   : > { %786 = vmatprep.subr.mxu1 %v737_v36 }
  0xce   : > { %787 = vmatpush2.msra.mxu1 %v736_v37 }
  0xcf   : > { %788 = vmatprep.subr.mxu1 %v735_v38 }
  0xd0   : > { %789 = vmatpush2.msra.mxu1 %v734_v39 }
  0xd1   : > { %790 = vmatprep.subr.mxu1 %v733_v40 }
  0xd2   : > { %791 = vmatpush2.msra.mxu1 %v732_v41 }
  0xd3   : > { %792 = vmatprep.subr.mxu1 %v731_v42 }
  0xd4   : > { %793 = vmatpush2.msra.mxu1 %v730_v43 }
  0xd5   : > { %794 = vmatprep.subr.mxu1 %v729_v44 }
  0xd6   : > { %795 = vmatpush2.msra.mxu1 %v728_v45 }
  0xd7   : > { %796 = vmatprep.subr.mxu1 %v727_v46 }
  0xd8   : > { %797 = vmatpush2.msra.mxu1 %v726_v47 }
  0xd9   : > { %798 = vmatprep.subr.mxu1 %v725_v48 }
  0xda   : > { %799 = vmatpush2.msra.mxu1 %v724_v49 }
  0xdb   : > { %800 = vmatprep.subr.mxu1 %v723_v50 }
  0xdc   : > { %801 = vmatpush2.msra.mxu1 %v722_v51 }
  0xdd   : > { %802 = vmatprep.subr.mxu1 %v721_v52 }
  0xde   : > { %803 = vmatpush2.msra.mxu1 %v720_v53 }
  0xdf   : > { %804 = vmatprep.subr.mxu1 %v719_v54 }
  0xe0   : > { %805 = vmatpush2.msra.mxu1 %v718_v55 }
  0xe1   : > { %806 = vmatprep.subr.mxu1 %v717_v56 }
  0xe2   : > { %807 = vmatpush2.msra.mxu1 %v716_v57 }
  0xe3   : > { %808 = vmatprep.subr.mxu1 %v715_v58 }
  0xe4   : > { %809 = vmatpush2.msra.mxu1 %v714_v59 }
  0xe5   : > { %810 = vmatprep.subr.mxu1 %v713_v60 }
  0xe6   : > { %811 = vmatpush2.msra.mxu1 %v712_v61 }
  0xe7   : > { %812 = vmatprep.subr.mxu1 %v711_v62 }
  0xe8   : > { %813 = vmatpush2.msra.mxu1 %v710_v63 }
  0xe9   : > { %814 = vmatprep.subr.mxu1 %v709_v1 }
  0xea   : > { %815 = vmatpush2.msra.mxu1 %v708_v2 }
 0x14c   : > { %v485_v10 = vpop.f32.mrf.mxu0  ;;  %v4083_v11 = vpop.f32.mrf.mxu1 }
 0x14d   : > { %v4091_v17 = vadd.f32 %v485_v10, %v4081_v9 }
 0x14e   : > { %v487_v12 = vpop.f32.mrf.mxu0  ;;  %v4085_v13 = vpop.f32.mrf.mxu1 }
 0x14f   : > { %v4088_v16 = vadd.f32 %v487_v12, %v4077_v8 }
 0x150   : > { %v491_v18 = vpop.f32.mrf.mxu0  ;;  %v4093_v19 = vpop.f32.mrf.mxu1 }
 0x151   : > { %6778 = vst [vmem:[#allocation15_spill] sm:$0xff] %v4088_v16  ;;  %816 = vmatprep.mubr.f32.mxu1 %v4088_v16  ;;  %v4103_v23 = vadd.f32 %v491_v18, %v4081_v9 }
 0x152   : > { %v493_v21 = vpop.f32.mrf.mxu0  ;;  %817 = vmatmul.mubr.f32.vlgmr.msra.gmra.mxu1 %v4091_v17  ;;  %v4105_v25 = vpop.f32.mrf.mxu1 }
 0x153   : > { %v4100_v22 = vadd.f32 %v493_v21, %v4077_v8  ;;  %6780 = vst [vmem:[#allocation17_spill] sm:$0xff] %v4103_v23 }
 0x154   : > { %v497_v24 = vpop.f32.mrf.mxu0  ;;  %v4116_v30 = vpop.f32.mrf.mxu1 }
 0x155   : > { %6779 = vst [vmem:[#allocation16_spill] sm:$0xff] %v4100_v22  ;;  %822 = vmatprep.mubr.f32.mxu1 %v4100_v22  ;;  %v4114_v28 = vadd.f32 %v497_v24, %v4081_v9 }
 0x156   : > { %v499_v26 = vpop.f32.mrf.mxu0  ;;  %823 = vmatmul.mubr.f32.gmra.mxu1 %v4103_v23  ;;  %v4126_v35 = vpop.f32.mrf.mxu1 }
 0x157   : > { %v4111_v27 = vadd.f32 %v499_v26, %v4077_v8  ;;  %6782 = vst [vmem:[#allocation19_spill] sm:$0xff] %v4114_v28 }
 0x158   : > { %v503_v29 = vpop.f32.mrf.mxu0  ;;  %v4136_v40 = vpop.f32.mrf.mxu1 }
 0x159   : > { %6781 = vst [vmem:[#allocation18_spill] sm:$0xff] %v4111_v27  ;;  %828 = vmatprep.mubr.f32.mxu1 %v4111_v27  ;;  %v4124_v33 = vadd.f32 %v503_v29, %v4081_v9 }
 0x15a   : > { %v505_v31 = vpop.f32.mrf.mxu0  ;;  %829 = vmatmul.mubr.f32.gmra.mxu1 %v4114_v28  ;;  %v4146_v45 = vpop.f32.mrf.mxu1 }
 0x15b   : > { %v4121_v32 = vadd.f32 %v505_v31, %v4077_v8  ;;  %6784 = vst [vmem:[#allocation21_spill] sm:$0xff] %v4124_v33 }
 0x15c   : > { %v509_v34 = vpop.f32.mrf.mxu0  ;;  %v4156_v50 = vpop.f32.mrf.mxu1 }
 0x15d   : > { %6783 = vst [vmem:[#allocation20_spill] sm:$0xff] %v4121_v32  ;;  %834 = vmatprep.mubr.f32.mxu1 %v4121_v32  ;;  %v4134_v38 = vadd.f32 %v509_v34, %v4081_v9 }
 0x15e   : > { %v511_v36 = vpop.f32.mrf.mxu0  ;;  %835 = vmatmul.mubr.f32.gmra.mxu1 %v4124_v33  ;;  %v4166_v55 = vpop.f32.mrf.mxu1 }
 0x15f   : > { %v4131_v37 = vadd.f32 %v511_v36, %v4077_v8  ;;  %6786 = vst [vmem:[#allocation23_spill] sm:$0xff] %v4134_v38 }
 0x160   : > { %v515_v39 = vpop.f32.mrf.mxu0  ;;  %v4176_v60 = vpop.f32.mrf.mxu1 }
 0x161   : > { %6785 = vst [vmem:[#allocation22_spill] sm:$0xff] %v4131_v37  ;;  %840 = vmatprep.mubr.f32.mxu1 %v4131_v37  ;;  %v4144_v43 = vadd.f32 %v515_v39, %v4081_v9 }
 0x162   : > { %v517_v41 = vpop.f32.mrf.mxu0  ;;  %841 = vmatmul.mubr.f32.gmra.mxu1 %v4134_v38  ;;  %v4186_v2 = vpop.f32.mrf.mxu1 }
 0x163   : > { %v4141_v42 = vadd.f32 %v517_v41, %v4077_v8  ;;  %6788 = vst [vmem:[#allocation25_spill] sm:$0xff] %v4144_v43 }
 0x164   : > { %v521_v44 = vpop.f32.mrf.mxu0  ;;  %v4196_v14 = vpop.f32.mrf.mxu1 }
 0x165   : > { %6787 = vst [vmem:[#allocation24_spill] sm:$0xff] %v4141_v42  ;;  %846 = vmatprep.mubr.f32.mxu1 %v4141_v42  ;;  %v4154_v48 = vadd.f32 %v521_v44, %v4081_v9 }
 0x166   : > { %v523_v46 = vpop.f32.mrf.mxu0  ;;  %847 = vmatmul.mubr.f32.gmra.mxu1 %v4144_v43  ;;  %v4206_v24 = vpop.f32.mrf.mxu1 }
 0x167   : > { %v4151_v47 = vadd.f32 %v523_v46, %v4077_v8  ;;  %6790 = vst [vmem:[#allocation27_spill] sm:$0xff] %v4154_v48  ;;  %v4314_v6 = vadd.f32 %v4206_v24, %v4077_v8  ;;  %v4330_v24 = vadd.f32 %v4196_v14, %v4081_v9 }
 0x168   : > { %v527_v49 = vpop.f32.mrf.mxu0  ;;  %v4216_v36 = vpop.f32.mrf.mxu1 }
 0x169   : > { %6789 = vst [vmem:[#allocation26_spill] sm:$0xff] %v4151_v47  ;;  %852 = vmatprep.mubr.f32.mxu1 %v4151_v47  ;;  %v4164_v53 = vadd.f32 %v527_v49, %v4081_v9  ;;  %6820 = vst [vmem:[#allocation57_spill] sm:$0xff] %v4314_v6 }
 0x16a   : > { %v529_v51 = vpop.f32.mrf.mxu0  ;;  %853 = vmatmul.mubr.f32.gmra.mxu1 %v4154_v48  ;;  %v4226_v49 = vpop.f32.mrf.mxu1  ;;  %6823 = vst [vmem:[#allocation60_spill] sm:$0xff] %v4330_v24 }
 0x16b   : > { %v4161_v52 = vadd.f32 %v529_v51, %v4077_v8  ;;  %6792 = vst [vmem:[#allocation29_spill] sm:$0xff] %v4164_v53 }
 0x16c   : > { %v533_v54 = vpop.f32.mrf.mxu0 }
 0x16d   : > { %6791 = vst [vmem:[#allocation28_spill] sm:$0xff] %v4161_v52  ;;  %858 = vmatprep.mubr.f32.mxu1 %v4161_v52  ;;  %v4174_v58 = vadd.f32 %v533_v54, %v4081_v9 }
 0x16e   : > { %v535_v56 = vpop.f32.mrf.mxu0  ;;  %859 = vmatmul.mubr.f32.gmra.mxu1 %v4164_v53 }
 0x16f   : > { %v4171_v57 = vadd.f32 %v535_v56, %v4077_v8  ;;  %6794 = vst [vmem:[#allocation31_spill] sm:$0xff] %v4174_v58 }
 0x170   : > { %v539_v59 = vpop.f32.mrf.mxu0 }
 0x171   : > { %6793 = vst [vmem:[#allocation30_spill] sm:$0xff] %v4171_v57  ;;  %864 = vmatprep.mubr.f32.mxu1 %v4171_v57  ;;  %v4184_v63 = vadd.f32 %v539_v59, %v4081_v9 }
 0x172   : > { %v541_v61 = vpop.f32.mrf.mxu0  ;;  %865 = vmatmul.mubr.f32.gmra.mxu1 %v4174_v58 }
 0x173   : > { %v4181_v62 = vadd.f32 %v541_v61, %v4077_v8  ;;  %6796 = vst [vmem:[#allocation33_spill] sm:$0xff] %v4184_v63  ;;  %v4236_v61 = vpop.f32.mrf.mxu1 }
 0x174   : > { %v545_v1 = vpop.f32.mrf.mxu0 }
 0x175   : > { %6795 = vst [vmem:[#allocation32_spill] sm:$0xff] %v4181_v62  ;;  %870 = vmatprep.mubr.f32.mxu1 %v4181_v62  ;;  %v4194_v10 = vadd.f32 %v545_v1, %v4081_v9 }
 0x176   : > { %v547_v3 = vpop.f32.mrf.mxu0  ;;  %871 = vmatmul.mubr.f32.gmra.mxu1 %v4184_v63  ;;  %v6736_v63 = vmov 1.0  }
 0x177   : > { %v4191_v7 = vadd.f32 %v547_v3, %v4077_v8  ;;  %6798 = vst [vmem:[#allocation35_spill] sm:$0xff] %v4194_v10 }
 0x178   : > { %v551_v12 = vpop.f32.mrf.mxu0 }
 0x179   : > { %6797 = vst [vmem:[#allocation34_spill] sm:$0xff] %v4191_v7  ;;  %876 = vmatprep.mubr.f32.mxu1 %v4191_v7  ;;  %v4204_v20 = vadd.f32 %v551_v12, %v4081_v9  ;;  %v4245_v12 = vadd.f32 %v4085_v13, %v4077_v8 }
 0x17a   : > { %v553_v15 = vpop.f32.mrf.mxu0  ;;  %877 = vmatmul.mubr.f32.gmra.mxu1 %v4194_v10 }
 0x17b   : > { %v4201_v18 = vadd.f32 %v553_v15, %v4077_v8  ;;  %6800 = vst [vmem:[#allocation37_spill] sm:$0xff] %v4204_v20  ;;  %6808 = vst [vmem:[#allocation45_spill] sm:$0xff] %v4245_v12 }
 0x17c   : > { %v557_v21 = vpop.f32.mrf.mxu0 }
 0x17d   : > { %6799 = vst [vmem:[#allocation36_spill] sm:$0xff] %v4201_v18  ;;  %882 = vmatprep.mubr.f32.mxu1 %v4201_v18  ;;  %v4214_v31 = vadd.f32 %v557_v21, %v4081_v9  ;;  %v4250_v21 = vpop.f32.mrf.mxu1 }
 0x17e   : > { %v559_v26 = vpop.f32.mrf.mxu0  ;;  %883 = vmatmul.mubr.f32.gmra.mxu1 %v4204_v20 }
 0x17f   : > { %v4211_v29 = vadd.f32 %v559_v26, %v4077_v8  ;;  %6802 = vst [vmem:[#allocation39_spill] sm:$0xff] %v4214_v31  ;;  %v4257_v26 = vadd.f32 %v4105_v25, %v4077_v8  ;;  %v4263_v13 = vpop.f32.mrf.mxu1  ;;  %v4273_v25 = vadd.f32 %v4093_v19, %v4081_v9 }
 0x180   : > { %v563_v34 = vpop.f32.mrf.mxu0 }
 0x181   : > { %6801 = vst [vmem:[#allocation38_spill] sm:$0xff] %v4211_v29  ;;  %888 = vmatprep.mubr.f32.mxu1 %v4211_v29  ;;  %v4224_v44 = vadd.f32 %v563_v34, %v4081_v9  ;;  %6810 = vst [vmem:[#allocation47_spill] sm:$0xff] %v4257_v26  ;;  %v4261_v34 = vadd.f32 %v4083_v11, %v4081_v9  ;;  %v2812_v11 = vld [vmem:[#allocation8 + $0x58] sm:$0xff] }
 0x182   : > { %v565_v39 = vpop.f32.mrf.mxu0  ;;  %889 = vmatmul.mubr.f32.gmra.mxu1 %v4214_v31  ;;  %6813 = vst [vmem:[#allocation50_spill] sm:$0xff] %v4273_v25 }
 0x183   : > { %v4221_v41 = vadd.f32 %v565_v39, %v4077_v8  ;;  %6804 = vst [vmem:[#allocation41_spill] sm:$0xff] %v4224_v44  ;;  %6811 = vst [vmem:[#allocation48_spill] sm:$0xff] %v4261_v34  ;;  %v2813_v39 = vld [vmem:[#allocation8 + $0x60] sm:$0xff] }
 0x184   : > { %v569_v46 = vpop.f32.mrf.mxu0  ;;  %2847 = vmatpush1.msra.mxu0 %v2813_v39  ;;  %v2810_v39 = vld [vmem:[#allocation8 + $0x48] sm:$0xff] }
 0x185   : > { %6803 = vst [vmem:[#allocation40_spill] sm:$0xff] %v4221_v41  ;;  %894 = vmatprep.mubr.f32.mxu1 %v4221_v41  ;;  %v4234_v56 = vadd.f32 %v569_v46, %v4081_v9  ;;  %v4269_v46 = vadd.f32 %v4126_v35, %v4077_v8  ;;  %2848 = vmatprep.subr.mxu0 %v6683_v0 }
 0x186   : > { %v571_v51 = vpop.f32.mrf.mxu0  ;;  %895 = vmatmul.mubr.f32.gmra.mxu1 %v4224_v44  ;;  %2849 = vmatpush1.msra.mxu0 %v2812_v11  ;;  %v4285_v35 = vadd.f32 %v4116_v30, %v4081_v9  ;;  %v4296_v11 = vadd.f32 %v4136_v40, %v4081_v9  ;;  %v2808_v40 = vld [vmem:[#allocation8 + $0x38] sm:$0xff] }
 0x187   : > { %v4231_v54 = vadd.f32 %v571_v51, %v4077_v8  ;;  %6806 = vst [vmem:[#allocation43_spill] sm:$0xff] %v4234_v56  ;;  %6812 = vst [vmem:[#allocation49_spill] sm:$0xff] %v4269_v46  ;;  %v637_v51 = vpop.f32.mrf.mxu1  ;;  %2850 = vmatprep.subr.mxu0 %v6683_v0 }
 0x188   : > { %v575_v59 = vpop.f32.mrf.mxu0  ;;  %6815 = vst [vmem:[#allocation52_spill] sm:$0xff] %v4285_v35  ;;  %6817 = vst [vmem:[#allocation54_spill] sm:$0xff] %v4296_v11  ;;  %v4346_v14 = vadd.f32 %v637_v51, %v4077_v8 }
 0x189   : > { %6805 = vst [vmem:[#allocation42_spill] sm:$0xff] %v4231_v54  ;;  %900 = vmatprep.mubr.f32.mxu1 %v4231_v54  ;;  %v4248_v15 = vadd.f32 %v575_v59, %v4081_v9  ;;  %v4280_v59 = vadd.f32 %v4146_v45, %v4077_v8  ;;  %v641_v19 = vpop.f32.mrf.mxu1  ;;  %v4292_v45 = vadd.f32 %v4166_v55, %v4077_v8 }
 0x18a   : > { %v577_v1 = vpop.f32.mrf.mxu0  ;;  %901 = vmatmul.mubr.f32.gmra.mxu1 %v4234_v56  ;;  %v4307_v55 = vadd.f32 %v4156_v50, %v4081_v9  ;;  %6826 = vst [vmem:[#allocation63_spill] sm:$0xff] %v4346_v14  ;;  %v4367_v51 = vadd.f32 %v641_v19, %v4081_v9 }
 0x18b   : > { %v4241_v3 = vadd.f32 %v577_v1, %v4077_v8  ;;  %6809 = vst [vmem:[#allocation46_spill] sm:$0xff] %v4248_v15  ;;  %6814 = vst [vmem:[#allocation51_spill] sm:$0xff] %v4280_v59  ;;  %v2811_v1 = vld [vmem:[#allocation8 + $0x50] sm:$0xff]  ;;  %v643_v30 = vpop.f32.mrf.mxu1 }
 0x18c   : > { %2851 = vmatpush1.msra.mxu0 %v2811_v1  ;;  %6816 = vst [vmem:[#allocation53_spill] sm:$0xff] %v4292_v45  ;;  %v4303_v1 = vadd.f32 %v4186_v2, %v4077_v8  ;;  %6819 = vst [vmem:[#allocation56_spill] sm:$0xff] %v4307_v55  ;;  %v4318_v2 = vadd.f32 %v4176_v60, %v4081_v9 }
 0x18d   : > { %6807 = vst [vmem:[#allocation44_spill] sm:$0xff] %v4241_v3  ;;  %906 = vmatprep.mubr.f32.mxu1 %v4241_v3  ;;  %2852 = vmatprep.subr.mxu0 %v6683_v0  ;;  %6831 = vst [vmem:[#allocation68_spill] sm:$0xff] %v4367_v51 }
 0x18e   : > { %907 = vmatmul.mubr.f32.gmra.mxu1 %v4248_v15  ;;  %2853 = vmatpush1.msra.mxu0 %v2810_v39  ;;  %6818 = vst [vmem:[#allocation55_spill] sm:$0xff] %v4303_v1  ;;  %v647_v39 = vpop.f32.mrf.mxu1  ;;  %6821 = vst [vmem:[#allocation58_spill] sm:$0xff] %v4318_v2 }
 0x18f   : > { %912 = vmatprep.mubr.f32.mxu1 %v4245_v12  ;;  %2854 = vmatprep.subr.mxu0 %v6683_v0 }
 0x190   : > { %2855 = vmatpush1.msra.mxu0 %v2809_v5  ;;  %v649_v50 = vpop.f32.mrf.mxu1  ;;  %v2807_v5 = vld [vmem:[#allocation8 + $0x30] sm:$0xff] }
 0x191   : > { %2856 = vmatprep.subr.mxu0 %v6683_v0 }
 0x192   : > { %913 = vmatmul.mubr.f32.gmra.mxu1 %v4261_v34  ;;  %2857 = vmatpush1.msra.mxu0 %v2808_v40  ;;  %v653_v60 = vpop.f32.mrf.mxu1  ;;  %v2806_v40 = vld [vmem:[#allocation8 + $0x28] sm:$0xff] }
 0x193   : > { %918 = vmatprep.mubr.f32.mxu1 %v4257_v26  ;;  %2858 = vmatprep.subr.mxu0 %v6683_v0 }
 0x194   : > { %2859 = vmatpush1.msra.mxu0 %v2807_v5  ;;  %v4337_v5 = vadd.f32 %v4250_v21, %v4077_v8  ;;  %v4359_v21 = vadd.f32 %v4263_v13, %v4081_v9  ;;  %v4375_v13 = vadd.f32 %v647_v39, %v4081_v9 }
 0x195   : > { %2860 = vmatprep.subr.mxu0 %v6683_v0 }
 0x196   : > { %919 = vmatmul.mubr.f32.gmra.mxu1 %v4273_v25  ;;  %2861 = vmatpush1.msra.mxu0 %v2806_v40  ;;  %6824 = vst [vmem:[#allocation61_spill] sm:$0xff] %v4337_v5  ;;  %v4350_v40 = vadd.f32 %v4236_v61, %v4081_v9  ;;  %6829 = vst [vmem:[#allocation66_spill] sm:$0xff] %v4359_v21  ;;  %v4364_v61 = vadd.f32 %v649_v50, %v4077_v8  ;;  %v6834_v50 = vmov 0.0  }
 0x197   : > { %924 = vmatprep.mubr.f32.mxu1 %v4269_v46  ;;  %2862 = vmatprep.subr.mxu0 %v6683_v0  ;;  %6833 = vst [vmem:[#allocation70_spill] sm:$0xff] %v4375_v13 }
 0x198   : > { %6827 = vst [vmem:[#allocation64_spill] sm:$0xff] %v4350_v40  ;;  %6830 = vst [vmem:[#allocation67_spill] sm:$0xff] %v4364_v61 }
 0x19a   : > { %925 = vmatmul.mubr.f32.gmra.mxu1 %v4285_v35 }
 0x19b   : > { %930 = vmatprep.mubr.f32.mxu1 %v4280_v59 }
 0x19e   : > { %931 = vmatmul.mubr.f32.gmra.mxu1 %v4296_v11 }
 0x19f   : > { %936 = vmatprep.mubr.f32.mxu1 %v4292_v45 }
 0x1a2   : > { %937 = vmatmul.mubr.f32.gmra.mxu1 %v4307_v55  ;;  %v4325_v55 = vadd.f32 %v4226_v49, %v4077_v8  ;;  %v4341_v49 = vadd.f32 %v4216_v36, %v4081_v9  ;;  %v4355_v36 = vadd.f32 %v643_v30, %v4077_v8 }
 0x1a3   : > { %942 = vmatprep.mubr.f32.mxu1 %v4303_v1  ;;  %v2822_v1 = vld [vmem:[#allocation8 + $0xa8] sm:$0xff] }
 0x1a4   : > { %6822 = vst [vmem:[#allocation59_spill] sm:$0xff] %v4325_v55  ;;  %6825 = vst [vmem:[#allocation62_spill] sm:$0xff] %v4341_v49 }
 0x1a5   : > { %6828 = vst [vmem:[#allocation65_spill] sm:$0xff] %v4355_v36 }
 0x1a6   : > { %943 = vmatmul.mubr.f32.gmra.mxu1 %v4318_v2 }
 0x1a7   : > { %948 = vmatprep.mubr.f32.mxu1 %v4314_v6  ;;  %v655_v6 = vpop.f32.mrf.mxu1 }
 0x1a8   : > { %v4372_v30 = vadd.f32 %v655_v6, %v4077_v8 }
 0x1a9   : > { %v659_v0 = vpop.f32.mrf.mxu1 }
 0x1aa   : > { %949 = vmatmul.mubr.f32.gmra.mxu1 %v4330_v24  ;;  %6832 = vst [vmem:[#allocation69_spill] sm:$0xff] %v4372_v30 }
 0x1ab   : > { %954 = vmatprep.mubr.f32.mxu1 %v4325_v55 }
 0x1ae   : > { %955 = vmatmul.mubr.f32.gmra.mxu1 %v4341_v49  ;;  %v661_v49 = vpop.f32.mrf.mxu1 }
 0x1af   : > { %960 = vmatprep.mubr.f32.mxu1 %v4337_v5  ;;  %v4381_v19 = vadd.f32 %v661_v49, %v4077_v8 }
 0x1b1   : > { %6835 = vst [vmem:[#allocation71_spill] sm:$0xff] %v4381_v19 }
 0x1b2   : > { %961 = vmatmul.mubr.f32.gmra.mxu1 %v4350_v40  ;;  %v665_v40 = vpop.f32.mrf.mxu1 }
 0x1b3   : > { %966 = vmatprep.mubr.f32.mxu1 %v4346_v14  ;;  %v2805_v14 = vld [vmem:[#allocation8 + $0x20] sm:$0xff]  ;;  %v4401_v49 = vadd.f32 %v665_v40, %v4081_v9  ;;  %v2832_v40 = vld [vmem:[#allocation8 + $0xf8] sm:$0xff] }
 0x1b4   : > { %2863 = vmatpush1.msra.mxu0 %v2805_v14  ;;  %v4392_v14 = vadd.f32 %v659_v0, %v4081_v9 }
 0x1b5   : > { %2864 = vmatprep.subr.mxu0 %v6834_v50  ;;  %6840 = vst [vmem:[#allocation76_spill] sm:$0xff] %v4401_v49 }
 0x1b6   : > { %967 = vmatmul.mubr.f32.gmra.mxu1 %v4359_v21  ;;  %v667_v21 = vpop.f32.mrf.mxu1  ;;  %6838 = vst [vmem:[#allocation74_spill] sm:$0xff] %v4392_v14 }
 0x1b7   : > { %972 = vmatprep.mubr.f32.mxu1 %v4355_v36  ;;  %v4389_v39 = vadd.f32 %v667_v21, %v4077_v8  ;;  %v2803_v21 = vld [vmem:[#allocation8 + $0x10] sm:$0xff] }
 0x1b8   : > { %v671_v6 = vpop.f32.mrf.mxu1 }
 0x1b9   : > { %6837 = vst [vmem:[#allocation73_spill] sm:$0xff] %v4389_v39  ;;  %v4406_v0 = vadd.f32 %v671_v6, %v4081_v9  ;;  %v2829_v6 = vld [vmem:[#allocation8 + $0xe0] sm:$0xff] }
 0x1ba   : > { %973 = vmatmul.mubr.f32.gmra.mxu1 %v4367_v51  ;;  %v4384_v51 = vadd.f32 %v653_v60, %v4081_v9  ;;  %v2831_v9 = vld [vmem:[#allocation8 + $0xf0] sm:$0xff] }
 0x1bb   : > { %978 = vmatprep.mubr.f32.mxu1 %v4364_v61  ;;  %v2804_v61 = vld [vmem:[#allocation8 + $0x18] sm:$0xff]  ;;  %6841 = vst [vmem:[#allocation77_spill] sm:$0xff] %v4406_v0 }
 0x1bc   : > { %6836 = vst [vmem:[#allocation72_spill] sm:$0xff] %v4384_v51  ;;  %2865 = vmatpush1.msra.mxu0 %v2804_v61  ;;  %v2801_v61 = vld [vmem:[#allocation8] sm:$0xff] }
 0x1bd   : > { %2866 = vmatprep.subr.mxu0 %v6834_v50 }
 0x1be   : > { %979 = vmatmul.mubr.f32.gmra.mxu1 %v4375_v13  ;;  %v673_v13 = vpop.f32.mrf.mxu1  ;;  %2867 = vmatpush1.msra.mxu0 %v2803_v21  ;;  %v2828_v21 = vld [vmem:[#allocation8 + $0xd8] sm:$0xff] }
 0x1bf   : > { %984 = vmatprep.mubr.f32.mxu1 %v4372_v30  ;;  %v4397_v60 = vadd.f32 %v673_v13, %v4077_v8  ;;  %2868 = vmatprep.subr.mxu0 %v6834_v50  ;;  %v2802_v8 = vld [vmem:[#allocation8 + $0x8] sm:$0xff] }
 0x1c0   : > { %2869 = vmatpush1.msra.mxu0 %v2802_v8  ;;  %v2830_v13 = vld [vmem:[#allocation8 + $0xe8] sm:$0xff]  ;;  %v2827_v8 = vld [vmem:[#allocation8 + $0xd0] sm:$0xff] }
 0x1c1   : > { %6839 = vst [vmem:[#allocation75_spill] sm:$0xff] %v4397_v60  ;;  %2870 = vmatprep.subr.mxu0 %v6834_v50 }
 0x1c2   : > { %985 = vmatmul.mubr.f32.gmra.mxu1 %v4384_v51  ;;  %2871 = vmatpush1.msra.mxu0 %v2801_v61  ;;  %v2826_v61 = vld [vmem:[#allocation8 + $0xc8] sm:$0xff] }
 0x1c3   : > { %990 = vmatprep.mubr.f32.mxu1 %v4381_v19  ;;  %2872 = vmatprep.subr.mxu0 %v6834_v50 }
 0x1c4   : > { %2873 = vmatpush2.msra.mxu0 %v2832_v40  ;;  %v740_v40 = vld [vmem:[%s6669_s4] sm:$0x3] }
 0x1c5   : > { %2874 = vmatprep.subr.mxu0 %v6834_v50 }
 0x1c6   : > { %991 = vmatmul.mubr.f32.gmra.mxu1 %v4392_v14  ;;  %2875 = vmatpush2.msra.mxu0 %v2831_v9  ;;  %v2825_v9 = vld [vmem:[#allocation8 + $0xc0] sm:$0xff] }
 0x1c7   : > { %996 = vmatprep.mubr.f32.mxu1 %v4389_v39  ;;  %2876 = vmatprep.subr.mxu0 %v6834_v50 }
 0x1c8   : > { %2877 = vmatpush2.msra.mxu0 %v2830_v13  ;;  %v6842_v13 = vsub.s32 0, %v4068_v4 }
 0x1c9   : > { %2878 = vmatprep.subr.mxu0 %v6834_v50 }
 0x1ca   : > { %997 = vmatmul.mubr.f32.gmra.mxu1 %v4401_v49  ;;  %2879 = vmatpush2.msra.mxu0 %v2829_v6  ;;  %v4424_v6 = vrot.slane %v740_v40, %v6842_v13  ;;  %v2824_v49 = vld [vmem:[#allocation8 + $0xb8] sm:$0xff] }
 0x1cb   : > { %1002 = vmatprep.mubr.f32.mxu1 %v4397_v60  ;;  %2880 = vmatprep.subr.mxu0 %v6834_v50 }
 0x1cc   : > { %2881 = vmatpush2.msra.mxu0 %v2828_v21  ;;  %v6843_v21 = vsub.s32 1, %v4068_v4 }
 0x1cd   : > { %2882 = vmatprep.subr.mxu0 %v6834_v50 }
 0x1ce   : > { %1003 = vmatmul.mubr.f32.gmra.mxu1 %v4406_v0  ;;  %2883 = vmatpush2.msra.mxu0 %v2827_v8  ;;  %v4429_v8 = vrot.slane %v740_v40, %v6843_v21 }
 0x1cf   : > { %2884 = vmatprep.subr.mxu0 %v6834_v50 }
 0x1d0   : > { %2885 = vmatpush2.msra.mxu0 %v2826_v61 }
 0x1d1   : > { %2886 = vmatprep.subr.mxu0 %v6834_v50 }
 0x1d2   : > { %2887 = vmatpush2.msra.mxu0 %v2825_v9 }
 0x1d3   : > { %2888 = vmatprep.subr.mxu0 %v6834_v50 }
 0x1d4   : > { %2889 = vmatpush2.msra.mxu0 %v2824_v49  ;;  %v2823_v49 = vld [vmem:[#allocation8 + $0xb0] sm:$0xff] }
 0x1d5   : > { %2890 = vmatprep.subr.mxu0 %v6834_v50 }
 0x1d6   : > { %2891 = vmatpush2.msra.mxu0 %v2823_v49 }
 0x1d7   : > { %2892 = vmatprep.subr.mxu0 %v6834_v50 }
 0x1d8   : > { %2893 = vmatpush2.msra.mxu0 %v2822_v1 }
 0x1d9   : > { %2894 = vmatprep.subr.mxu0 %v6834_v50 }
 0x212   : > { %v818_v0 = vpop.f32.mrf.mxu1 }
 0x213   : > { %v4432_v61 = vadd.f32 %v818_v0, %v4424_v6 }
 0x214   : > { %v820_v60 = vpop.f32.mrf.mxu1 }
 0x215   : > { %v4435_v14 = vmul.f32 0.70710677, %v4432_v61  ;;  %v4438_v9 = vadd.f32 %v820_v60, %v4429_v8 }
 0x216   : > { %v824_v13 = vpop.f32.mrf.mxu1 }
 0x217   : > { %v4442_v4 = vand.u32 2147483647, %v4435_v14  ;;  %v4445_v40 = vmul.f32 0.70710677, %v4438_v9  ;;  %v4448_v0 = vadd.f32 %v824_v13, %v4424_v6  ;;  %vm1137_vm0 = vcmp.lt.f32.partialorder %v4435_v14, 0.0 }
 0x218   : > { %v826_v21 = vpop.f32.mrf.mxu1 }
 0x219   : > { %v1329_v39 = vmul.f32 0.3275911, %v4442_v4  ;;  %v4452_v51 = vand.u32 2147483647, %v4445_v40  ;;  %v4455_v60 = vmul.f32 0.70710677, %v4448_v0  ;;  %v4458_v19 = vadd.f32 %v826_v21, %v4429_v8 }
 0x21a   : > { %v830_v30 = vpop.f32.mrf.mxu1  ;;  %vm1138_vm1 = vcmp.lt.f32.partialorder %v4445_v40, 0.0  ;;  %v4568_v43 = vmul.f32 0.5, %v4448_v0 }
 0x21b   : > { %v1393_v36 = vadd.f32 1.0, %v1329_v39  ;;  %v1330_v13 = vmul.f32 0.3275911, %v4452_v51  ;;  %v4463_v5 = vand.u32 2147483647, %v4455_v60  ;;  %v4473_v11 = vadd.f32 %v830_v30, %v4424_v6  ;;  %v2821_v30 = vld [vmem:[#allocation8 + $0xa0] sm:$0xff] }
 0x21c   : > { %v4466_v24 = vmul.f32 0.70710677, %v4458_v19  ;;  %v832_v55 = vpop.f32.mrf.mxu1  ;;  %2895 = vmatpush2.msra.mxu0 %v2821_v30  ;;  %vm1139_vm2 = vcmp.lt.f32.partialorder %v4455_v60, 0.0 }
 0x21d   : > { %3353 = vrcp.f32 %v1393_v36  ;;  %v1394_v49 = vadd.f32 1.0, %v1330_v13  ;;  %v1331_v2 = vmul.f32 0.3275911, %v4463_v5  ;;  %v4477_v35 = vadd.f32 %v832_v55, %v4429_v8  ;;  %2896 = vmatprep.subr.mxu0 %v6834_v50 }
 0x21e   : > { %v4470_v21 = vand.u32 2147483647, %v4466_v24  ;;  %v836_v39 = vpop.f32.mrf.mxu1  ;;  %v4481_v13 = vmul.f32 0.70710677, %v4473_v11  ;;  %vm1140_vm3 = vcmp.lt.f32.partialorder %v4466_v24, 0.0  ;;  %v4578_v60 = vsel %vm1139_vm2, -1.0, %v6736_v63 }
 0x21f   : > { %3355 = vrcp.f32 %v1394_v49  ;;  %v1395_v36 = vadd.f32 1.0, %v1331_v2  ;;  %v4484_v46 = vmul.f32 0.70710677, %v4477_v35  ;;  %v4490_v1 = vadd.f32 %v836_v39, %v4424_v6 }
 0x220   : > { %v1332_v45 = vmul.f32 0.3275911, %v4470_v21  ;;  %v4487_v25 = vand.u32 2147483647, %v4481_v13  ;;  %v838_v55 = vpop.f32.mrf.mxu1  ;;  %v2164_v57 = vsub.f32 0.0, %v4470_v21  ;;  %vm1141_vm4 = vcmp.lt.f32.partialorder %v4481_v13, 0.0 }
 0x221   : > { %3357 = vrcp.f32 %v1395_v36  ;;  %v4495_v49 = vand.u32 2147483647, %v4484_v46  ;;  %v4501_v26 = vadd.f32 %v838_v55, %v4429_v8  ;;  %v2820_v55 = vld [vmem:[#allocation8 + $0x98] sm:$0xff]  ;;  %vm1142_vm5 = vcmp.lt.f32.partialorder %v4484_v46, 0.0 }
 0x222   : > { %v1396_v59 = vadd.f32 1.0, %v1332_v45  ;;  %v1333_v2 = vmul.f32 0.3275911, %v4487_v25  ;;  %v4498_v45 = vmul.f32 0.70710677, %v4490_v1  ;;  %2897 = vmatpush2.msra.mxu0 %v2820_v55  ;;  %v2819_v55 = vld [vmem:[#allocation8 + $0x90] sm:$0xff] }
 0x223   : > { %v1334_v39 = vmul.f32 0.3275911, %v4495_v49  ;;  %v4508_v36 = vmul.f32 0.70710677, %v4501_v26  ;;  %2898 = vmatprep.subr.mxu0 %v6834_v50  ;;  %v2166_v46 = vsub.f32 0.0, %v4495_v49 }
 0x224   : > { %3359 = vrcp.f32 %v1396_v59  ;;  %v1397_v34 = vadd.f32 1.0, %v1333_v2  ;;  %v4505_v30 = vand.u32 2147483647, %v4498_v45  ;;  %v842_v2 = vpop.f32.mrf.mxu1  ;;  %2899 = vmatpush2.msra.mxu0 %v2819_v55  ;;  %v4543_v55 = vmul.f32 0.5, %v4432_v61 }
 0x225   : > { %v1398_v59 = vadd.f32 1.0, %v1334_v39  ;;  %v4514_v3 = vand.u32 2147483647, %v4508_v36  ;;  %v4522_v31 = vadd.f32 %v842_v2, %v4424_v6  ;;  %2900 = vmatprep.subr.mxu0 %v6834_v50  ;;  %v4560_v61 = vsel %vm1138_vm1, -1.0, %v6736_v63 }
 0x226   : > { %v1335_v15 = vmul.f32 0.3275911, %v4505_v30  ;;  %3361 = vrcp.f32 %v1397_v34  ;;  %v2161_v34 = vsub.f32 0.0, %v4442_v4  ;;  %vm1143_vm6 = vcmp.lt.f32.partialorder %v4498_v45, 0.0 }
 0x227   : > { %v1336_v44 = vmul.f32 0.3275911, %v4514_v3  ;;  %3363 = vrcp.f32 %v1398_v59  ;;  %v4529_v18 = vmul.f32 0.70710677, %v4522_v31  ;;  %v2230_v38 = vmul.f32 %v2166_v46, %v4495_v49 }
 0x228   : > { %v1399_v56 = vadd.f32 1.0, %v1335_v15  ;;  %v2225_v59 = vmul.f32 %v2161_v34, %v4442_v4  ;;  %v4548_v4 = vsel %vm1137_vm0, -1.0, %v6736_v63  ;;  %v4551_v34 = vmul.f32 0.5, %v4438_v9 }
 0x229   : > { %v1400_v29 = vadd.f32 1.0, %v1336_v44  ;;  %v4540_v2 = vand.u32 2147483647, %v4529_v18  ;;  %v2299_v28 = vmul.f32 1.442695, %v2230_v38  ;;  %vm1144_vm7 = vcmp.lt.f32.partialorder %v4508_v36, 0.0 }
 0x22a   : > { %v4510_v12 = vpop.eup %3353  ;;  %3365 = vrcp.f32 %v1399_v56  ;;  %v2289_v62 = vmul.f32 1.442695, %v2225_v59  ;;  %v2818_v59 = vld [vmem:[#allocation8 + $0x88] sm:$0xff]  ;;  %vm1145_vm8 = vcmp.lt.f32.partialorder %v4529_v18, 0.0 }
 0x22b   : > { %v1585_v54 = vmul.f32 1.0614054, %v4510_v12  ;;  %3367 = vrcp.f32 %v1400_v29  ;;  %v1337_v29 = vmul.f32 0.3275911, %v4540_v2  ;;  %2901 = vmatpush2.msra.mxu0 %v2818_v59  ;;  %v4604_v59 = vmul.f32 0.5, %v4477_v35 }
 0x22c   : > { %v4519_v41 = vpop.eup %3355  ;;  %3369 = vpow2.f32 %v2289_v62  ;;  %2902 = vmatprep.subr.mxu0 %v6834_v50 }
 0x22d   : > { %v1649_v39 = vadd.f32 -1.4531521, %v1585_v54  ;;  %v1586_v15 = vmul.f32 1.0614054, %v4519_v41  ;;  %v2162_v54 = vsub.f32 0.0, %v4452_v51  ;;  %v1401_v52 = vadd.f32 1.0, %v1337_v29 }
 0x22e   : > { %v4526_v20 = vpop.eup %3357  ;;  %v2165_v29 = vsub.f32 0.0, %v4487_v25 }
 0x22f   : > { %v1713_v44 = vmul.f32 %v4510_v12, %v1649_v39  ;;  %v1650_v56 = vadd.f32 -1.4531521, %v1586_v15  ;;  %v1587_v7 = vmul.f32 1.0614054, %v4526_v20  ;;  %v2163_v39 = vsub.f32 0.0, %v4463_v5 }
 0x230   : > { %v2226_v58 = vmul.f32 %v2162_v54, %v4452_v51  ;;  %v4572_v51 = vmul.f32 0.5, %v4458_v19  ;;  %3371 = vrcp.f32 %v1401_v52 }
 0x231   : > { %v4531_v10 = vpop.eup %3359  ;;  %v1777_v53 = vadd.f32 1.4214138, %v1713_v44  ;;  %v1714_v9 = vmul.f32 %v4519_v41, %v1650_v56  ;;  %v1651_v48 = vadd.f32 -1.4531521, %v1587_v7  ;;  %v2227_v40 = vmul.f32 %v2163_v39, %v4463_v5  ;;  %v844_v44 = vpop.f32.mrf.mxu1 }
 0x232   : > { %v1588_v14 = vmul.f32 1.0614054, %v4531_v10  ;;  %v2291_v7 = vmul.f32 1.442695, %v2226_v58  ;;  %v4588_v39 = vsel %vm1140_vm3, -1.0, %v6736_v63 }
 0x233   : > { %v4555_v15 = vpop.eup %3361  ;;  %v1841_v5 = vmul.f32 %v4510_v12, %v1777_v53  ;;  %v1778_v19 = vadd.f32 1.4214138, %v1714_v9  ;;  %v1715_v58 = vmul.f32 %v4526_v20, %v1651_v48  ;;  %v2293_v50 = vmul.f32 1.442695, %v2227_v40  ;;  %v2817_v40 = vld [vmem:[#allocation8 + $0x80] sm:$0xff]  ;;  %v848_v46 = vpop.f32.mrf.mxu1 }
 0x234   : > { %v1652_v47 = vadd.f32 -1.4531521, %v1588_v14  ;;  %v1589_v54 = vmul.f32 1.0614054, %v4555_v15  ;;  %v4575_v56 = vpop.eup %3363  ;;  %v2228_v14 = vmul.f32 %v2164_v57, %v4470_v21  ;;  %v4594_v57 = vadd.f32 %v844_v44, %v4429_v8  ;;  %2903 = vmatpush2.msra.mxu0 %v2817_v40 }
 0x235   : > { %v4597_v21 = vmul.f32 0.5, %v4473_v11  ;;  %3373 = vpow2.f32 %v2291_v7  ;;  %v1590_v52 = vmul.f32 1.0614054, %v4575_v56  ;;  %v1905_v9 = vadd.f32 -0.28449672, %v1841_v5  ;;  %v850_v16 = vpop.f32.mrf.mxu1 }
 0x236   : > { %v1716_v62 = vmul.f32 %v4531_v10, %v1652_v47  ;;  %v1653_v53 = vadd.f32 -1.4531521, %v1589_v54  ;;  %v2295_v24 = vmul.f32 1.442695, %v2228_v14  ;;  %v1842_v47 = vmul.f32 %v4519_v41, %v1778_v19 }
 0x237   : > { %v4582_v0 = vpop.eup %3365  ;;  %v1779_v44 = vadd.f32 1.4214138, %v1715_v58  ;;  %v2229_v54 = vmul.f32 %v2165_v29, %v4487_v25  ;;  %v4611_v7 = vmul.f32 0.70710677, %v4594_v57  ;;  %3375 = vpow2.f32 %v2293_v50 }
 0x238   : > { %v1591_v48 = vmul.f32 1.0614054, %v4582_v0  ;;  %v4607_v11 = vpop.eup %3367  ;;  %v1780_v63 = vadd.f32 1.4214138, %v1716_v62  ;;  %v6844_v14 = vmov 1.0   ;;  %v1717_v35 = vmul.f32 %v4555_v15, %v1653_v53 }
 0x239   : > { %v4616_v5 = vsel %vm1141_vm4, -1.0, %v6844_v14  ;;  %3377 = vpow2.f32 %v2295_v24  ;;  %v4621_v19 = vsel %vm1142_vm5, -1.0, %v6844_v14  ;;  %v1654_v58 = vadd.f32 -1.4531521, %v1590_v52 }
 0x23a   : > { %v1655_v25 = vadd.f32 -1.4531521, %v1591_v48  ;;  %v1969_v62 = vmul.f32 %v4510_v12, %v1905_v9  ;;  %v1906_v29 = vadd.f32 -0.28449672, %v1842_v47  ;;  %v1592_v50 = vmul.f32 1.0614054, %v4607_v11 }
 0x23b   : > { %v1843_v13 = vmul.f32 %v4526_v20, %v1779_v44  ;;  %v1844_v40 = vmul.f32 %v4531_v10, %v1780_v63  ;;  %v2297_v53 = vmul.f32 1.442695, %v2229_v54  ;;  %v4629_v42 = vand.u32 2147483647, %v4611_v7  ;;  %v3370_v54 = vpop.eup %3369 }
 0x23c   : > { %v1781_v24 = vadd.f32 1.4214138, %v1717_v35  ;;  %v4633_v52 = vmul.f32 0.5, %v4490_v1  ;;  %v2167_v48 = vsub.f32 0.0, %v4505_v30  ;;  %v1718_v9 = vmul.f32 %v4575_v56, %v1654_v58 }
 0x23d   : > { %v1719_v47 = vmul.f32 %v4582_v0, %v1655_v25  ;;  %v4639_v44 = vmul.f32 0.5, %v4501_v26  ;;  %v2168_v63 = vsub.f32 0.0, %v4514_v3  ;;  %v2033_v37 = vadd.f32 0.2548296, %v1969_v62  ;;  %v4648_v33 = vpop.eup %3371 }
 0x23e   : > { %v1970_v35 = vmul.f32 %v4519_v41, %v1906_v29  ;;  %v4646_v1 = vsel %vm1143_vm6, -1.0, %v6844_v14  ;;  %v1656_v49 = vadd.f32 -1.4531521, %v1592_v50  ;;  %v1907_v58 = vadd.f32 -0.28449672, %v1843_v13 }
 0x23f   : > { %6845 = vst [vmem:[#allocation78_spill] sm:$0xff] %v4639_v44  ;;  %v1908_v25 = vadd.f32 -0.28449672, %v1844_v40  ;;  %3379 = vpow2.f32 %v2297_v53  ;;  %v1338_v26 = vmul.f32 0.3275911, %v4629_v42  ;;  %v1845_v32 = vmul.f32 %v4555_v15, %v1781_v24 }
 0x240   : > { %v2231_v62 = vmul.f32 %v2167_v48, %v4505_v30  ;;  %v1782_v29 = vadd.f32 1.4214138, %v1718_v9  ;;  %v1783_v45 = vadd.f32 1.4214138, %v1719_v47  ;;  %v2232_v27 = vmul.f32 %v2168_v63, %v4514_v3 }
 0x241   : > { %v1402_v50 = vadd.f32 1.0, %v1338_v26  ;;  %v2097_v22 = vmul.f32 %v4510_v12, %v2033_v37  ;;  %v2034_v13 = vadd.f32 0.2548296, %v1970_v35  ;;  %v1720_v40 = vmul.f32 %v4607_v11, %v1656_v49 }
 0x242   : > { %v3374_v23 = vpop.eup %3373  ;;  %v1593_v53 = vmul.f32 1.0614054, %v4648_v33  ;;  %v1971_v38 = vmul.f32 %v4526_v20, %v1907_v58  ;;  %v1972_v30 = vmul.f32 %v4531_v10, %v1908_v25  ;;  %v4661_v24 = vadd.f32 %v848_v46, %v4424_v6  ;;  %v854_v25 = vpop.f32.mrf.mxu1 }
 0x243   : > { %3381 = vrcp.f32 %v1402_v50  ;;  %v1909_v48 = vadd.f32 -0.28449672, %v1845_v32  ;;  %v2301_v3 = vmul.f32 1.442695, %v2231_v62  ;;  %v4666_v37 = vsel %vm1144_vm7, -1.0, %v6844_v14 }
 0x244   : > { %3383 = vpow2.f32 %v2299_v28  ;;  %v3376_v12 = vpop.eup %3375  ;;  %v1846_v9 = vmul.f32 %v4575_v56, %v1782_v29  ;;  %v1847_v47 = vmul.f32 %v4582_v0, %v1783_v45  ;;  %v4671_v63 = vmul.f32 0.5, %v4522_v31 }
 0x245   : > { %v4674_v35 = vmul.f32 0.70710677, %v4661_v24  ;;  %v2417_v32 = vmul.f32 %v3370_v54, %v2097_v22  ;;  %v1784_v28 = vadd.f32 1.4214138, %v1720_v40  ;;  %v2303_v46 = vmul.f32 1.442695, %v2232_v27 }
 0x246   : > { %6846 = vst [vmem:[#allocation79_spill] sm:$0xff] %v4671_v63  ;;  %v3378_v49 = vpop.eup %3377  ;;  %v1657_v58 = vadd.f32 -1.4531521, %v1593_v53  ;;  %v2098_v36 = vmul.f32 %v4519_v41, %v2034_v13  ;;  %v2035_v26 = vadd.f32 0.2548296, %v1971_v38  ;;  %v1973_v45 = vmul.f32 %v4555_v15, %v1909_v48  ;;  %v856_v38 = vpop.f32.mrf.mxu1 }
 0x247   : > { %v2036_v62 = vadd.f32 0.2548296, %v1972_v30  ;;  %v4678_v29 = vand.u32 2147483647, %v4674_v35  ;;  %v2169_v31 = vsub.f32 0.0, %v4540_v2  ;;  %v4684_v50 = vadd.f32 %v850_v16, %v4429_v8 }
 0x248   : > { %v1910_v22 = vadd.f32 -0.28449672, %v1846_v9  ;;  %v1911_v27 = vadd.f32 -0.28449672, %v1847_v47  ;;  %3385 = vpow2.f32 %v2301_v3  ;;  %v2481_v41 = vsub.f32 1.0, %v2417_v32 }
 0x249   : > { %v1339_v54 = vmul.f32 0.3275911, %v4678_v29  ;;  %v1848_v13 = vmul.f32 %v4607_v11, %v1784_v28  ;;  %v1721_v40 = vmul.f32 %v4648_v33, %v1657_v58  ;;  %v4690_v53 = vmul.f32 0.70710677, %v4684_v50 }
 0x24a   : > { %v2418_v30 = vmul.f32 %v3374_v23, %v2098_v36  ;;  %v2099_v48 = vmul.f32 %v4526_v20, %v2035_v26  ;;  %v2100_v16 = vmul.f32 %v4531_v10, %v2036_v62  ;;  %v4695_v9 = vadd.f32 %v854_v25, %v4424_v6  ;;  %v860_v26 = vpop.f32.mrf.mxu1 }
 0x24b   : > { %v2037_v47 = vadd.f32 0.2548296, %v1973_v45  ;;  %v4698_v32 = vmul.f32 0.5, %v4594_v57  ;;  %v1403_v28 = vadd.f32 1.0, %v1339_v54  ;;  %v4701_v58 = vand.u32 2147483647, %v4690_v53 }
 0x24c   : > { %v3380_v3 = vpop.eup %3379  ;;  %v1974_v63 = vmul.f32 %v4575_v56, %v1910_v22  ;;  %v1975_v23 = vmul.f32 %v4582_v0, %v1911_v27  ;;  %3387 = vpow2.f32 %v2303_v46  ;;  %v4708_v10 = vsel %vm1145_vm8, -1.0, %v6844_v14 }
 0x24d   : > { %6847 = vst [vmem:[#allocation80_spill] sm:$0xff] %v4698_v32  ;;  %6848 = vst [vmem:[#allocation81_spill] sm:$0xff] %v4708_v10  ;;  %v2545_v20 = vmul.f32 %v2481_v41, %v4548_v4  ;;  %v1912_v25 = vadd.f32 -0.28449672, %v1848_v13  ;;  %v1785_v36 = vadd.f32 1.4214138, %v1721_v40  ;;  %v2233_v57 = vmul.f32 %v2169_v31, %v4540_v2 }
 0x24e   : > { %v2482_v62 = vsub.f32 1.0, %v2418_v30  ;;  %v2419_v45 = vmul.f32 %v3376_v12, %v2099_v48  ;;  %v2420_v54 = vmul.f32 %v3378_v49, %v2100_v16  ;;  %v4713_v22 = vmul.f32 0.70710677, %v4695_v9 }
 0x24f   : > { %v2101_v46 = vmul.f32 %v4555_v15, %v2037_v47  ;;  %3389 = vrcp.f32 %v1403_v28  ;;  %v1340_v18 = vmul.f32 0.3275911, %v4701_v58  ;;  %v4720_v4 = vadd.f32 %v856_v38, %v4429_v8 }
 0x250   : > { %v4715_v27 = vpop.eup %3381  ;;  %v2038_v13 = vadd.f32 0.2548296, %v1974_v63  ;;  %v2039_v2 = vadd.f32 0.2548296, %v1975_v23  ;;  %v4723_v31 = vand.u32 2147483647, %v4713_v22  ;;  %v4726_v12 = vadd.f32 %v860_v26, %v4424_v6  ;;  %v862_v63 = vpop.f32.mrf.mxu1 }
 0x251   : > { %v3384_v41 = vpop.eup %3383  ;;  %v2609_v49 = vadd.f32 1.0, %v2545_v20  ;;  %v1976_v40 = vmul.f32 %v4607_v11, %v1912_v25  ;;  %v1849_v15 = vmul.f32 %v4648_v33, %v1785_v36  ;;  %v2305_v30 = vmul.f32 1.442695, %v2233_v57 }
 0x252   : > { %v2483_v48 = vsub.f32 1.0, %v2419_v45  ;;  %v2484_v16 = vsub.f32 1.0, %v2420_v54  ;;  %v1594_v38 = vmul.f32 1.0614054, %v4715_v27  ;;  %v1341_v47 = vmul.f32 0.3275911, %v4723_v31 }
 0x253   : > { %v2546_v28 = vmul.f32 %v2482_v62, %v4560_v61  ;;  %v2421_v23 = vmul.f32 %v3380_v3, %v2101_v46  ;;  %v1404_v32 = vadd.f32 1.0, %v1340_v18  ;;  %v4734_v26 = vmul.f32 0.70710677, %v4720_v4 }
 0x254   : > { %v2102_v20 = vmul.f32 %v4575_v56, %v2038_v13  ;;  %v2103_v25 = vmul.f32 %v4582_v0, %v2039_v2  ;;  %v1405_v36 = vadd.f32 1.0, %v1341_v47  ;;  %v4739_v57 = vmul.f32 0.70710677, %v4726_v12  ;;  %v866_v13 = vpop.f32.mrf.mxu1 }
 0x255   : > { %v3386_v45 = vpop.eup %3385  ;;  %v2040_v54 = vadd.f32 0.2548296, %v1976_v40  ;;  %v1913_v10 = vadd.f32 -0.28449672, %v1849_v15  ;;  %v4742_v44 = vand.u32 2147483647, %v4734_v26  ;;  %v4745_v61 = vadd.f32 %v862_v63, %v4429_v8 }
 0x256   : > { %v2547_v3 = vmul.f32 %v2483_v48, %v4578_v60  ;;  %v2548_v62 = vmul.f32 %v2484_v16, %v4588_v39  ;;  %3391 = vpow2.f32 %v2305_v30  ;;  %v1658_v56 = vadd.f32 -1.4531521, %v1594_v38 }
 0x257   : > { %v2485_v0 = vsub.f32 1.0, %v2421_v23  ;;  %v2170_v46 = vsub.f32 0.0, %v4629_v42  ;;  %3393 = vrcp.f32 %v1404_v32  ;;  %v1342_v18 = vmul.f32 0.3275911, %v4742_v44 }
 0x258   : > { %v2422_v2 = vmul.f32 %v3384_v41, %v2102_v20  ;;  %v2423_v40 = vmul.f32 %v3386_v45, %v2103_v25  ;;  %3395 = vrcp.f32 %v1405_v36  ;;  %v4752_v15 = vand.u32 2147483647, %v4739_v57 }
 0x259   : > { %v3388_v47 = vpop.eup %3387  ;;  %v2104_v60 = vmul.f32 %v4607_v11, %v2040_v54  ;;  %v1977_v39 = vmul.f32 %v4648_v33, %v1913_v10  ;;  %v1406_v30 = vadd.f32 1.0, %v1342_v18  ;;  %v4757_v48 = vmul.f32 0.70710677, %v4745_v61 }
 0x25a   : > { %vm1146_vm9 = vcmp.lt.f32.partialorder %v4611_v7, 0.0  ;;  %v1722_v32 = vmul.f32 %v4715_v27, %v1658_v56  ;;  %v1343_v41 = vmul.f32 0.3275911, %v4752_v15  ;;  %v4763_v16 = vadd.f32 %v866_v13, %v4424_v6 }
 0x25b   : > { %v2673_v38 = vmul.f32 %v2609_v49, %v4543_v55  ;;  %v2610_v63 = vadd.f32 1.0, %v2546_v28  ;;  %v2611_v23 = vadd.f32 1.0, %v2547_v3  ;;  %v2612_v11 = vadd.f32 1.0, %v2548_v62 }
 0x25c   : > { %v4766_v20 = vpop.eup %3389  ;;  %v2549_v10 = vmul.f32 %v2485_v0, %v4616_v5  ;;  %v2486_v25 = vsub.f32 1.0, %v2422_v2  ;;  %v2487_v36 = vsub.f32 1.0, %v2423_v40  ;;  %v2234_v45 = vmul.f32 %v2170_v46, %v4629_v42  ;;  %v868_v40 = vpop.f32.mrf.mxu1 }
 0x25d   : > { %v2424_v54 = vmul.f32 %v3388_v47, %v2104_v60  ;;  %v2041_v56 = vadd.f32 0.2548296, %v1977_v39  ;;  %3397 = vrcp.f32 %v1406_v30  ;;  %v4771_v18 = vand.u32 2147483647, %v4757_v48 }
 0x25e   : > { %v4776_v55 = vsel %vm1146_vm9, -1.0, %v6844_v14  ;;  %v1786_v49 = vadd.f32 1.4214138, %v1722_v32  ;;  %v1407_v28 = vadd.f32 1.0, %v1343_v41  ;;  %v4779_v3 = vmul.f32 0.70710677, %v4763_v16 }
 0x25f   : > { %v4782_v5 = vadd.f32 %v2673_v38, %v4091_v17  ;;  %v4785_v42 = vmul.f32 %v2610_v63, %v4551_v34  ;;  %v1595_v62 = vmul.f32 1.0614054, %v4766_v20  ;;  %v1344_v0 = vmul.f32 0.3275911, %v4771_v18 }
 0x260   : > { %v4790_v46 = vmul.f32 %v2611_v23, %v4568_v43  ;;  %v2613_v7 = vadd.f32 1.0, %v2549_v10  ;;  %v2550_v13 = vmul.f32 %v2486_v25, %v4621_v19  ;;  %v2307_v2 = vmul.f32 1.442695, %v2234_v45 }
 0x261   : > { %6849 = vst [vmem:[#allocation82_spill] sm:$0xff] %v4782_v5  ;;  %v4794_v47 = vmul.f32 %v2612_v11, %v4572_v51  ;;  %v2551_v17 = vmul.f32 %v2487_v36, %v4646_v1  ;;  %v2488_v60 = vsub.f32 1.0, %v2424_v54  ;;  %v2171_v34 = vsub.f32 0.0, %v4678_v29 }
 0x262   : > { %6850 = vst [vmem:[#allocation83_spill] sm:$0xff] %v4790_v46  ;;  %v2105_v39 = vmul.f32 %v4648_v33, %v2041_v56  ;;  %v1850_v30 = vmul.f32 %v4715_v27, %v1786_v49  ;;  %3399 = vrcp.f32 %v1407_v28  ;;  %v4801_v43 = vand.u32 2147483647, %v4779_v3 }
 0x263   : > { %6851 = vst [vmem:[#allocation84_spill] sm:$0xff] %v4794_v47  ;;  %v3392_v32 = vpop.eup %3391  ;;  %v4804_v19 = vmul.f32 0.5, %v4661_v24  ;;  %v1659_v41 = vadd.f32 -1.4531521, %v1595_v62  ;;  %v1408_v51 = vadd.f32 1.0, %v1344_v0  ;;  %v4807_v38 = vadd.f32 %v868_v40, %v4429_v8 }
 0x264   : > { %v4809_v1 = vpop.eup %3393  ;;  %v4812_v63 = vmul.f32 %v2613_v7, %v4597_v21  ;;  %v2614_v33 = vadd.f32 1.0, %v2550_v13  ;;  %3401 = vpow2.f32 %v2307_v2  ;;  %vm1147_vm10 = vcmp.lt.f32.partialorder %v4674_v35, 0.0 }
 0x265   : > { %v4815_v23 = vpop.eup %3395  ;;  %v2615_v11 = vadd.f32 1.0, %v2551_v17  ;;  %v2552_v24 = vmul.f32 %v2488_v60, %v4666_v37  ;;  %v2172_v10 = vsub.f32 0.0, %v4701_v58  ;;  %v1345_v25 = vmul.f32 0.3275911, %v4801_v43  ;;  %v872_v60 = vpop.f32.mrf.mxu1 }
 0x266   : > { %6852 = vst [vmem:[#allocation85_spill] sm:$0xff] %v4812_v63  ;;  %v2425_v36 = vmul.f32 %v3392_v32, %v2105_v39  ;;  %v1914_v45 = vadd.f32 -0.28449672, %v1850_v30  ;;  %v2235_v54 = vmul.f32 %v2171_v34, %v4678_v29  ;;  %vm1148_vm11 = vcmp.lt.f32.partialorder %v4690_v53, 0.0 }
 0x267   : > { %v1723_v21 = vmul.f32 %v4766_v20, %v1659_v41  ;;  %3403 = vrcp.f32 %v1408_v51  ;;  %v1409_v56 = vadd.f32 1.0, %v1345_v25  ;;  %v4824_v35 = vmul.f32 0.70710677, %v4807_v38 }
 0x268   : > { %v4827_v49 = vmul.f32 %v2614_v33, %v4604_v59  ;;  %v4830_v37 = vsel %vm1147_vm10, -1.0, %v6844_v14  ;;  %v1596_v28 = vmul.f32 1.0614054, %v4809_v1  ;;  %v1597_v62 = vmul.f32 1.0614054, %v4815_v23 }
 0x269   : > { %v4835_v29 = vmul.f32 %v2615_v11, %v4633_v52  ;;  %v2616_v0 = vadd.f32 1.0, %v2552_v24  ;;  %v4838_v7 = vmul.f32 0.5, %v4684_v50  ;;  %v2236_v13 = vmul.f32 %v2172_v10, %v4701_v58  ;;  %v6855_v11 = vld [vmem:[#allocation78_spill] sm:$0xff]  ;;  %v6857_v10 = vld [vmem:[#allocation81_spill] sm:$0xff] }
 0x26a   : > { %6853 = vst [vmem:[#allocation86_spill] sm:$0xff] %v4827_v49  ;;  %v4841_v2 = vpop.eup %3397  ;;  %v2489_v59 = vsub.f32 1.0, %v2425_v36  ;;  %v2309_v40 = vmul.f32 1.442695, %v2235_v54  ;;  %v4846_v17 = vsel %vm1148_vm11, -1.0, %v6844_v14  ;;  %3405 = vrcp.f32 %v1409_v56 }
 0x26b   : > { %6854 = vst [vmem:[#allocation87_spill] sm:$0xff] %v4835_v29  ;;  %v1978_v52 = vmul.f32 %v4715_v27, %v1914_v45  ;;  %v1787_v34 = vadd.f32 1.4214138, %v1723_v21  ;;  %v2173_v39 = vsub.f32 0.0, %v4723_v31  ;;  %v4851_v50 = vand.u32 2147483647, %v4824_v35 }
 0x26c   : > { %v1660_v58 = vadd.f32 -1.4531521, %v1596_v28  ;;  %v4854_v30 = vmul.f32 0.5, %v4695_v9  ;;  %vm1149_vm12 = vcmp.lt.f32.partialorder %v4713_v22, 0.0  ;;  %v1661_v32 = vadd.f32 -1.4531521, %v1597_v62 }
 0x26d   : > { %v2311_v53 = vmul.f32 1.442695, %v2236_v13  ;;  %v1598_v41 = vmul.f32 1.0614054, %v4841_v2  ;;  %v1346_v51 = vmul.f32 0.3275911, %v4851_v50  ;;  %v4860_v33 = vadd.f32 %v872_v60, %v4424_v6 }
 0x26e   : > { %v4863_v24 = vmul.f32 %v2616_v0, %v6855_v11  ;;  %v2553_v25 = vmul.f32 %v2489_v59, %v6857_v10  ;;  %3407 = vpow2.f32 %v2309_v40  ;;  %v4867_v9 = vmul.f32 0.5, %v4720_v4  ;;  %v6858_v10 = vld [vmem:[#allocation79_spill] sm:$0xff] }
 0x26f   : > { %v4869_v36 = vpop.eup %3399  ;;  %v2042_v22 = vadd.f32 0.2548296, %v1978_v52  ;;  %v1851_v45 = vmul.f32 %v4766_v20, %v1787_v34  ;;  %v4873_v54 = vsel %vm1149_vm12, -1.0, %v6844_v14  ;;  %v2237_v21 = vmul.f32 %v2173_v39, %v4723_v31 }
 0x270   : > { %6856 = vst [vmem:[#allocation78_spill] sm:$0xff] %v4863_v24  ;;  %v1724_v56 = vmul.f32 %v4809_v1, %v1660_v58  ;;  %v1725_v28 = vmul.f32 %v4815_v23, %v1661_v32  ;;  %v4879_v62 = vmul.f32 0.5, %v4726_v12  ;;  %v1410_v0 = vadd.f32 1.0, %v1346_v51  ;;  %v874_v58 = vpop.f32.mrf.mxu1 }
 0x271   : > { %v3402_v4 = vpop.eup %3401  ;;  %3409 = vpow2.f32 %v2311_v53  ;;  %v1662_v13 = vadd.f32 -1.4531521, %v1598_v41  ;;  %v2174_v59 = vsub.f32 0.0, %v4742_v44  ;;  %v4883_v40 = vmul.f32 0.70710677, %v4860_v33 }
 0x272   : > { %v2617_v60 = vadd.f32 1.0, %v2553_v25  ;;  %vm1150_vm13 = vcmp.lt.f32.partialorder %v4734_v26, 0.0  ;;  %v1599_v31 = vmul.f32 1.0614054, %v4869_v36  ;;  %v4888_v52 = vmul.f32 0.5, %v4745_v61 }
 0x273   : > { %v2106_v12 = vmul.f32 %v4715_v27, %v2042_v22  ;;  %v1915_v34 = vadd.f32 -0.28449672, %v1851_v45  ;;  %v2313_v39 = vmul.f32 1.442695, %v2237_v21  ;;  %vm1151_vm14 = vcmp.lt.f32.partialorder %v4739_v57, 0.0 }
 0x274   : > { %v4892_v32 = vpop.eup %3403  ;;  %v1788_v53 = vadd.f32 1.4214138, %v1724_v56  ;;  %v1789_v41 = vadd.f32 1.4214138, %v1725_v28  ;;  %v2175_v51 = vsub.f32 0.0, %v4752_v15  ;;  %3411 = vrcp.f32 %v1410_v0 }
 0x275   : > { %v4896_v26 = vsel %vm1150_vm13, -1.0, %v6844_v14  ;;  %v1726_v61 = vmul.f32 %v4841_v2, %v1662_v13  ;;  %v2238_v11 = vmul.f32 %v2174_v59, %v4742_v44  ;;  %v4901_v27 = vand.u32 2147483647, %v4883_v40 }
 0x276   : > { %v4904_v25 = vmul.f32 %v2617_v60, %v6858_v10  ;;  %v1663_v22 = vadd.f32 -1.4531521, %v1599_v31  ;;  %vm1152_vm15 = vcmp.lt.f32.partialorder %v4757_v48, 0.0  ;;  %v4908_v45 = vadd.f32 %v874_v58, %v4429_v8 }
 0x277   : > { %v4910_v21 = vpop.eup %3405  ;;  %v2426_v56 = vmul.f32 %v3402_v4, %v2106_v12  ;;  %v1979_v28 = vmul.f32 %v4766_v20, %v1915_v34  ;;  %v4916_v44 = vsel %vm1151_vm14, -1.0, %v6844_v14  ;;  %v1600_v0 = vmul.f32 1.0614054, %v4892_v32 }
 0x278   : > { %6859 = vst [vmem:[#allocation81_spill] sm:$0xff] %v4904_v25  ;;  %v1852_v13 = vmul.f32 %v4809_v1, %v1788_v53  ;;  %v1853_v59 = vmul.f32 %v4815_v23, %v1789_v41  ;;  %v2239_v48 = vmul.f32 %v2175_v51, %v4752_v15  ;;  %v1347_v60 = vmul.f32 0.3275911, %v4901_v27  ;;  %v878_v15 = vpop.f32.mrf.mxu1 }
 0x279   : > { %v1790_v31 = vadd.f32 1.4214138, %v1726_v61  ;;  %v2315_v58 = vmul.f32 1.442695, %v2238_v11  ;;  %v4924_v4 = vsel %vm1152_vm15, -1.0, %v6844_v14  ;;  %v4927_v12 = vmul.f32 0.5, %v4763_v16 }
 0x27a   : > { %v1727_v57 = vmul.f32 %v4869_v36, %v1663_v22  ;;  %v2176_v34 = vsub.f32 0.0, %v4771_v18  ;;  %v1601_v53 = vmul.f32 1.0614054, %v4910_v21  ;;  %v4933_v41 = vmul.f32 0.70710677, %v4908_v45 }
 0x27b   : > { %v3408_v51 = vpop.eup %3407  ;;  %v2490_v10 = vsub.f32 1.0, %v2426_v56  ;;  %v2043_v61 = vadd.f32 0.2548296, %v1979_v28  ;;  %v1664_v11 = vadd.f32 -1.4531521, %v1600_v0  ;;  %v1411_v25 = vadd.f32 1.0, %v1347_v60 }
 0x27c   : > { %v1916_v29 = vadd.f32 -0.28449672, %v1852_v13  ;;  %v1917_v24 = vadd.f32 -0.28449672, %v1853_v59  ;;  %3413 = vpow2.f32 %v2313_v39  ;;  %v2317_v16 = vmul.f32 1.442695, %v2239_v48 }
 0x27d   : > { %v1854_v63 = vmul.f32 %v4841_v2, %v1790_v31  ;;  %vm1153_vm0 = vcmp.lt.f32.partialorder %v4779_v3, 0.0  ;;  %v2177_v22 = vsub.f32 0.0, %v4801_v43  ;;  %v4939_v49 = vadd.f32 %v878_v15, %v4424_v6 }
 0x27e   : > { %v3410_v46 = vpop.eup %3409  ;;  %v1791_v47 = vadd.f32 1.4214138, %v1727_v57  ;;  %v2240_v56 = vmul.f32 %v2176_v34, %v4771_v18  ;;  %v1665_v28 = vadd.f32 -1.4531521, %v1601_v53  ;;  %v4943_v0 = vand.u32 2147483647, %v4933_v41  ;;  %v880_v53 = vpop.f32.mrf.mxu1 }
 0x27f   : > { %v2554_v39 = vmul.f32 %v2490_v10, %v4776_v55  ;;  %v2107_v13 = vmul.f32 %v4766_v20, %v2043_v61  ;;  %v1728_v59 = vmul.f32 %v4892_v32, %v1664_v11  ;;  %3415 = vrcp.f32 %v1411_v25 }
 0x280   : > { %v1980_v3 = vmul.f32 %v4809_v1, %v1916_v29  ;;  %v1981_v48 = vmul.f32 %v4815_v23, %v1917_v24  ;;  %v4951_v60 = vsel %vm1153_vm0, -1.0, %v6844_v14  ;;  %v4954_v18 = vmul.f32 0.5, %v4807_v38 }
 0x281   : > { %v4956_v31 = vpop.eup %3411  ;;  %v1918_v57 = vadd.f32 -0.28449672, %v1854_v63  ;;  %3417 = vpow2.f32 %v2315_v58  ;;  %v1348_v55 = vmul.f32 0.3275911, %v4943_v0  ;;  %v4960_v20 = vmul.f32 0.70710677, %v4939_v49 }
 0x282   : > { %6860 = vst [vmem:[#allocation79_spill] sm:$0xff] %v4954_v18  ;;  %v1855_v25 = vmul.f32 %v4869_v36, %v1791_v47  ;;  %v2319_v29 = vmul.f32 1.442695, %v2240_v56  ;;  %v1729_v24 = vmul.f32 %v4910_v21, %v1665_v28  ;;  %v2241_v34 = vmul.f32 %v2177_v22, %v4801_v43  ;;  %v6863_v18 = vld [vmem:[#allocation80_spill] sm:$0xff] }
 0x283   : > { %v4965_v15 = vadd.f32 1.0, %v2554_v39  ;;  %v2427_v38 = vmul.f32 %v3408_v51, %v2107_v13  ;;  %v1792_v10 = vadd.f32 1.4214138, %v1728_v59  ;;  %vm1154_vm1 = vcmp.lt.f32.partialorder %v4824_v35, 0.0  ;;  %v884_v39 = vpop.f32.mrf.mxu1 }
 0x284   : > { %v2044_v63 = vadd.f32 0.2548296, %v1980_v3  ;;  %v2045_v58 = vadd.f32 0.2548296, %v1981_v48  ;;  %3419 = vpow2.f32 %v2317_v16  ;;  %v1602_v61 = vmul.f32 1.0614054, %v4956_v31 }
 0x285   : > { %v1982_v11 = vmul.f32 %v4841_v2, %v1918_v57  ;;  %v1412_v47 = vadd.f32 1.0, %v1348_v55  ;;  %v4971_v56 = vand.u32 2147483647, %v4960_v20  ;;  %v4974_v43 = vadd.f32 %v880_v53, %v4429_v8 }
 0x286   : > { %v1919_v22 = vadd.f32 -0.28449672, %v1855_v25  ;;  %3421 = vpow2.f32 %v2319_v29  ;;  %v1793_v51 = vadd.f32 1.4214138, %v1729_v24  ;;  %v2321_v28 = vmul.f32 1.442695, %v2241_v34 }
 0x287   : > { %v2491_v13 = vsub.f32 1.0, %v2427_v38  ;;  %v1856_v59 = vmul.f32 %v4892_v32, %v1792_v10  ;;  %vm1155_vm2 = vcmp.lt.f32.partialorder %v4883_v40, 0.0  ;;  %v1349_v16 = vmul.f32 0.3275911, %v4971_v56 }
 0x288   : > { %v2108_v3 = vmul.f32 %v4809_v1, %v2044_v63  ;;  %v2109_v48 = vmul.f32 %v4815_v23, %v2045_v58  ;;  %v1666_v57 = vadd.f32 -1.4531521, %v1602_v61  ;;  %v4982_v55 = vmul.f32 0.70710677, %v4974_v43 }
 0x289   : > { %v3414_v25 = vpop.eup %3413  ;;  %v2046_v29 = vadd.f32 0.2548296, %v1982_v11  ;;  %3423 = vrcp.f32 %v1412_v47  ;;  %v1413_v24 = vadd.f32 1.0, %v1349_v16  ;;  %v4985_v34 = vadd.f32 %v884_v39, %v4424_v6  ;;  %v886_v39 = vpop.f32.mrf.mxu1 }
 0x28a   : > { %v1983_v53 = vmul.f32 %v4869_v36, %v1919_v22  ;;  %v1857_v38 = vmul.f32 %v4910_v21, %v1793_v51  ;;  %v2178_v10 = vsub.f32 0.0, %v4851_v50  ;;  %v4991_v1 = vand.u32 2147483647, %v4982_v55 }
 0x28b   : > { %v2555_v23 = vmul.f32 %v2491_v13, %v4830_v37  ;;  %v1920_v63 = vadd.f32 -0.28449672, %v1856_v59  ;;  %3425 = vpow2.f32 %v2321_v28  ;;  %v4997_v58 = vsel %vm1154_vm1, -1.0, %v6844_v14 }
 0x28c   : > { %v4999_v61 = vpop.eup %3415  ;;  %v2428_v11 = vmul.f32 %v3410_v46, %v2108_v3  ;;  %v1730_v47 = vmul.f32 %v4956_v31, %v1666_v57  ;;  %v5003_v22 = vmul.f32 0.5, %v4860_v33  ;;  %v5008_v51 = vsel %vm1155_vm2, -1.0, %v6844_v14 }
 0x28d   : > { %6862 = vst [vmem:[#allocation89_spill] sm:$0xff] %v5008_v51  ;;  %v2429_v37 = vmul.f32 %v3414_v25, %v2109_v48  ;;  %v2110_v28 = vmul.f32 %v4841_v2, %v2046_v29  ;;  %3427 = vrcp.f32 %v1413_v24  ;;  %v5012_v35 = vmul.f32 0.70710677, %v4985_v34  ;;  %v890_v51 = vpop.f32.mrf.mxu1 }
 0x28e   : > { %6861 = vst [vmem:[#allocation88_spill] sm:$0xff] %v5003_v22  ;;  %v3418_v13 = vpop.eup %3417  ;;  %v2047_v46 = vadd.f32 0.2548296, %v1983_v53  ;;  %v1921_v59 = vadd.f32 -0.28449672, %v1857_v38  ;;  %v2242_v16 = vmul.f32 %v2178_v10, %v4851_v50  ;;  %v2619_v3 = vadd.f32 1.0, %v2555_v23 }
 0x28f   : > { %v1350_v33 = vmul.f32 0.3275911, %v4991_v1  ;;  %v1984_v40 = vmul.f32 %v4892_v32, %v1920_v63  ;;  %v1603_v57 = vmul.f32 1.0614054, %v4999_v61  ;;  %v5019_v48 = vand.u32 2147483647, %v5012_v35 }
 0x290   : > { %v2492_v2 = vsub.f32 1.0, %v2428_v11  ;;  %v1794_v25 = vadd.f32 1.4214138, %v1730_v47  ;;  %v2179_v29 = vsub.f32 0.0, %v4901_v27  ;;  %v5023_v24 = vadd.f32 %v886_v39, %v4429_v8 }
 0x291   : > { %v3420_v53 = vpop.eup %3419  ;;  %v2493_v38 = vsub.f32 1.0, %v2429_v37  ;;  %v2430_v50 = vmul.f32 %v3418_v13, %v2110_v28  ;;  %v5026_v10 = vmul.f32 0.5, %v4908_v45  ;;  %v5029_v23 = vmul.f32 0.5, %v4939_v49 }
 0x292   : > { %v2111_v63 = vmul.f32 %v4869_v36, %v2047_v46  ;;  %v1985_v22 = vmul.f32 %v4910_v21, %v1921_v59  ;;  %v2323_v11 = vmul.f32 1.442695, %v2242_v16  ;;  %v1414_v47 = vadd.f32 1.0, %v1350_v33 }
 0x293   : > { %v3422_v5 = vpop.eup %3421  ;;  %v5035_v39 = vmul.f32 %v4965_v15, %v6863_v18  ;;  %v2048_v37 = vadd.f32 0.2548296, %v1984_v40  ;;  %v1667_v28 = vadd.f32 -1.4531521, %v1603_v57  ;;  %v1351_v45 = vmul.f32 0.3275911, %v5019_v48 }
 0x294   : > { %v2556_v13 = vmul.f32 %v2492_v2, %v4846_v17  ;;  %v1858_v49 = vmul.f32 %v4956_v31, %v1794_v25  ;;  %v2243_v36 = vmul.f32 %v2179_v29, %v4901_v27  ;;  %v5042_v46 = vmul.f32 0.70710677, %v5023_v24  ;;  %v892_v2 = vpop.f32.mrf.mxu1 }
 0x295   : > { %6864 = vst [vmem:[#allocation80_spill] sm:$0xff] %v5035_v39  ;;  %v5045_v59 = vmul.f32 %v2619_v3, %v4804_v19  ;;  %v2557_v16 = vmul.f32 %v2493_v38, %v4873_v54  ;;  %v2494_v18 = vsub.f32 1.0, %v2430_v50  ;;  %v5049_v15 = vadd.f32 %v890_v51, %v4424_v6 }
 0x296   : > { %v5051_v33 = vpop.eup %3423  ;;  %v2431_v40 = vmul.f32 %v3420_v53, %v2111_v63  ;;  %v2049_v17 = vadd.f32 0.2548296, %v1985_v22  ;;  %3429 = vrcp.f32 %v1414_v47  ;;  %v5054_v57 = vand.u32 2147483647, %v5042_v46 }
 0x297   : > { %6865 = vst [vmem:[#allocation90_spill] sm:$0xff] %v5045_v59  ;;  %v2112_v27 = vmul.f32 %v4892_v32, %v2048_v37  ;;  %3431 = vpow2.f32 %v2323_v11  ;;  %v1731_v19 = vmul.f32 %v4999_v61, %v1667_v28  ;;  %v1415_v3 = vadd.f32 1.0, %v1351_v45 }
 0x298   : > { %v3426_v54 = vpop.eup %3425  ;;  %v2620_v25 = vadd.f32 1.0, %v2556_v13  ;;  %v1922_v29 = vadd.f32 -0.28449672, %v1858_v49  ;;  %v2325_v51 = vmul.f32 1.442695, %v2243_v36  ;;  %vm1156_vm3 = vcmp.lt.f32.partialorder %v4933_v41, 0.0 }
 0x299   : > { %v2621_v38 = vadd.f32 1.0, %v2557_v16  ;;  %v2558_v22 = vmul.f32 %v2494_v18, %v4896_v26  ;;  %v1604_v53 = vmul.f32 1.0614054, %v5051_v33  ;;  %v5062_v50 = vmul.f32 0.70710677, %v5049_v15 }
 0x29a   : > { %v5064_v32 = vpop.eup %3427  ;;  %v2495_v63 = vsub.f32 1.0, %v2431_v40  ;;  %v2113_v11 = vmul.f32 %v4910_v21, %v2049_v17  ;;  %v1352_v47 = vmul.f32 0.3275911, %v5054_v57  ;;  %v5069_v37 = vadd.f32 %v892_v2, %v4429_v8 }
 0x29b   : > { %v2432_v28 = vmul.f32 %v3422_v5, %v2112_v27  ;;  %v1795_v45 = vadd.f32 1.4214138, %v1731_v19  ;;  %3433 = vrcp.f32 %v1415_v3  ;;  %v5072_v26 = vand.u32 2147483647, %v5062_v50  ;;  %v896_v19 = vpop.f32.mrf.mxu1 }
 0x29c   : > { %v5075_v13 = vmul.f32 %v2620_v25, %v4838_v7  ;;  %v1986_v49 = vmul.f32 %v4956_v31, %v1922_v29  ;;  %v5081_v21 = vsel %vm1156_vm3, -1.0, %v6844_v14  ;;  %v2180_v36 = vsub.f32 0.0, %v4943_v0 }
 0x29d   : > { %3435 = vpow2.f32 %v2325_v51  ;;  %v1668_v16 = vadd.f32 -1.4531521, %v1604_v53  ;;  %v1605_v5 = vmul.f32 1.0614054, %v5064_v32  ;;  %v1353_v18 = vmul.f32 0.3275911, %v5072_v26 }
 0x29e   : > { %6866 = vst [vmem:[#allocation91_spill] sm:$0xff] %v5075_v13  ;;  %v2559_v40 = vmul.f32 %v2495_v63, %v4916_v44  ;;  %v2433_v17 = vmul.f32 %v3426_v54, %v2113_v11  ;;  %v1416_v7 = vadd.f32 1.0, %v1352_v47  ;;  %v5088_v27 = vmul.f32 0.70710677, %v5069_v37 }
 0x29f   : > { %v5091_v41 = vmul.f32 %v2621_v38, %v4854_v30  ;;  %v2622_v3 = vadd.f32 1.0, %v2558_v22  ;;  %v2496_v2 = vsub.f32 1.0, %v2432_v28  ;;  %v1859_v25 = vmul.f32 %v4999_v61, %v1795_v45 }
 0x2a0   : > { %v2050_v29 = vadd.f32 0.2548296, %v1986_v49  ;;  %v2244_v51 = vmul.f32 %v2180_v36, %v4943_v0  ;;  %vm1157_vm4 = vcmp.lt.f32.partialorder %v4960_v20, 0.0  ;;  %v1417_v53 = vadd.f32 1.0, %v1353_v18 }
 0x2a1   : > { %6867 = vst [vmem:[#allocation92_spill] sm:$0xff] %v5091_v41  ;;  %v1732_v44 = vmul.f32 %v5051_v33, %v1668_v16  ;;  %v1669_v54 = vadd.f32 -1.4531521, %v1605_v5  ;;  %v2181_v63 = vsub.f32 0.0, %v4971_v56  ;;  %v5099_v11 = vadd.f32 %v896_v19, %v4424_v6 }
 0x2a2   : > { %v2623_v30 = vadd.f32 1.0, %v2559_v40  ;;  %v2497_v38 = vsub.f32 1.0, %v2433_v17  ;;  %3437 = vrcp.f32 %v1416_v7  ;;  %v5102_v22 = vand.u32 2147483647, %v5088_v27 }
 0x2a3   : > { %v5104_v47 = vpop.eup %3429  ;;  %v5107_v0 = vmul.f32 %v2622_v3, %v4867_v9  ;;  %v2560_v20 = vmul.f32 %v2496_v2, %v4924_v4  ;;  %v1923_v28 = vadd.f32 -0.28449672, %v1859_v25  ;;  %v5111_v45 = vsel %vm1157_vm4, -1.0, %v6844_v14 }
 0x2a4   : > { %v3432_v49 = vpop.eup %3431  ;;  %v2114_v36 = vmul.f32 %v4956_v31, %v2050_v29  ;;  %v2182_v16 = vsub.f32 0.0, %v4991_v1  ;;  %3439 = vrcp.f32 %v1417_v53  ;;  %v1354_v5 = vmul.f32 0.3275911, %v5102_v22 }
 0x2a5   : > { %6868 = vst [vmem:[#allocation93_spill] sm:$0xff] %v5107_v0  ;;  %v1796_v18 = vadd.f32 1.4214138, %v1732_v44  ;;  %v1733_v40 = vmul.f32 %v5064_v32, %v1669_v54  ;;  %v2245_v9 = vmul.f32 %v2181_v63, %v4971_v56  ;;  %v5119_v17 = vmul.f32 0.70710677, %v5099_v11  ;;  %v898_v56 = vpop.f32.mrf.mxu1 }
 0x2a6   : > { %v5122_v4 = vmul.f32 %v2623_v30, %v4879_v62  ;;  %v2561_v7 = vmul.f32 %v2497_v38, %v4951_v60  ;;  %v2327_v19 = vmul.f32 1.442695, %v2244_v51  ;;  %v1606_v31 = vmul.f32 1.0614054, %v5104_v47 }
 0x2a7   : > { %v2624_v3 = vadd.f32 1.0, %v2560_v20  ;;  %v1987_v2 = vmul.f32 %v4999_v61, %v1923_v28  ;;  %v5128_v25 = vmul.f32 0.5, %v4974_v43  ;;  %vm1158_vm5 = vcmp.lt.f32.partialorder %v4982_v55, 0.0 }
 0x2a8   : > { %6869 = vst [vmem:[#allocation94_spill] sm:$0xff] %v5122_v4  ;;  %v5131_v29 = vpop.eup %3433  ;;  %v2434_v53 = vmul.f32 %v3432_v49, %v2114_v36  ;;  %v2246_v62 = vmul.f32 %v2182_v16, %v4991_v1  ;;  %v2183_v44 = vsub.f32 0.0, %v5019_v48  ;;  %v1418_v60 = vadd.f32 1.0, %v1354_v5 }
 0x2a9   : > { %v1860_v51 = vmul.f32 %v5051_v33, %v1796_v18  ;;  %v1797_v54 = vadd.f32 1.4214138, %v1733_v40  ;;  %v2329_v63 = vmul.f32 1.442695, %v2245_v9  ;;  %v5137_v30 = vand.u32 2147483647, %v5119_v17 }
 0x2aa   : > { %v3436_v43 = vpop.eup %3435  ;;  %v2625_v38 = vadd.f32 1.0, %v2561_v7  ;;  %v1670_v20 = vadd.f32 -1.4531521, %v1606_v31  ;;  %vm1159_vm6 = vcmp.lt.f32.partialorder %v5012_v35, 0.0  ;;  %v5141_v28 = vadd.f32 %v898_v56, %v4429_v8 }
 0x2ab   : > { %v2051_v49 = vadd.f32 0.2548296, %v1987_v2  ;;  %3441 = vpow2.f32 %v2327_v19  ;;  %v1607_v1 = vmul.f32 1.0614054, %v5131_v29  ;;  %v1355_v36 = vmul.f32 0.3275911, %v5137_v30 }
 0x2ac   : > { %v2498_v16 = vsub.f32 1.0, %v2434_v53  ;;  %v2331_v5 = vmul.f32 1.442695, %v2246_v62  ;;  %v2247_v18 = vmul.f32 %v2183_v44, %v5019_v48  ;;  %3443 = vrcp.f32 %v1418_v60 }
 0x2ad   : > { %v1924_v40 = vadd.f32 -0.28449672, %v1860_v51  ;;  %v1861_v9 = vmul.f32 %v5064_v32, %v1797_v54  ;;  %v5148_v7 = vmul.f32 0.5, %v4985_v34  ;;  %v1419_v31 = vadd.f32 1.0, %v1355_v36 }
 0x2ae   : > { %v5151_v56 = vmul.f32 %v2624_v3, %v4888_v52  ;;  %v5156_v19 = vsel %vm1158_vm5, -1.0, %v6844_v14  ;;  %v1734_v2 = vmul.f32 %v5104_v47, %v1670_v20  ;;  %v5160_v48 = vmul.f32 0.70710677, %v5141_v28  ;;  %v902_v3 = vpop.f32.mrf.mxu1 }
 0x2af   : > { %v5162_v53 = vpop.eup %3437  ;;  %v2115_v62 = vmul.f32 %v4999_v61, %v2051_v49  ;;  %3445 = vpow2.f32 %v2329_v63  ;;  %v5168_v52 = vsel %vm1159_vm6, -1.0, %v6844_v14  ;;  %v1671_v34 = vadd.f32 -1.4531521, %v1607_v1 }
 0x2b0   : > { %6870 = vst [vmem:[#allocation95_spill] sm:$0xff] %v5151_v56  ;;  %v5171_v55 = vmul.f32 %v2625_v38, %v4927_v12  ;;  %v2562_v44 = vmul.f32 %v2498_v16, %v4997_v58  ;;  %3447 = vpow2.f32 %v2331_v5  ;;  %v2333_v60 = vmul.f32 1.442695, %v2247_v18 }
 0x2b1   : > { %v5174_v51 = vpop.eup %3439  ;;  %v1988_v54 = vmul.f32 %v5051_v33, %v1924_v40  ;;  %v1925_v61 = vadd.f32 -0.28449672, %v1861_v9  ;;  %v5178_v63 = vmul.f32 0.5, %v5023_v24  ;;  %3449 = vrcp.f32 %v1419_v31  ;;  %v6872_v9 = vld [vmem:[#allocation15_spill] sm:$0xff] }
 0x2b2   : > { %6871 = vst [vmem:[#allocation96_spill] sm:$0xff] %v5171_v55  ;;  %v1798_v35 = vadd.f32 1.4214138, %v1734_v2  ;;  %v1608_v20 = vmul.f32 1.0614054, %v5162_v53  ;;  %v5185_v12 = vadd.f32 %v902_v3, %v4424_v6  ;;  %v2435_v58 = vmul.f32 %v3436_v43, %v2115_v62  ;;  %v6876_v55 = vld [vmem:[#allocation82_spill] sm:$0xff] }
 0x2b3   : > { %v5182_v49 = vand.u32 2147483647, %v5160_v48  ;;  %v1735_v38 = vmul.f32 %v5131_v29, %v1671_v34  ;;  %vm1160_vm7 = vcmp.lt.f32.partialorder %v5042_v46, 0.0  ;;  %v2184_v1 = vsub.f32 0.0, %v5054_v57 }
 0x2b4   : > { %v2626_v36 = vadd.f32 1.0, %v2562_v44  ;;  %3451 = vpow2.f32 %v2333_v60  ;;  %v1609_v24 = vmul.f32 1.0614054, %v5174_v51  ;;  %v2185_v16 = vsub.f32 0.0, %v5072_v26 }
 0x2b5   : > { %v2052_v5 = vadd.f32 0.2548296, %v1988_v54  ;;  %v1989_v18 = vmul.f32 %v5064_v32, %v1925_v61  ;;  %v1356_v40 = vmul.f32 0.3275911, %v5182_v49  ;;  %v2738_v43 = vadd.f32 %v4785_v42, %v6872_v9  ;;  %v6873_v54 = vld [vmem:[#allocation79_spill] sm:$0xff]  ;;  %v904_v9 = vpop.f32.mrf.mxu1 }
 0x2b6   : > { %v1862_v31 = vmul.f32 %v5104_v47, %v1798_v35  ;;  %v5198_v46 = vsel %vm1160_vm7, -1.0, %v6844_v14  ;;  %v1672_v2 = vadd.f32 -1.4531521, %v1608_v20  ;;  %v5201_v62 = vmul.f32 0.70710677, %v5185_v12 }
 0x2b7   : > { %v2499_v34 = vsub.f32 1.0, %v2435_v58  ;;  %v1799_v3 = vadd.f32 1.4214138, %v1735_v38  ;;  %v2248_v44 = vmul.f32 %v2184_v1, %v5054_v57  ;;  %vm1161_vm8 = vcmp.lt.f32.partialorder %v5062_v50, 0.0  ;;  %2904 = vmatprep.mubr.f32.mxu0 %v2738_v43 }
 0x2b8   : > { %v3442_v60 = vpop.eup %3441  ;;  %v5206_v61 = vmul.f32 %v2626_v36, %v6873_v54  ;;  %v5209_v42 = vmul.f32 0.5, %v5049_v15  ;;  %v1673_v35 = vadd.f32 -1.4531521, %v1609_v24  ;;  %v5212_v20 = vmul.f32 0.5, %v5069_v37  ;;  %2905 = vmatmul.mubr.f32.vlgmr.msra.gmra.mxu0 %v6876_v55  ;;  %v6877_v55 = vld [vmem:[#allocation89_spill] sm:$0xff] }
 0x2b9   : > { %v5215_v58 = vpop.eup %3443  ;;  %v2116_v57 = vmul.f32 %v5051_v33, %v2052_v5  ;;  %v2053_v38 = vadd.f32 0.2548296, %v1989_v18  ;;  %v2249_v1 = vmul.f32 %v2185_v16, %v5072_v26  ;;  %v1420_v43 = vadd.f32 1.0, %v1356_v40 }
 0x2ba   : > { %6874 = vst [vmem:[#allocation15_spill] sm:$0xff] %v5206_v61  ;;  %6875 = vst [vmem:[#allocation79_spill] sm:$0xff] %v5212_v20  ;;  %v1926_v36 = vadd.f32 -0.28449672, %v1862_v31  ;;  %v1736_v54 = vmul.f32 %v5162_v53, %v1672_v2  ;;  %v5223_v15 = vsel %vm1161_vm8, -1.0, %v6844_v14  ;;  %v2563_v24 = vmul.f32 %v2499_v34, %v6877_v55 }
 0x2bb   : > { %v5226_v37 = vand.u32 2147483647, %v5201_v62  ;;  %v1863_v61 = vmul.f32 %v5131_v29, %v1799_v3  ;;  %v2335_v33 = vmul.f32 1.442695, %v2248_v44  ;;  %v5231_v5 = vadd.f32 %v904_v9, %v4429_v8  ;;  %v908_v3 = vpop.f32.mrf.mxu1 }
 0x2bc   : > { %v3446_v26 = vpop.eup %3445  ;;  %v1737_v16 = vmul.f32 %v5174_v51, %v1673_v35  ;;  %vm1162_vm9 = vcmp.lt.f32.partialorder %v5088_v27, 0.0  ;;  %v1610_v50 = vmul.f32 1.0614054, %v5215_v58  ;;  %v2436_v31 = vmul.f32 %v3442_v60, %v2116_v57 }
 0x2bd   : > { %v1357_v18 = vmul.f32 0.3275911, %v5226_v37  ;;  %v3448_v40 = vpop.eup %3447  ;;  %v2117_v2 = vmul.f32 %v5064_v32, %v2053_v38  ;;  %v2337_v34 = vmul.f32 1.442695, %v2249_v1  ;;  %3453 = vrcp.f32 %v1420_v43 }
 0x2be   : > { %v5238_v44 = vpop.eup %3449  ;;  %v1990_v9 = vmul.f32 %v5104_v47, %v1926_v36  ;;  %v1800_v55 = vadd.f32 1.4214138, %v1736_v54  ;;  %v2186_v35 = vsub.f32 0.0, %v5102_v22  ;;  %v1927_v56 = vadd.f32 -0.28449672, %v1863_v61 }
 0x2bf   : > { %v1421_v4 = vadd.f32 1.0, %v1357_v18  ;;  %3455 = vpow2.f32 %v2335_v33  ;;  %v5245_v41 = vsel %vm1162_vm9, -1.0, %v6844_v14  ;;  %v5248_v32 = vmul.f32 0.70710677, %v5231_v5 }
 0x2c0   : > { %6878 = vst [vmem:[#allocation82_spill] sm:$0xff] %v5245_v41  ;;  %v2627_v60 = vadd.f32 1.0, %v2563_v24  ;;  %v1801_v57 = vadd.f32 1.4214138, %v1737_v16  ;;  %v1674_v38 = vadd.f32 -1.4531521, %v1610_v50  ;;  %v5251_v1 = vadd.f32 %v908_v3, %v4424_v6 }
 0x2c1   : > { %v5253_v43 = vpop.eup %3451  ;;  %v2500_v36 = vsub.f32 1.0, %v2436_v31  ;;  %v2437_v54 = vmul.f32 %v3446_v26, %v2117_v2  ;;  %v1611_v61 = vmul.f32 1.0614054, %v5238_v44  ;;  %v5257_v33 = vand.u32 2147483647, %v5248_v32  ;;  %v6879_v3 = vld [vmem:[#allocation16_spill] sm:$0xff] }
 0x2c2   : > { %v2054_v27 = vadd.f32 0.2548296, %v1990_v9  ;;  %v1864_v18 = vmul.f32 %v5162_v53, %v1800_v55  ;;  %v2250_v0 = vmul.f32 %v2186_v35, %v5102_v22  ;;  %3457 = vrcp.f32 %v1421_v4  ;;  %v6880_v9 = vld [vmem:[#allocation84_spill] sm:$0xff]  ;;  %v910_v22 = vpop.f32.mrf.mxu1 }
 0x2c3   : > { %v1991_v24 = vmul.f32 %v5131_v29, %v1927_v56  ;;  %vm1163_vm10 = vcmp.lt.f32.partialorder %v5119_v17, 0.0  ;;  %v2187_v16 = vsub.f32 0.0, %v5137_v30  ;;  %v1358_v50 = vmul.f32 0.3275911, %v5257_v33 }
 0x2c4   : > { %v1865_v26 = vmul.f32 %v5174_v51, %v1801_v57  ;;  %v1738_v31 = vmul.f32 %v5215_v58, %v1674_v38  ;;  %v5268_v2 = vmul.f32 0.70710677, %v5251_v1  ;;  %v2740_v55 = vadd.f32 %v6880_v9, %v6879_v3  ;;  %v6881_v38 = vld [vmem:[#allocation88_spill] sm:$0xff] }
 0x2c5   : > { %v2564_v4 = vmul.f32 %v2500_v36, %v5081_v21  ;;  %v2501_v56 = vsub.f32 1.0, %v2437_v54  ;;  %3459 = vpow2.f32 %v2337_v34  ;;  %v1675_v35 = vadd.f32 -1.4531521, %v1611_v61  ;;  %v914_v54 = vpop.f32.mrf.mxu1 }
 0x2c6   : > { %v2118_v59 = vmul.f32 %v5104_v47, %v2054_v27  ;;  %v1928_v13 = vadd.f32 -0.28449672, %v1864_v18  ;;  %v5275_v20 = vmul.f32 0.5, %v5099_v11  ;;  %v1422_v57 = vadd.f32 1.0, %v1358_v50  ;;  %2909 = vmatprep.mubr.f32.mxu0 %v2740_v55 }
 0x2c7   : > { %v5278_v39 = vmul.f32 %v2627_v60, %v6881_v38  ;;  %v2055_v41 = vadd.f32 0.2548296, %v1991_v24  ;;  %v5283_v3 = vsel %vm1163_vm10, -1.0, %v6844_v14  ;;  %v5286_v21 = vand.u32 2147483647, %v5268_v2 }
 0x2c8   : > { %v1929_v34 = vadd.f32 -0.28449672, %v1865_v26  ;;  %v1802_v47 = vadd.f32 1.4214138, %v1738_v31  ;;  %v2339_v36 = vmul.f32 1.442695, %v2250_v0  ;;  %v2251_v11 = vmul.f32 %v2187_v16, %v5137_v30 }
 0x2c9   : > { %6882 = vst [vmem:[#allocation89_spill] sm:$0xff] %v5278_v39  ;;  %v2628_v61 = vadd.f32 1.0, %v2564_v4  ;;  %v2565_v27 = vmul.f32 %v2501_v56, %v5111_v45  ;;  %v1739_v60 = vmul.f32 %v5238_v44, %v1675_v35  ;;  %v5292_v18 = vmul.f32 0.5, %v5141_v28  ;;  %v6883_v16 = vld [vmem:[#allocation17_spill] sm:$0xff]  ;;  %v6884_v45 = vld [vmem:[#allocation83_spill] sm:$0xff] }
 0x2ca   : > { %v5294_v17 = vpop.eup %3453  ;;  %v2438_v24 = vmul.f32 %v3448_v40, %v2118_v59  ;;  %v1992_v50 = vmul.f32 %v5162_v53, %v1928_v13  ;;  %3461 = vrcp.f32 %v1422_v57  ;;  %v5298_v26 = vadd.f32 %v910_v22, %v4429_v8 }
 0x2cb   : > { %v2119_v0 = vmul.f32 %v5131_v29, %v2055_v41  ;;  %v1359_v30 = vmul.f32 0.3275911, %v5286_v21  ;;  %v2739_v31 = vadd.f32 %v6884_v45, %v6883_v16  ;;  %v5305_v9 = vadd.f32 %v914_v54, %v4424_v6 }
 0x2cc   : > { %v3456_v28 = vpop.eup %3455  ;;  %v1993_v55 = vmul.f32 %v5174_v51, %v1929_v34  ;;  %v1866_v59 = vmul.f32 %v5215_v58, %v1802_v47  ;;  %v2341_v13 = vmul.f32 1.442695, %v2251_v11  ;;  %vm1164_vm11 = vcmp.lt.f32.partialorder %v5160_v48, 0.0  ;;  %v916_v48 = vpop.f32.mrf.mxu1 }
 0x2cd   : > { %3463 = vpow2.f32 %v2339_v36  ;;  %v1803_v40 = vadd.f32 1.4214138, %v1739_v60  ;;  %v1612_v41 = vmul.f32 1.0614054, %v5294_v17  ;;  %v5312_v29 = vmul.f32 0.70710677, %v5298_v26  ;;  %2910 = vmatmul.mubr.f32.gmra.mxu0 %v2739_v31 }
 0x2ce   : > { %v5315_v22 = vmul.f32 %v2628_v61, %v5026_v10  ;;  %v2502_v4 = vsub.f32 1.0, %v2438_v24  ;;  %v2056_v56 = vadd.f32 0.2548296, %v1992_v50  ;;  %v5318_v35 = vmul.f32 0.70710677, %v5305_v9 }
 0x2cf   : > { %v5320_v57 = vpop.eup %3457  ;;  %v2629_v38 = vadd.f32 1.0, %v2565_v27  ;;  %v2439_v34 = vmul.f32 %v5253_v43, %v2119_v0  ;;  %v1423_v47 = vadd.f32 1.0, %v1359_v30  ;;  %v5324_v36 = vand.u32 2147483647, %v5312_v29 }
 0x2d0   : > { %v2057_v11 = vadd.f32 0.2548296, %v1993_v55  ;;  %v1930_v54 = vadd.f32 -0.28449672, %v1866_v59  ;;  %v5329_v10 = vsel %vm1164_vm11, -1.0, %v6844_v14  ;;  %v2188_v61 = vsub.f32 0.0, %v5182_v49 }
 0x2d1   : > { %v1867_v60 = vmul.f32 %v5238_v44, %v1803_v40  ;;  %3465 = vpow2.f32 %v2341_v13  ;;  %v1676_v24 = vadd.f32 -1.4531521, %v1612_v41  ;;  %v1360_v27 = vmul.f32 0.3275911, %v5324_v36  ;;  %v6885_v55 = vld [vmem:[#allocation18_spill] sm:$0xff] }
 0x2d2   : > { %v3460_v43 = vpop.eup %3459  ;;  %v2566_v50 = vmul.f32 %v2502_v4, %v5156_v19  ;;  %v2120_v0 = vmul.f32 %v5162_v53, %v2056_v56  ;;  %v1613_v30 = vmul.f32 1.0614054, %v5320_v57  ;;  %v5338_v16 = vand.u32 2147483647, %v5318_v35  ;;  %v6886_v59 = vld [vmem:[#allocation86_spill] sm:$0xff] }
 0x2d3   : > { %v2503_v45 = vsub.f32 1.0, %v2439_v34  ;;  %3467 = vrcp.f32 %v1423_v47  ;;  %v1424_v31 = vadd.f32 1.0, %v1360_v27  ;;  %v2742_v13 = vadd.f32 %v6886_v59, %v6885_v55 }
 0x2d4   : > { %v2121_v40 = vmul.f32 %v5174_v51, %v2057_v11  ;;  %v1994_v41 = vmul.f32 %v5215_v58, %v1930_v54  ;;  %v2252_v19 = vmul.f32 %v2188_v61, %v5182_v49  ;;  %v1361_v53 = vmul.f32 0.3275911, %v5338_v16 }
 0x2d5   : > { %v5347_v4 = vmul.f32 %v2629_v38, %v5029_v23  ;;  %v1931_v56 = vadd.f32 -0.28449672, %v1867_v60  ;;  %v1740_v39 = vmul.f32 %v5294_v17, %v1676_v24  ;;  %2914 = vmatprep.mubr.f32.mxu0 %v2742_v13  ;;  %v5351_v34 = vadd.f32 %v916_v48, %v4429_v8  ;;  %v920_v48 = vpop.f32.mrf.mxu1 }
 0x2d6   : > { %v2630_v47 = vadd.f32 1.0, %v2566_v50  ;;  %v2440_v27 = vmul.f32 %v3456_v28, %v2120_v0  ;;  %v5354_v51 = vmul.f32 0.5, %v5185_v12  ;;  %v1677_v11 = vadd.f32 -1.4531521, %v1613_v30  ;;  %v6888_v0 = vld [vmem:[#allocation19_spill] sm:$0xff]  ;;  %v6889_v30 = vld [vmem:[#allocation85_spill] sm:$0xff] }
 0x2d7   : > { %6887 = vst [vmem:[#allocation16_spill] sm:$0xff] %v5347_v4  ;;  %v5356_v54 = vpop.eup %3461  ;;  %v2567_v49 = vmul.f32 %v2503_v45, %v5168_v52  ;;  %vm1165_vm12 = vcmp.lt.f32.partialorder %v5201_v62, 0.0  ;;  %v2189_v23 = vsub.f32 0.0, %v5226_v37  ;;  %3469 = vrcp.f32 %v1424_v31 }
 0x2d8   : > { %v2441_v38 = vmul.f32 %v3460_v43, %v2121_v40  ;;  %v2058_v61 = vadd.f32 0.2548296, %v1994_v41  ;;  %v2343_v60 = vmul.f32 1.442695, %v2252_v19  ;;  %v1425_v24 = vadd.f32 1.0, %v1361_v53 }
 0x2d9   : > { %v1995_v28 = vmul.f32 %v5238_v44, %v1931_v56  ;;  %v1804_v50 = vadd.f32 1.4214138, %v1740_v39  ;;  %v5363_v12 = vmul.f32 0.70710677, %v5351_v34  ;;  %v2741_v55 = vadd.f32 %v6889_v30, %v6888_v0 }
 0x2da   : > { %v3464_v52 = vpop.eup %3463  ;;  %v5368_v45 = vmul.f32 %v2630_v47, %v5128_v25  ;;  %v2504_v59 = vsub.f32 1.0, %v2440_v27  ;;  %v1741_v43 = vmul.f32 %v5320_v57, %v1677_v11  ;;  %v1614_v31 = vmul.f32 1.0614054, %v5356_v54 }
 0x2db   : > { %v5375_v13 = vsel %vm1165_vm12, -1.0, %v6844_v14  ;;  %v2253_v39 = vmul.f32 %v2189_v23, %v5226_v37  ;;  %v5379_v40 = vand.u32 2147483647, %v5363_v12  ;;  %2915 = vmatmul.mubr.f32.gmra.mxu0 %v2741_v55  ;;  %v5382_v41 = vadd.f32 %v920_v48, %v4424_v6 }
 0x2dc   : > { %v2631_v25 = vadd.f32 1.0, %v2567_v49  ;;  %v2505_v19 = vsub.f32 1.0, %v2441_v38  ;;  %v2122_v53 = vmul.f32 %v5215_v58, %v2058_v61  ;;  %3471 = vrcp.f32 %v1425_v24  ;;  %v6890_v38 = vld [vmem:[#allocation20_spill] sm:$0xff]  ;;  %v6891_v61 = vld [vmem:[#allocation78_spill] sm:$0xff]  ;;  %v922_v24 = vpop.f32.mrf.mxu1 }
 0x2dd   : > { %v2059_v56 = vadd.f32 0.2548296, %v1995_v28  ;;  %v1868_v47 = vmul.f32 %v5294_v17, %v1804_v50  ;;  %3473 = vpow2.f32 %v2343_v60  ;;  %v1362_v62 = vmul.f32 0.3275911, %v5379_v40 }
 0x2de   : > { %v3466_v27 = vpop.eup %3465  ;;  %v2568_v37 = vmul.f32 %v2504_v59, %v5198_v46  ;;  %v1805_v11 = vadd.f32 1.4214138, %v1741_v43  ;;  %v5389_v23 = vmul.f32 0.5, %v5231_v5  ;;  %v1678_v48 = vadd.f32 -1.4531521, %v1614_v31 }
 0x2df   : > { %v2345_v0 = vmul.f32 1.442695, %v2253_v39  ;;  %v5392_v49 = vmul.f32 0.5, %v5251_v1  ;;  %v5395_v58 = vmul.f32 0.70710677, %v5382_v41  ;;  %v2744_v60 = vadd.f32 %v6891_v61, %v6890_v38 }
 0x2e0   : > { %v5399_v28 = vpop.eup %3467  ;;  %v2569_v46 = vmul.f32 %v2505_v19, %v5223_v15  ;;  %v2442_v50 = vmul.f32 %v3464_v52, %v2122_v53  ;;  %vm1166_vm13 = vcmp.lt.f32.partialorder %v5248_v32, 0.0  ;;  %v2190_v5 = vsub.f32 0.0, %v5257_v33  ;;  %v6892_v52 = vld [vmem:[#allocation21_spill] sm:$0xff]  ;;  %v6893_v19 = vld [vmem:[#allocation87_spill] sm:$0xff] }
 0x2e1   : > { %v2123_v30 = vmul.f32 %v5238_v44, %v2059_v56  ;;  %v1932_v1 = vadd.f32 -0.28449672, %v1868_v47  ;;  %v2191_v55 = vsub.f32 0.0, %v5286_v21  ;;  %v1426_v59 = vadd.f32 1.0, %v1362_v62  ;;  %2919 = vmatprep.mubr.f32.mxu0 %v2744_v60 }
 0x2e2   : > { %v2632_v43 = vadd.f32 1.0, %v2568_v37  ;;  %v1869_v31 = vmul.f32 %v5320_v57, %v1805_v11  ;;  %v1742_v39 = vmul.f32 %v5356_v54, %v1678_v48  ;;  %v5409_v38 = vadd.f32 %v922_v24, %v4429_v8 }
 0x2e3   : > { %v5412_v15 = vsel %vm1166_vm13, -1.0, %v6844_v14  ;;  %v1615_v32 = vmul.f32 1.0614054, %v5399_v28  ;;  %v5416_v44 = vand.u32 2147483647, %v5395_v58  ;;  %v2743_v53 = vadd.f32 %v6893_v19, %v6892_v52 }
 0x2e4   : > { %v5420_v56 = vpop.eup %3469  ;;  %v2633_v47 = vadd.f32 1.0, %v2569_v46  ;;  %v2506_v62 = vsub.f32 1.0, %v2442_v50  ;;  %v2254_v37 = vmul.f32 %v2190_v5, %v5257_v33  ;;  %vm1167_vm14 = vcmp.lt.f32.partialorder %v5268_v2, 0.0  ;;  %v926_v50 = vpop.f32.mrf.mxu1 }
 0x2e5   : > { %v2443_v11 = vmul.f32 %v3466_v27, %v2123_v30  ;;  %v1996_v48 = vmul.f32 %v5294_v17, %v1932_v1  ;;  %v2255_v61 = vmul.f32 %v2191_v55, %v5286_v21  ;;  %3475 = vrcp.f32 %v1426_v59  ;;  %2920 = vmatmul.mubr.f32.gmra.mxu0 %v2743_v53 }
 0x2e6   : > { %v5427_v60 = vmul.f32 %v2631_v25, %v5148_v7  ;;  %v1933_v24 = vadd.f32 -0.28449672, %v1869_v31  ;;  %v1806_v52 = vadd.f32 1.4214138, %v1742_v39  ;;  %v5430_v19 = vmul.f32 0.70710677, %v5409_v38 }
 0x2e7   : > { %3477 = vpow2.f32 %v2345_v0  ;;  %v1679_v46 = vadd.f32 -1.4531521, %v1615_v32  ;;  %v1616_v33 = vmul.f32 1.0614054, %v5420_v56  ;;  %v1363_v27 = vmul.f32 0.3275911, %v5416_v44 }
 0x2e8   : > { %6894 = vst [vmem:[#allocation84_spill] sm:$0xff] %v5427_v60  ;;  %v5435_v5 = vmul.f32 %v2632_v43, %v5178_v63  ;;  %v5438_v21 = vmul.f32 %v2633_v47, %v5209_v42  ;;  %v2347_v7 = vmul.f32 1.442695, %v2254_v37  ;;  %v5443_v25 = vsel %vm1167_vm14, -1.0, %v6844_v14  ;;  %v6897_v0 = vld [vmem:[#allocation82_spill] sm:$0xff] }
 0x2e9   : > { %v5445_v30 = vpop.eup %3471  ;;  %v2570_v1 = vmul.f32 %v2506_v62, %v6897_v0  ;;  %v2507_v55 = vsub.f32 1.0, %v2443_v11  ;;  %v2060_v59 = vadd.f32 0.2548296, %v1996_v48  ;;  %v2349_v31 = vmul.f32 1.442695, %v2255_v61  ;;  %v6898_v37 = vld [vmem:[#allocation22_spill] sm:$0xff] }
 0x2ea   : > { %6895 = vst [vmem:[#allocation88_spill] sm:$0xff] %v5435_v5  ;;  %6896 = vst [vmem:[#allocation17_spill] sm:$0xff] %v5438_v21  ;;  %v3474_v39 = vpop.eup %3473  ;;  %v1997_v63 = vmul.f32 %v5320_v57, %v1933_v24  ;;  %v1870_v43 = vmul.f32 %v5356_v54, %v1806_v52  ;;  %v5451_v42 = vand.u32 2147483647, %v5430_v19  ;;  %v5454_v32 = vadd.f32 %v926_v50, %v4424_v6  ;;  %v6899_v62 = vld [vmem:[#allocation80_spill] sm:$0xff] }
 0x2eb   : > { %v1743_v2 = vmul.f32 %v5399_v28, %v1679_v46  ;;  %v1680_v53 = vadd.f32 -1.4531521, %v1616_v33  ;;  %v1427_v47 = vadd.f32 1.0, %v1363_v27  ;;  %v2746_v11 = vadd.f32 %v6899_v62, %v6898_v37  ;;  %v928_v37 = vpop.f32.mrf.mxu1 }
 0x2ec   : > { %3479 = vpow2.f32 %v2347_v7  ;;  %v2192_v48 = vsub.f32 0.0, %v5324_v36  ;;  %v1617_v61 = vmul.f32 1.0614054, %v5445_v30  ;;  %v1364_v24 = vmul.f32 0.3275911, %v5451_v42 }
 0x2ed   : > { %v2634_v52 = vadd.f32 1.0, %v2570_v1  ;;  %v2124_v0 = vmul.f32 %v5294_v17, %v2060_v59  ;;  %v5464_v50 = vmul.f32 0.5, %v5298_v26  ;;  %v5467_v46 = vmul.f32 0.5, %v5305_v9  ;;  %2924 = vmatprep.mubr.f32.mxu0 %v2746_v11  ;;  %v6900_v59 = vld [vmem:[#allocation79_spill] sm:$0xff] }
 0x2ee   : > { %v2571_v33 = vmul.f32 %v2507_v55, %v5283_v3  ;;  %v1934_v27 = vadd.f32 -0.28449672, %v1870_v43  ;;  %3481 = vpow2.f32 %v2349_v31  ;;  %v5471_v7 = vmul.f32 0.70710677, %v5454_v32 }
 0x2ef   : > { %v2061_v62 = vadd.f32 0.2548296, %v1997_v63  ;;  %v1807_v21 = vadd.f32 1.4214138, %v1743_v2  ;;  %v1744_v1 = vmul.f32 %v5420_v56, %v1680_v53  ;;  %3483 = vrcp.f32 %v1427_v47 }
 0x2f0   : > { %vm1168_vm15 = vcmp.lt.f32.partialorder %v5312_v29, 0.0  ;;  %v2256_v17 = vmul.f32 %v2192_v48, %v5324_v36  ;;  %v1681_v26 = vadd.f32 -1.4531521, %v1617_v61  ;;  %v1428_v9 = vadd.f32 1.0, %v1364_v24 }
 0x2f1   : > { %v5477_v11 = vmul.f32 %v2634_v52, %v6900_v59  ;;  %v2444_v3 = vmul.f32 %v3474_v39, %v2124_v0  ;;  %v2193_v55 = vsub.f32 0.0, %v5338_v16  ;;  %v5481_v31 = vadd.f32 %v928_v37, %v4429_v8 }
 0x2f2   : > { %v5483_v63 = vpop.eup %3475  ;;  %v2635_v43 = vadd.f32 1.0, %v2571_v33  ;;  %v1998_v2 = vmul.f32 %v5356_v54, %v1934_v27  ;;  %vm1169_vm0 = vcmp.lt.f32.partialorder %v5318_v35, 0.0  ;;  %v5488_v36 = vand.u32 2147483647, %v5471_v7 }
 0x2f3   : > { %6901 = vst [vmem:[#allocation83_spill] sm:$0xff] %v5477_v11  ;;  %v2125_v53 = vmul.f32 %v5320_v57, %v2061_v62  ;;  %v1871_v47 = vmul.f32 %v5399_v28, %v1807_v21  ;;  %v1808_v39 = vadd.f32 1.4214138, %v1744_v1  ;;  %v5493_v48 = vmul.f32 0.70710677, %v5481_v31 }
 0x2f4   : > { %v3478_v61 = vpop.eup %3477  ;;  %v2351_v24 = vmul.f32 1.442695, %v2256_v17  ;;  %v1745_v52 = vmul.f32 %v5445_v30, %v1681_v26  ;;  %3485 = vrcp.f32 %v1428_v9  ;;  %v1365_v0 = vmul.f32 0.3275911, %v5488_v36  ;;  %v932_v26 = vpop.f32.mrf.mxu1 }
 0x2f5   : > { %v2508_v33 = vsub.f32 1.0, %v2444_v3  ;;  %v2257_v27 = vmul.f32 %v2193_v55, %v5338_v16  ;;  %v1618_v37 = vmul.f32 1.0614054, %v5483_v63  ;;  %v5500_v57 = vand.u32 2147483647, %v5493_v48 }
 0x2f6   : > { %v2062_v21 = vadd.f32 0.2548296, %v1998_v2  ;;  %v5505_v62 = vsel %vm1168_vm15, -1.0, %v6844_v14  ;;  %v5510_v1 = vsel %vm1169_vm0, -1.0, %v6844_v14  ;;  %v1429_v17 = vadd.f32 1.0, %v1365_v0 }
 0x2f7   : > { %v5513_v16 = vmul.f32 %v2635_v43, %v5275_v20  ;;  %v2445_v9 = vmul.f32 %v3478_v61, %v2125_v53  ;;  %v1935_v59 = vadd.f32 -0.28449672, %v1871_v47  ;;  %v1872_v3 = vmul.f32 %v5420_v56, %v1808_v39  ;;  %v6903_v53 = vld [vmem:[#allocation23_spill] sm:$0xff]  ;;  %v6904_v47 = vld [vmem:[#allocation81_spill] sm:$0xff]  ;;  %v934_v61 = vpop.f32.mrf.mxu1 }
 0x2f8   : > { %3487 = vpow2.f32 %v2351_v24  ;;  %v1809_v55 = vadd.f32 1.4214138, %v1745_v52  ;;  %v5517_v29 = vmul.f32 0.5, %v5351_v34  ;;  %v1366_v2 = vmul.f32 0.3275911, %v5500_v57 }
 0x2f9   : > { %6902 = vst [vmem:[#allocation18_spill] sm:$0xff] %v5513_v16  ;;  %v3480_v11 = vpop.eup %3479  ;;  %v2572_v35 = vmul.f32 %v2508_v33, %v5329_v10  ;;  %v2353_v60 = vmul.f32 1.442695, %v2257_v27  ;;  %vm1170_vm1 = vcmp.lt.f32.partialorder %v5363_v12, 0.0  ;;  %v1682_v0 = vadd.f32 -1.4531521, %v1618_v37 }
 0x2fa   : > { %v2126_v20 = vmul.f32 %v5356_v54, %v2062_v21  ;;  %v2194_v43 = vsub.f32 0.0, %v5379_v40  ;;  %3489 = vrcp.f32 %v1429_v17  ;;  %v2745_v39 = vadd.f32 %v6904_v47, %v6903_v53  ;;  %v6905_v21 = vld [vmem:[#allocation24_spill] sm:$0xff]  ;;  %v6906_v17 = vld [vmem:[#allocation91_spill] sm:$0xff] }
 0x2fb   : > { %v3482_v34 = vpop.eup %3481  ;;  %v2509_v24 = vsub.f32 1.0, %v2445_v9  ;;  %v1999_v52 = vmul.f32 %v5399_v28, %v1935_v59  ;;  %v1936_v16 = vadd.f32 -0.28449672, %v1872_v3  ;;  %v2195_v10 = vsub.f32 0.0, %v5416_v44 }
 0x2fc   : > { %v5528_v33 = vpop.eup %3483  ;;  %v1873_v27 = vmul.f32 %v5445_v30, %v1809_v55  ;;  %v1430_v37 = vadd.f32 1.0, %v1366_v2  ;;  %2925 = vmatmul.mubr.f32.gmra.mxu0 %v2745_v39  ;;  %v5532_v54 = vadd.f32 %v932_v26, %v4424_v6  ;;  %v2748_v53 = vadd.f32 %v6906_v17, %v6905_v21 }
 0x2fd   : > { %3491 = vpow2.f32 %v2353_v60  ;;  %v1746_v9 = vmul.f32 %v5483_v63, %v1682_v0  ;;  %v5538_v59 = vmul.f32 0.5, %v5382_v41  ;;  %v5541_v3 = vadd.f32 %v934_v61, %v4429_v8 }
 0x2fe   : > { %v2636_v47 = vadd.f32 1.0, %v2572_v35  ;;  %v2446_v5 = vmul.f32 %v3480_v11, %v2126_v20  ;;  %v2258_v55 = vmul.f32 %v2194_v43, %v5379_v40  ;;  %vm1171_vm2 = vcmp.lt.f32.partialorder %v5395_v58, 0.0  ;;  %2929 = vmatprep.mubr.f32.mxu0 %v2748_v53  ;;  %v6908_v43 = vld [vmem:[#allocation90_spill] sm:$0xff] }
 0x2ff   : > { %v2063_v26 = vadd.f32 0.2548296, %v1999_v52  ;;  %v2000_v2 = vmul.f32 %v5420_v56, %v1936_v16  ;;  %v1619_v60 = vmul.f32 1.0614054, %v5528_v33  ;;  %v5548_v0 = vmul.f32 0.70710677, %v5532_v54 }
 0x300   : > { %v2573_v41 = vmul.f32 %v2509_v24, %v5375_v13  ;;  %v1937_v39 = vadd.f32 -0.28449672, %v1873_v27  ;;  %v2259_v61 = vmul.f32 %v2195_v10, %v5416_v44  ;;  %3493 = vrcp.f32 %v1430_v37  ;;  %v6907_v16 = vld [vmem:[#allocation25_spill] sm:$0xff] }
 0x301   : > { %v5552_v11 = vpop.eup %3485  ;;  %v1810_v40 = vadd.f32 1.4214138, %v1746_v9  ;;  %v5555_v35 = vand.u32 2147483647, %v5548_v0  ;;  %v5558_v20 = vmul.f32 0.70710677, %v5541_v3  ;;  %v2747_v52 = vadd.f32 %v6908_v43, %v6907_v16 }
 0x302   : > { %v5563_v21 = vmul.f32 %v2636_v47, %v5292_v18  ;;  %v2510_v13 = vsub.f32 1.0, %v2446_v5  ;;  %v5568_v44 = vsel %vm1170_vm1, -1.0, %v6844_v14  ;;  %v2355_v24 = vmul.f32 1.442695, %v2258_v55  ;;  %v938_v5 = vpop.f32.mrf.mxu1 }
 0x303   : > { %v2127_v10 = vmul.f32 %v5399_v28, %v2063_v26  ;;  %v2064_v27 = vadd.f32 0.2548296, %v2000_v2  ;;  %v1683_v37 = vadd.f32 -1.4531521, %v1619_v60  ;;  %v1367_v17 = vmul.f32 0.3275911, %v5555_v35  ;;  %2930 = vmatmul.mubr.f32.gmra.mxu0 %v2747_v52 }
 0x304   : > { %6909 = vst [vmem:[#allocation86_spill] sm:$0xff] %v5563_v21  ;;  %v2637_v53 = vadd.f32 1.0, %v2573_v41  ;;  %v2001_v9 = vmul.f32 %v5445_v30, %v1937_v39  ;;  %v5576_v18 = vsel %vm1171_vm2, -1.0, %v6844_v14  ;;  %v1620_v12 = vmul.f32 1.0614054, %v5552_v11  ;;  %v6910_v2 = vld [vmem:[#allocation26_spill] sm:$0xff] }
 0x305   : > { %v3488_v47 = vpop.eup %3487  ;;  %v1874_v55 = vmul.f32 %v5483_v63, %v1810_v40  ;;  %v2357_v28 = vmul.f32 1.442695, %v2259_v61  ;;  %v5581_v26 = vand.u32 2147483647, %v5558_v20  ;;  %v6911_v60 = vld [vmem:[#allocation93_spill] sm:$0xff]  ;;  %v2574_v39 = vmul.f32 %v2510_v13, %v5412_v15 }
 0x306   : > { %v2750_v41 = vadd.f32 %v6911_v60, %v6910_v2  ;;  %3495 = vpow2.f32 %v2355_v24  ;;  %v5587_v58 = vmul.f32 0.5, %v5409_v38  ;;  %v1431_v16 = vadd.f32 1.0, %v1367_v17  ;;  %v940_v38 = vpop.f32.mrf.mxu1 }
 0x307   : > { %v5589_v43 = vpop.eup %3489  ;;  %v2447_v52 = vmul.f32 %v3482_v34, %v2127_v10  ;;  %v2128_v21 = vmul.f32 %v5420_v56, %v2064_v27  ;;  %v1747_v61 = vmul.f32 %v5528_v33, %v1683_v37  ;;  %vm1172_vm3 = vcmp.lt.f32.partialorder %v5430_v19, 0.0 }
 0x308   : > { %2934 = vmatprep.mubr.f32.mxu0 %v2750_v41  ;;  %v2065_v40 = vadd.f32 0.2548296, %v2001_v9  ;;  %v1684_v4 = vadd.f32 -1.4531521, %v1620_v12  ;;  %v2196_v2 = vsub.f32 0.0, %v5451_v42  ;;  %v5596_v15 = vadd.f32 %v938_v5, %v4424_v6 }
 0x309   : > { %v5599_v13 = vmul.f32 %v2637_v53, %v5354_v51  ;;  %v1938_v24 = vadd.f32 -0.28449672, %v1874_v55  ;;  %3497 = vpow2.f32 %v2357_v28  ;;  %v1368_v56 = vmul.f32 0.3275911, %v5581_v26 }
 0x30a   : > { %v3492_v34 = vpop.eup %3491  ;;  %v2638_v10 = vadd.f32 1.0, %v2574_v39  ;;  %v5603_v19 = vsel %vm1172_vm3, -1.0, %v6844_v14  ;;  %v1621_v27 = vmul.f32 1.0614054, %v5589_v43  ;;  %3499 = vrcp.f32 %v1431_v16 }
 0x30b   : > { %6912 = vst [vmem:[#allocation19_spill] sm:$0xff] %v5599_v13  ;;  %v2511_v37 = vsub.f32 1.0, %v2447_v52  ;;  %v2448_v17 = vmul.f32 %v3488_v47, %v2128_v21  ;;  %v1811_v9 = vadd.f32 1.4214138, %v1747_v61  ;;  %v5607_v12 = vadd.f32 %v940_v38, %v4429_v8 }
 0x30c   : > { %v2129_v51 = vmul.f32 %v5445_v30, %v2065_v40  ;;  %v1748_v53 = vmul.f32 %v5552_v11, %v1684_v4  ;;  %v2260_v5 = vmul.f32 %v2196_v2, %v5451_v42  ;;  %v5613_v55 = vmul.f32 0.70710677, %v5596_v15 }
 0x30d   : > { %v5615_v28 = vpop.eup %3493  ;;  %v2002_v60 = vmul.f32 %v5483_v63, %v1938_v24  ;;  %v5619_v41 = vmul.f32 0.5, %v5454_v32  ;;  %v1432_v21 = vadd.f32 1.0, %v1368_v56  ;;  %v5622_v47 = vmul.f32 0.70710677, %v5607_v12 }
 0x30e   : > { %v5625_v30 = vmul.f32 %v2638_v10, %v5389_v23  ;;  %vm1173_vm4 = vcmp.lt.f32.partialorder %v5471_v7, 0.0  ;;  %v1685_v4 = vadd.f32 -1.4531521, %v1621_v27  ;;  %v2197_v42 = vsub.f32 0.0, %v5488_v36  ;;  %v944_v23 = vpop.f32.mrf.mxu1 }
 0x30f   : > { %v2575_v39 = vmul.f32 %v2511_v37, %v5443_v25  ;;  %v2512_v16 = vsub.f32 1.0, %v2448_v17  ;;  %v1875_v52 = vmul.f32 %v5528_v33, %v1811_v9  ;;  %v5632_v32 = vand.u32 2147483647, %v5613_v55  ;;  %v6914_v37 = vld [vmem:[#allocation27_spill] sm:$0xff]  ;;  %v6915_v17 = vld [vmem:[#allocation92_spill] sm:$0xff] }
 0x310   : > { %6913 = vst [vmem:[#allocation85_spill] sm:$0xff] %v5625_v30  ;;  %v2449_v61 = vmul.f32 %v3492_v34, %v2129_v51  ;;  %v1812_v40 = vadd.f32 1.4214138, %v1748_v53  ;;  %v2359_v2 = vmul.f32 1.442695, %v2260_v5  ;;  %3501 = vrcp.f32 %v1432_v21 }
 0x311   : > { %v1622_v38 = vmul.f32 1.0614054, %v5615_v28  ;;  %v2066_v24 = vadd.f32 0.2548296, %v2002_v60  ;;  %v1369_v56 = vmul.f32 0.3275911, %v5632_v32  ;;  %v1749_v27 = vmul.f32 %v5589_v43, %v1685_v4 }
 0x312   : > { %v5637_v10 = vand.u32 2147483647, %v5622_v47  ;;  %v5642_v25 = vsel %vm1173_vm4, -1.0, %v6844_v14  ;;  %v2261_v34 = vmul.f32 %v2197_v42, %v5488_v36  ;;  %v2749_v9 = vadd.f32 %v6915_v17, %v6914_v37 }
 0x313   : > { %v3496_v51 = vpop.eup %3495  ;;  %v2576_v53 = vmul.f32 %v2512_v16, %v5505_v62  ;;  %v1939_v5 = vadd.f32 -0.28449672, %v1875_v52  ;;  %v2198_v60 = vsub.f32 0.0, %v5500_v57  ;;  %v5651_v21 = vadd.f32 %v944_v23, %v4424_v6 }
 0x314   : > { %v1876_v7 = vmul.f32 %v5552_v11, %v1812_v40  ;;  %v1686_v13 = vadd.f32 -1.4531521, %v1622_v38  ;;  %v1433_v30 = vadd.f32 1.0, %v1369_v56  ;;  %v1370_v4 = vmul.f32 0.3275911, %v5637_v10  ;;  %2935 = vmatmul.mubr.f32.gmra.mxu0 %v2749_v9 }
 0x315   : > { %v2639_v36 = vadd.f32 1.0, %v2575_v39  ;;  %v2513_v42 = vsub.f32 1.0, %v2449_v61  ;;  %v2130_v37 = vmul.f32 %v5483_v63, %v2066_v24  ;;  %3503 = vpow2.f32 %v2359_v2 }
 0x316   : > { %v3498_v17 = vpop.eup %3497  ;;  %v1813_v62 = vadd.f32 1.4214138, %v1749_v27  ;;  %v2361_v16 = vmul.f32 1.442695, %v2261_v34  ;;  %v5657_v52 = vmul.f32 0.5, %v5481_v31  ;;  %vm1174_vm5 = vcmp.lt.f32.partialorder %v5493_v48, 0.0 }
 0x317   : > { %v5660_v23 = vpop.eup %3499  ;;  %v2640_v40 = vadd.f32 1.0, %v2576_v53  ;;  %v2003_v38 = vmul.f32 %v5528_v33, %v1939_v5  ;;  %v2262_v56 = vmul.f32 %v2198_v60, %v5500_v57  ;;  %v5665_v39 = vmul.f32 0.70710677, %v5651_v21  ;;  %v6918_v5 = vld [vmem:[#allocation28_spill] sm:$0xff] }
 0x318   : > { %v1940_v63 = vadd.f32 -0.28449672, %v1876_v7  ;;  %v1750_v61 = vmul.f32 %v5615_v28, %v1686_v13  ;;  %3505 = vrcp.f32 %v1433_v30  ;;  %v1434_v2 = vadd.f32 1.0, %v1370_v4  ;;  %v946_v13 = vpop.f32.mrf.mxu1 }
 0x319   : > { %v5669_v31 = vmul.f32 %v2639_v36, %v5392_v49  ;;  %v2577_v48 = vmul.f32 %v2513_v42, %v5510_v1  ;;  %v2450_v24 = vmul.f32 %v3496_v51, %v2130_v37  ;;  %v5673_v27 = vsel %vm1174_vm5, -1.0, %v6844_v14  ;;  %v6919_v1 = vld [vmem:[#allocation95_spill] sm:$0xff] }
 0x31a   : > { %v1877_v34 = vmul.f32 %v5589_v43, %v1813_v62  ;;  %3507 = vpow2.f32 %v2361_v16  ;;  %v1623_v57 = vmul.f32 1.0614054, %v5660_v23  ;;  %v5678_v9 = vand.u32 2147483647, %v5665_v39  ;;  %v6920_v62 = vld [vmem:[#allocation29_spill] sm:$0xff] }
 0x31b   : > { %6916 = vst [vmem:[#allocation20_spill] sm:$0xff] %v5669_v31  ;;  %v5681_v30 = vmul.f32 %v2640_v40, %v5464_v50  ;;  %v2067_v49 = vadd.f32 0.2548296, %v2003_v38  ;;  %v2363_v53 = vmul.f32 1.442695, %v2262_v56  ;;  %v2752_v51 = vadd.f32 %v6919_v1, %v6918_v5  ;;  %v6921_v50 = vld [vmem:[#allocation94_spill] sm:$0xff]  ;;  %v950_v5 = vpop.f32.mrf.mxu1 }
 0x31c   : > { %v2004_v60 = vmul.f32 %v5552_v11, %v1940_v63  ;;  %v1814_v7 = vadd.f32 1.4214138, %v1750_v61  ;;  %3509 = vrcp.f32 %v1434_v2  ;;  %v1371_v4 = vmul.f32 0.3275911, %v5678_v9 }
 0x31d   : > { %6917 = vst [vmem:[#allocation78_spill] sm:$0xff] %v5681_v30  ;;  %v2641_v36 = vadd.f32 1.0, %v2577_v48  ;;  %v2514_v42 = vsub.f32 1.0, %v2450_v24  ;;  %2939 = vmatprep.mubr.f32.mxu0 %v2752_v51  ;;  %v5688_v37 = vadd.f32 %v946_v13, %v4429_v8  ;;  %v2751_v16 = vadd.f32 %v6921_v50, %v6920_v62  ;;  %v5692_v40 = vpop.eup %3501 }
 0x31e   : > { %v1941_v38 = vadd.f32 -0.28449672, %v1877_v34  ;;  %v5695_v56 = vmul.f32 0.5, %v5532_v54  ;;  %v1687_v63 = vadd.f32 -1.4531521, %v1623_v57  ;;  %v2199_v61 = vsub.f32 0.0, %v5555_v35 }
 0x31f   : > { %v2131_v2 = vmul.f32 %v5528_v33, %v2067_v49  ;;  %v2200_v48 = vsub.f32 0.0, %v5581_v26  ;;  %v1435_v24 = vadd.f32 1.0, %v1371_v4  ;;  %v5701_v13 = vmul.f32 0.70710677, %v5688_v37  ;;  %2940 = vmatmul.mubr.f32.gmra.mxu0 %v2751_v16 }
 0x320   : > { %v2068_v1 = vadd.f32 0.2548296, %v2004_v60  ;;  %v1878_v51 = vmul.f32 %v5615_v28, %v1814_v7  ;;  %3511 = vpow2.f32 %v2363_v53  ;;  %vm1175_vm6 = vcmp.lt.f32.partialorder %v5548_v0, 0.0 }
 0x321   : > { %v2578_v54 = vmul.f32 %v2514_v42, %v5568_v44  ;;  %vm1176_vm7 = vcmp.lt.f32.partialorder %v5558_v20, 0.0  ;;  %v1624_v33 = vmul.f32 1.0614054, %v5692_v40  ;;  %v5709_v34 = vand.u32 2147483647, %v5701_v13 }
 0x322   : > { %v3504_v57 = vpop.eup %3503  ;;  %v2005_v49 = vmul.f32 %v5589_v43, %v1941_v38  ;;  %v1751_v4 = vmul.f32 %v5660_v23, %v1687_v63  ;;  %v2263_v60 = vmul.f32 %v2199_v61, %v5555_v35  ;;  %v5715_v53 = vadd.f32 %v950_v5, %v4424_v6 }
 0x323   : > { %v2451_v7 = vmul.f32 %v3498_v17, %v2131_v2  ;;  %v2264_v44 = vmul.f32 %v2200_v48, %v5581_v26  ;;  %3513 = vrcp.f32 %v1435_v24  ;;  %v1372_v42 = vmul.f32 0.3275911, %v5709_v34  ;;  %v6923_v26 = vld [vmem:[#allocation30_spill] sm:$0xff]  ;;  %v6924_v2 = vld [vmem:[#allocation15_spill] sm:$0xff] }
 0x324   : > { %v2132_v62 = vmul.f32 %v5552_v11, %v2068_v1  ;;  %v1942_v50 = vadd.f32 -0.28449672, %v1878_v51  ;;  %v5721_v16 = vmul.f32 0.5, %v5541_v3  ;;  %v5724_v38 = vmul.f32 0.70710677, %v5715_v53  ;;  %v952_v1 = vpop.f32.mrf.mxu1 }
 0x325   : > { %v5726_v63 = vpop.eup %3505  ;;  %v5729_v35 = vmul.f32 %v2641_v36, %v5467_v46  ;;  %v1688_v17 = vadd.f32 -1.4531521, %v1624_v33  ;;  %v1436_v61 = vadd.f32 1.0, %v1372_v42  ;;  %v2754_v48 = vadd.f32 %v6924_v2, %v6923_v26 }
 0x326   : > { %v2069_v24 = vadd.f32 0.2548296, %v2005_v49  ;;  %v5736_v11 = vsel %vm1175_vm6, -1.0, %v6844_v14  ;;  %v1815_v3 = vadd.f32 1.4214138, %v1751_v4  ;;  %v5741_v5 = vsel %vm1176_vm7, -1.0, %v6844_v14 }
 0x327   : > { %6922 = vst [vmem:[#allocation21_spill] sm:$0xff] %v5729_v35  ;;  %v3508_v46 = vpop.eup %3507  ;;  %v2642_v36 = vadd.f32 1.0, %v2578_v54  ;;  %v2515_v51 = vsub.f32 1.0, %v2451_v7  ;;  %v2365_v33 = vmul.f32 1.442695, %v2263_v60  ;;  %2944 = vmatprep.mubr.f32.mxu0 %v2754_v48  ;;  %v2452_v26 = vmul.f32 %v3504_v57, %v2132_v62  ;;  %v6925_v54 = vld [vmem:[#allocation31_spill] sm:$0xff] }
 0x328   : > { %v2367_v42 = vmul.f32 1.442695, %v2264_v44  ;;  %v2006_v49 = vmul.f32 %v5615_v28, %v1942_v50  ;;  %v1625_v0 = vmul.f32 1.0614054, %v5726_v63  ;;  %v5746_v2 = vand.u32 2147483647, %v5724_v38 }
 0x329   : > { %v5748_v4 = vpop.eup %3509  ;;  %v1752_v20 = vmul.f32 %v5692_v40, %v1688_v17  ;;  %3515 = vrcp.f32 %v1436_v61  ;;  %v5752_v35 = vadd.f32 %v952_v1, %v4429_v8  ;;  %v6926_v60 = vld [vmem:[#allocation96_spill] sm:$0xff]  ;;  %v2133_v57 = vmul.f32 %v5589_v43, %v2069_v24 }
 0x32a   : > { %v2753_v7 = vadd.f32 %v6926_v60, %v6925_v54  ;;  %v1879_v44 = vmul.f32 %v5660_v23, %v1815_v3  ;;  %v2201_v62 = vsub.f32 0.0, %v5632_v32  ;;  %v1373_v50 = vmul.f32 0.3275911, %v5746_v2  ;;  %v956_v3 = vpop.f32.mrf.mxu1 }
 0x32b   : > { %v5761_v48 = vmul.f32 %v2642_v36, %v5517_v29  ;;  %v2579_v17 = vmul.f32 %v2515_v51, %v5576_v18  ;;  %v5765_v61 = vmul.f32 0.5, %v5596_v15  ;;  %vm1177_vm8 = vcmp.lt.f32.partialorder %v5613_v55, 0.0 }
 0x32c   : > { %2945 = vmatmul.mubr.f32.gmra.mxu0 %v2753_v7  ;;  %v2070_v1 = vadd.f32 0.2548296, %v2006_v49  ;;  %3517 = vpow2.f32 %v2365_v33  ;;  %v1689_v43 = vadd.f32 -1.4531521, %v1625_v0  ;;  %v1626_v24 = vmul.f32 1.0614054, %v5748_v4 }
 0x32d   : > { %6927 = vst [vmem:[#allocation87_spill] sm:$0xff] %v5761_v48  ;;  %v3512_v54 = vpop.eup %3511  ;;  %v1816_v60 = vadd.f32 1.4214138, %v1752_v20  ;;  %3519 = vpow2.f32 %v2367_v42  ;;  %v1437_v31 = vadd.f32 1.0, %v1373_v50  ;;  %v5770_v29 = vmul.f32 0.70710677, %v5752_v35 }
 0x32e   : > { %v2516_v18 = vsub.f32 1.0, %v2452_v26  ;;  %v2453_v36 = vmul.f32 %v3508_v46, %v2133_v57  ;;  %v1943_v15 = vadd.f32 -0.28449672, %v1879_v44  ;;  %v2265_v51 = vmul.f32 %v2201_v62, %v5632_v32 }
 0x32f   : > { %v2643_v48 = vadd.f32 1.0, %v2579_v17  ;;  %v5776_v33 = vsel %vm1177_vm8, -1.0, %v6844_v14  ;;  %v5779_v49 = vmul.f32 0.5, %v5607_v12  ;;  %v5782_v42 = vadd.f32 %v956_v3, %v4424_v6 }
 0x330   : > { %v5784_v0 = vpop.eup %3513  ;;  %v1753_v26 = vmul.f32 %v5726_v63, %v1689_v43  ;;  %vm1178_vm9 = vcmp.lt.f32.partialorder %v5622_v47, 0.0  ;;  %v1690_v46 = vadd.f32 -1.4531521, %v1626_v24  ;;  %v2202_v32 = vsub.f32 0.0, %v5637_v10 }
 0x331   : > { %v2134_v20 = vmul.f32 %v5615_v28, %v2070_v1  ;;  %v1880_v55 = vmul.f32 %v5692_v40, %v1816_v60  ;;  %3521 = vrcp.f32 %v1437_v31  ;;  %v5792_v12 = vand.u32 2147483647, %v5770_v29  ;;  %v6928_v28 = vld [vmem:[#allocation32_spill] sm:$0xff]  ;;  %v958_v60 = vpop.f32.mrf.mxu1 }
 0x332   : > { %v2580_v7 = vmul.f32 %v2516_v18, %v5603_v19  ;;  %v2517_v57 = vsub.f32 1.0, %v2453_v36  ;;  %v2007_v44 = vmul.f32 %v5660_v23, %v1943_v15  ;;  %v2369_v62 = vmul.f32 1.442695, %v2265_v51 }
 0x333   : > { %v1627_v50 = vmul.f32 1.0614054, %v5784_v0  ;;  %v1374_v17 = vmul.f32 0.3275911, %v5792_v12  ;;  %v5799_v43 = vmul.f32 0.70710677, %v5782_v42  ;;  %v2756_v1 = vadd.f32 %v5315_v22, %v6928_v28 }
 0x334   : > { %v5804_v31 = vmul.f32 %v2643_v48, %v5538_v59  ;;  %v1817_v24 = vadd.f32 1.4214138, %v1753_v26  ;;  %v1754_v19 = vmul.f32 %v5748_v4, %v1690_v46  ;;  %v2266_v3 = vmul.f32 %v2202_v32, %v5637_v10 }
 0x335   : > { %v2454_v18 = vmul.f32 %v3512_v54, %v2134_v20  ;;  %v1944_v36 = vadd.f32 -0.28449672, %v1880_v55  ;;  %v5811_v15 = vsel %vm1178_vm9, -1.0, %v6844_v14  ;;  %v5814_v51 = vmul.f32 0.5, %v5651_v21  ;;  %2949 = vmatprep.mubr.f32.mxu0 %v2756_v1 }
 0x336   : > { %6929 = vst [vmem:[#allocation82_spill] sm:$0xff] %v5804_v31  ;;  %v5816_v22 = vpop.eup %3515  ;;  %v2644_v59 = vadd.f32 1.0, %v2580_v7  ;;  %v2581_v48 = vmul.f32 %v2517_v57, %v5642_v25  ;;  %v2071_v26 = vadd.f32 0.2548296, %v2007_v44  ;;  %v1438_v46 = vadd.f32 1.0, %v1374_v17 }
 0x337   : > { %3523 = vpow2.f32 %v2369_v62  ;;  %v1691_v10 = vadd.f32 -1.4531521, %v1627_v50  ;;  %v5820_v54 = vand.u32 2147483647, %v5799_v43  ;;  %v5823_v47 = vadd.f32 %v958_v60, %v4429_v8  ;;  %v6932_v60 = vld [vmem:[#allocation89_spill] sm:$0xff] }
 0x338   : > { %v1881_v32 = vmul.f32 %v5726_v63, %v1817_v24  ;;  %v1818_v21 = vadd.f32 1.4214138, %v1754_v19  ;;  %v2371_v20 = vmul.f32 1.442695, %v2266_v3  ;;  %v2203_v55 = vsub.f32 0.0, %v5678_v9  ;;  %v6931_v3 = vld [vmem:[#allocation33_spill] sm:$0xff] }
 0x339   : > { %v3518_v28 = vpop.eup %3517  ;;  %v2518_v7 = vsub.f32 1.0, %v2454_v18  ;;  %v2008_v25 = vmul.f32 %v5692_v40, %v1944_v36  ;;  %vm1179_vm10 = vcmp.lt.f32.partialorder %v5665_v39, 0.0  ;;  %v1628_v57 = vmul.f32 1.0614054, %v5816_v22 }
 0x33a   : > { %v3520_v44 = vpop.eup %3519  ;;  %v5831_v62 = vmul.f32 %v2644_v59, %v5587_v58  ;;  %v2645_v50 = vadd.f32 1.0, %v2581_v48  ;;  %v2135_v17 = vmul.f32 %v5660_v23, %v2071_v26  ;;  %3525 = vrcp.f32 %v1438_v46  ;;  %v962_v23 = vpop.f32.mrf.mxu1 }
 0x33b   : > { %v1755_v1 = vmul.f32 %v5784_v0, %v1691_v10  ;;  %v1375_v24 = vmul.f32 0.3275911, %v5820_v54  ;;  %v5837_v19 = vmul.f32 0.70710677, %v5823_v47  ;;  %v2755_v39 = vadd.f32 %v6932_v60, %v6931_v3 }
 0x33c   : > { %6930 = vst [vmem:[#allocation22_spill] sm:$0xff] %v5831_v62  ;;  %v1945_v18 = vadd.f32 -0.28449672, %v1881_v32  ;;  %v1882_v36 = vmul.f32 %v5748_v4, %v1818_v21  ;;  %v5843_v58 = vsel %vm1179_vm10, -1.0, %v6844_v14  ;;  %v2267_v59 = vmul.f32 %v2203_v55, %v5678_v9 }
 0x33d   : > { %v2582_v48 = vmul.f32 %v2518_v7, %v5673_v27  ;;  %v2072_v26 = vadd.f32 0.2548296, %v2008_v25  ;;  %3527 = vpow2.f32 %v2371_v20  ;;  %v1692_v46 = vadd.f32 -1.4531521, %v1628_v57  ;;  %2950 = vmatmul.mubr.f32.gmra.mxu0 %v2755_v39 }
 0x33e   : > { %v5847_v10 = vpop.eup %3521  ;;  %v5850_v31 = vmul.f32 %v2645_v50, %v5619_v41  ;;  %v2455_v32 = vmul.f32 %v3518_v28, %v2135_v17  ;;  %v5853_v21 = vmul.f32 0.5, %v5688_v37  ;;  %v2204_v3 = vsub.f32 0.0, %v5709_v34  ;;  %v6934_v41 = vld [vmem:[#allocation34_spill] sm:$0xff] }
 0x33f   : > { %v1819_v60 = vadd.f32 1.4214138, %v1755_v1  ;;  %v1439_v9 = vadd.f32 1.0, %v1375_v24  ;;  %v5857_v55 = vand.u32 2147483647, %v5837_v19  ;;  %v5860_v27 = vadd.f32 %v962_v23, %v4424_v6 }
 0x340   : > { %6933 = vst [vmem:[#allocation80_spill] sm:$0xff] %v5850_v31  ;;  %v2009_v20 = vmul.f32 %v5726_v63, %v1945_v18  ;;  %v1946_v7 = vadd.f32 -0.28449672, %v1882_v36  ;;  %v2373_v25 = vmul.f32 1.442695, %v2267_v59  ;;  %v2758_v28 = vadd.f32 %v5368_v45, %v6934_v41  ;;  %v964_v18 = vpop.f32.mrf.mxu1  ;;  %v6936_v59 = vld [vmem:[#allocation16_spill] sm:$0xff] }
 0x341   : > { %v2136_v37 = vmul.f32 %v5692_v40, %v2072_v26  ;;  %v1756_v57 = vmul.f32 %v5816_v22, %v1692_v46  ;;  %v1629_v50 = vmul.f32 1.0614054, %v5847_v10  ;;  %v1376_v17 = vmul.f32 0.3275911, %v5857_v55  ;;  %v6935_v40 = vld [vmem:[#allocation35_spill] sm:$0xff] }
 0x342   : > { %v2646_v1 = vadd.f32 1.0, %v2582_v48  ;;  %v2519_v24 = vsub.f32 1.0, %v2455_v32  ;;  %vm1180_vm11 = vcmp.lt.f32.partialorder %v5701_v13, 0.0  ;;  %v5871_v39 = vmul.f32 0.70710677, %v5860_v27  ;;  %2954 = vmatprep.mubr.f32.mxu0 %v2758_v28  ;;  %v968_v13 = vpop.f32.mrf.mxu1 }
 0x343   : > { %v1883_v36 = vmul.f32 %v5784_v0, %v1819_v60  ;;  %v2268_v45 = vmul.f32 %v2204_v3, %v5709_v34  ;;  %3529 = vrcp.f32 %v1439_v9  ;;  %v2757_v23 = vadd.f32 %v6936_v59, %v6935_v40 }
 0x344   : > { %v3524_v26 = vpop.eup %3523  ;;  %v2073_v46 = vadd.f32 0.2548296, %v2009_v20  ;;  %v2010_v48 = vmul.f32 %v5748_v4, %v1946_v7  ;;  %v1440_v32 = vadd.f32 1.0, %v1376_v17  ;;  %v5879_v41 = vand.u32 2147483647, %v5871_v39 }
 0x345   : > { %v2456_v31 = vmul.f32 %v3520_v44, %v2136_v37  ;;  %v1820_v62 = vadd.f32 1.4214138, %v1756_v57  ;;  %v1693_v28 = vadd.f32 -1.4531521, %v1629_v50  ;;  %v5882_v30 = vadd.f32 %v964_v18, %v4429_v8  ;;  %2955 = vmatmul.mubr.f32.gmra.mxu0 %v2757_v23 }
 0x346   : > { %v2583_v34 = vmul.f32 %v2519_v24, %v5736_v11  ;;  %3531 = vpow2.f32 %v2373_v25  ;;  %v5888_v3 = vsel %vm1180_vm11, -1.0, %v6844_v14  ;;  %v2205_v60 = vsub.f32 0.0, %v5746_v2 }
 0x347   : > { %v5891_v9 = vpop.eup %3525  ;;  %v5894_v44 = vmul.f32 %v2646_v1, %v5657_v52  ;;  %v1947_v20 = vadd.f32 -0.28449672, %v1883_v36  ;;  %v2375_v7 = vmul.f32 1.442695, %v2268_v45  ;;  %vm1181_vm12 = vcmp.lt.f32.partialorder %v5724_v38, 0.0 }
 0x348   : > { %v2137_v37 = vmul.f32 %v5726_v63, %v2073_v46  ;;  %v2074_v11 = vadd.f32 0.2548296, %v2010_v48  ;;  %3533 = vrcp.f32 %v1440_v32  ;;  %v1377_v25 = vmul.f32 0.3275911, %v5879_v41 }
 0x349   : > { %v2520_v57 = vsub.f32 1.0, %v2456_v31  ;;  %v1884_v50 = vmul.f32 %v5816_v22, %v1820_v62  ;;  %v1757_v17 = vmul.f32 %v5847_v10, %v1693_v28  ;;  %v5902_v24 = vmul.f32 0.70710677, %v5882_v30 }
 0x34a   : > { %v3528_v52 = vpop.eup %3527  ;;  %v2647_v1 = vadd.f32 1.0, %v2583_v34  ;;  %v5905_v18 = vmul.f32 0.5, %v5715_v53  ;;  %v2269_v63 = vmul.f32 %v2205_v60, %v5746_v2  ;;  %v1630_v36 = vmul.f32 1.0614054, %v5891_v9 }
 0x34b   : > { %v2011_v45 = vmul.f32 %v5784_v0, %v1947_v20  ;;  %3535 = vpow2.f32 %v2375_v7  ;;  %v5913_v31 = vsel %vm1181_vm12, -1.0, %v6844_v14  ;;  %v5916_v62 = vadd.f32 %v968_v13, %v4424_v6  ;;  %v6937_v20 = vld [vmem:[#allocation36_spill] sm:$0xff] }
 0x34c   : > { %v2457_v40 = vmul.f32 %v3524_v26, %v2137_v37  ;;  %v2138_v59 = vmul.f32 %v5748_v4, %v2074_v11  ;;  %v1441_v53 = vadd.f32 1.0, %v1377_v25  ;;  %v5920_v23 = vand.u32 2147483647, %v5902_v24  ;;  %v970_v37 = vpop.f32.mrf.mxu1 }
 0x34d   : > { %v2584_v2 = vmul.f32 %v2520_v57, %v5741_v5  ;;  %v1948_v46 = vadd.f32 -0.28449672, %v1884_v50  ;;  %v1821_v48 = vadd.f32 1.4214138, %v1757_v17  ;;  %v5924_v32 = vmul.f32 0.5, %v5752_v35  ;;  %v6938_v5 = vld [vmem:[#allocation88_spill] sm:$0xff] }
 0x34e   : > { %v5927_v38 = vmul.f32 %v2647_v1, %v5695_v56  ;;  %v2377_v28 = vmul.f32 1.442695, %v2269_v63  ;;  %v1694_v34 = vadd.f32 -1.4531521, %v1630_v36  ;;  %v1378_v26 = vmul.f32 0.3275911, %v5920_v23 }
 0x34f   : > { %v2075_v60 = vadd.f32 0.2548296, %v2011_v45  ;;  %vm1182_vm13 = vcmp.lt.f32.partialorder %v5770_v29, 0.0  ;;  %v5932_v4 = vmul.f32 0.70710677, %v5916_v62  ;;  %v2760_v7 = vadd.f32 %v6938_v5, %v6937_v20 }
 0x350   : > { %v5936_v11 = vpop.eup %3529  ;;  %v2521_v35 = vsub.f32 1.0, %v2457_v40  ;;  %v2458_v25 = vmul.f32 %v3528_v52, %v2138_v59  ;;  %v2206_v56 = vsub.f32 0.0, %v5792_v12  ;;  %3537 = vrcp.f32 %v1441_v53 }
 0x351   : > { %v2012_v13 = vmul.f32 %v5816_v22, %v1948_v46  ;;  %v1885_v57 = vmul.f32 %v5847_v10, %v1821_v48  ;;  %v1442_v50 = vadd.f32 1.0, %v1378_v26  ;;  %v5942_v29 = vand.u32 2147483647, %v5932_v4  ;;  %2959 = vmatprep.mubr.f32.mxu0 %v2760_v7 }
 0x352   : > { %v2648_v17 = vadd.f32 1.0, %v2584_v2  ;;  %v5945_v1 = vsel %vm1182_vm13, -1.0, %v6844_v14  ;;  %v1758_v63 = vmul.f32 %v5891_v9, %v1694_v34  ;;  %v5949_v52 = vadd.f32 %v970_v37, %v4429_v8  ;;  %v6939_v37 = vld [vmem:[#allocation37_spill] sm:$0xff] }
 0x353   : > { %v3532_v36 = vpop.eup %3531  ;;  %v2139_v45 = vmul.f32 %v5784_v0, %v2075_v60  ;;  %3539 = vpow2.f32 %v2377_v28  ;;  %vm1183_vm14 = vcmp.lt.f32.partialorder %v5799_v43, 0.0  ;;  %v1631_v40 = vmul.f32 1.0614054, %v5936_v11 }
 0x354   : > { %v2585_v59 = vmul.f32 %v2521_v35, %v5776_v33  ;;  %v2270_v53 = vmul.f32 %v2206_v56, %v5792_v12  ;;  %v2207_v2 = vsub.f32 0.0, %v5820_v54  ;;  %v1379_v46 = vmul.f32 0.3275911, %v5942_v29  ;;  %v6940_v35 = vld [vmem:[#allocation84_spill] sm:$0xff] }
 0x355   : > { %v5958_v48 = vpop.eup %3533  ;;  %v2522_v34 = vsub.f32 1.0, %v2458_v25  ;;  %v2076_v26 = vadd.f32 0.2548296, %v2012_v13  ;;  %v1949_v20 = vadd.f32 -0.28449672, %v1885_v57  ;;  %3541 = vrcp.f32 %v1442_v50  ;;  %v974_v25 = vpop.f32.mrf.mxu1 }
 0x356   : > { %v1822_v0 = vadd.f32 1.4214138, %v1758_v63  ;;  %v5961_v28 = vmul.f32 0.5, %v5782_v42  ;;  %v1443_v60 = vadd.f32 1.0, %v1379_v46  ;;  %v5964_v5 = vmul.f32 0.70710677, %v5949_v52 }
 0x357   : > { %v5967_v33 = vmul.f32 %v2648_v17, %v5721_v16  ;;  %v2459_v12 = vmul.f32 %v3532_v36, %v2139_v45  ;;  %v1695_v7 = vadd.f32 -1.4531521, %v1631_v40  ;;  %v2759_v56 = vadd.f32 %v6940_v35, %v6939_v37 }
 0x358   : > { %v3536_v13 = vpop.eup %3535  ;;  %v2379_v57 = vmul.f32 1.442695, %v2270_v53  ;;  %v5974_v42 = vsel %vm1183_vm14, -1.0, %v6844_v14  ;;  %v2271_v50 = vmul.f32 %v2207_v2, %v5820_v54  ;;  %v1632_v63 = vmul.f32 1.0614054, %v5958_v48  ;;  %v6942_v2 = vld [vmem:[#allocation83_spill] sm:$0xff] }
 0x359   : > { %v2649_v46 = vadd.f32 1.0, %v2585_v59  ;;  %v2586_v16 = vmul.f32 %v2522_v34, %v5811_v15  ;;  %v2140_v17 = vmul.f32 %v5816_v22, %v2076_v26  ;;  %v2013_v36 = vmul.f32 %v5847_v10, %v1949_v20  ;;  %2960 = vmatmul.mubr.f32.gmra.mxu0 %v2759_v56  ;;  %v6941_v15 = vld [vmem:[#allocation38_spill] sm:$0xff] }
 0x35a   : > { %v1886_v45 = vmul.f32 %v5891_v9, %v1822_v0  ;;  %3543 = vrcp.f32 %v1443_v60  ;;  %v5983_v40 = vand.u32 2147483647, %v5964_v5  ;;  %v5986_v43 = vadd.f32 %v974_v25, %v4424_v6 }
 0x35b   : > { %v2523_v54 = vsub.f32 1.0, %v2459_v12  ;;  %v1759_v53 = vmul.f32 %v5936_v11, %v1695_v7  ;;  %v2208_v59 = vsub.f32 0.0, %v5857_v55  ;;  %v2762_v22 = vadd.f32 %v6942_v2, %v6941_v15  ;;  %v976_v7 = vpop.f32.mrf.mxu1 }
 0x35c   : > { %3545 = vpow2.f32 %v2379_v57  ;;  %v5993_v34 = vmul.f32 0.5, %v5823_v47  ;;  %v1696_v26 = vadd.f32 -1.4531521, %v1632_v63  ;;  %v1380_v20 = vmul.f32 0.3275911, %v5983_v40 }
 0x35d   : > { %v5996_v0 = vpop.eup %3537  ;;  %v5999_v60 = vmul.f32 %v2649_v46, %v5765_v61  ;;  %v2077_v12 = vadd.f32 0.2548296, %v2013_v36  ;;  %v2381_v37 = vmul.f32 1.442695, %v2271_v50  ;;  %vm1184_vm15 = vcmp.lt.f32.partialorder %v5837_v19, 0.0  ;;  %2964 = vmatprep.mubr.f32.mxu0 %v2762_v22 }
 0x35e   : > { %v2460_v35 = vmul.f32 %v3536_v13, %v2140_v17  ;;  %v1950_v56 = vadd.f32 -0.28449672, %v1886_v45  ;;  %v1444_v25 = vadd.f32 1.0, %v1380_v20  ;;  %v6003_v47 = vmul.f32 0.70710677, %v5986_v43 }
 0x35f   : > { %6943 = vst [vmem:[#allocation79_spill] sm:$0xff] %v5999_v60  ;;  %v2650_v57 = vadd.f32 1.0, %v2586_v16  ;;  %v2587_v63 = vmul.f32 %v2523_v54, %v5843_v58  ;;  %v1823_v15 = vadd.f32 1.4214138, %v1759_v53  ;;  %v2272_v2 = vmul.f32 %v2208_v59, %v5857_v55 }
 0x360   : > { %v3540_v61 = vpop.eup %3539  ;;  %v6008_v46 = vsel %vm1184_vm15, -1.0, %v6844_v14  ;;  %v1760_v19 = vmul.f32 %v5958_v48, %v1696_v26  ;;  %v1633_v50 = vmul.f32 1.0614054, %v5996_v0  ;;  %v6013_v13 = vadd.f32 %v976_v7, %v4429_v8 }
 0x361   : > { %v2141_v17 = vmul.f32 %v5847_v10, %v2077_v12  ;;  %3547 = vpow2.f32 %v2381_v37  ;;  %v6017_v16 = vmul.f32 0.5, %v5860_v27  ;;  %v2209_v58 = vsub.f32 0.0, %v5879_v41 }
 0x362   : > { %v6020_v55 = vpop.eup %3541  ;;  %v2524_v36 = vsub.f32 1.0, %v2460_v35  ;;  %v2014_v45 = vmul.f32 %v5891_v9, %v1950_v56  ;;  %3549 = vrcp.f32 %v1444_v25  ;;  %v6024_v54 = vand.u32 2147483647, %v6003_v47  ;;  %v6944_v35 = vld [vmem:[#allocation39_spill] sm:$0xff]  ;;  %v6945_v56 = vld [vmem:[#allocation17_spill] sm:$0xff] }
 0x363   : > { %v2651_v53 = vadd.f32 1.0, %v2587_v63  ;;  %v1887_v59 = vmul.f32 %v5936_v11, %v1823_v15  ;;  %v2383_v22 = vmul.f32 1.442695, %v2272_v2  ;;  %vm1185_vm0 = vcmp.lt.f32.partialorder %v5871_v39, 0.0 }
 0x364   : > { %v6029_v10 = vmul.f32 %v2650_v57, %v5779_v49  ;;  %v1824_v27 = vadd.f32 1.4214138, %v1760_v19  ;;  %v1697_v26 = vadd.f32 -1.4531521, %v1633_v50  ;;  %v6032_v20 = vmul.f32 0.70710677, %v6013_v13 }
 0x365   : > { %v2461_v12 = vmul.f32 %v3540_v61, %v2141_v17  ;;  %v2273_v37 = vmul.f32 %v2209_v58, %v5879_v41  ;;  %v1634_v7 = vmul.f32 1.0614054, %v6020_v55  ;;  %v2761_v25 = vadd.f32 %v6945_v56, %v6944_v35  ;;  %v980_v17 = vpop.f32.mrf.mxu1 }
 0x366   : > { %v2588_v63 = vmul.f32 %v2524_v36, %v5888_v3  ;;  %v2078_v15 = vadd.f32 0.2548296, %v2014_v45  ;;  %v6040_v39 = vsel %vm1185_vm0, -1.0, %v6844_v14  ;;  %v1381_v49 = vmul.f32 0.3275911, %v6024_v54 }
 0x367   : > { %v6043_v57 = vpop.eup %3543  ;;  %v1951_v2 = vadd.f32 -0.28449672, %v1887_v59  ;;  %vm1186_vm1 = vcmp.lt.f32.partialorder %v5902_v24, 0.0  ;;  %v2210_v41 = vsub.f32 0.0, %v5920_v23  ;;  %v6048_v61 = vand.u32 2147483647, %v6032_v20  ;;  %2965 = vmatmul.mubr.f32.gmra.mxu0 %v2761_v25 }
 0x368   : > { %v6051_v19 = vmul.f32 %v2651_v53, %v5814_v51  ;;  %v1888_v3 = vmul.f32 %v5958_v48, %v1824_v27  ;;  %3551 = vpow2.f32 %v2383_v22  ;;  %v1761_v50 = vmul.f32 %v5996_v0, %v1697_v26 }
 0x369   : > { %v3546_v58 = vpop.eup %3545  ;;  %v2525_v36 = vsub.f32 1.0, %v2461_v12  ;;  %v2385_v45 = vmul.f32 1.442695, %v2273_v37  ;;  %v6056_v24 = vmul.f32 0.5, %v5882_v30  ;;  %v1698_v59 = vadd.f32 -1.4531521, %v1634_v7 }
 0x36a   : > { %6946 = vst [vmem:[#allocation23_spill] sm:$0xff] %v6051_v19  ;;  %v2142_v35 = vmul.f32 %v5891_v9, %v2078_v15  ;;  %v6060_v56 = vsel %vm1186_vm1, -1.0, %v6844_v14  ;;  %v1635_v51 = vmul.f32 1.0614054, %v6043_v57  ;;  %v1445_v53 = vadd.f32 1.0, %v1381_v49  ;;  %v6947_v7 = vld [vmem:[#allocation40_spill] sm:$0xff]  ;;  %v982_v19 = vpop.f32.mrf.mxu1 }
 0x36b   : > { %v2652_v27 = vadd.f32 1.0, %v2588_v63  ;;  %v2015_v22 = vmul.f32 %v5936_v11, %v1951_v2  ;;  %v2274_v26 = vmul.f32 %v2210_v41, %v5920_v23  ;;  %v1382_v12 = vmul.f32 0.3275911, %v6048_v61  ;;  %v6948_v9 = vld [vmem:[#allocation86_spill] sm:$0xff] }
 0x36c   : > { %v1952_v37 = vadd.f32 -0.28449672, %v1888_v3  ;;  %v1825_v25 = vadd.f32 1.4214138, %v1761_v50  ;;  %v6067_v30 = vadd.f32 %v980_v17, %v4424_v6  ;;  %v2764_v15 = vadd.f32 %v6948_v9, %v6947_v7 }
 0x36d   : > { %v2589_v60 = vmul.f32 %v2525_v36, %v5913_v31  ;;  %3553 = vpow2.f32 %v2385_v45  ;;  %v1762_v63 = vmul.f32 %v6020_v55, %v1698_v59  ;;  %v6074_v49 = vmul.f32 0.5, %v5916_v62 }
 0x36e   : > { %v3548_v23 = vpop.eup %3547  ;;  %v2462_v2 = vmul.f32 %v3546_v58, %v2142_v35  ;;  %v1699_v41 = vadd.f32 -1.4531521, %v1635_v51  ;;  %v2211_v3 = vsub.f32 0.0, %v5942_v29  ;;  %3555 = vrcp.f32 %v1445_v53  ;;  %2969 = vmatprep.mubr.f32.mxu0 %v2764_v15 }
 0x36f   : > { %v6077_v50 = vpop.eup %3549  ;;  %v2079_v17 = vadd.f32 0.2548296, %v2015_v22  ;;  %vm1187_vm2 = vcmp.lt.f32.partialorder %v5932_v4, 0.0  ;;  %v1446_v7 = vadd.f32 1.0, %v1382_v12  ;;  %v6081_v31 = vadd.f32 %v982_v19, %v4429_v8 }
 0x370   : > { %v2016_v36 = vmul.f32 %v5958_v48, %v1952_v37  ;;  %v1889_v62 = vmul.f32 %v5996_v0, %v1825_v25  ;;  %v2387_v45 = vmul.f32 1.442695, %v2274_v26  ;;  %v6086_v58 = vmul.f32 0.70710677, %v6067_v30 }
 0x371   : > { %v6089_v59 = vmul.f32 %v2652_v27, %v5853_v21  ;;  %v2653_v35 = vadd.f32 1.0, %v2589_v60  ;;  %v1826_v51 = vadd.f32 1.4214138, %v1762_v63  ;;  %v6092_v53 = vmul.f32 0.70710677, %v6081_v31 }
 0x372   : > { %v2526_v22 = vsub.f32 1.0, %v2462_v2  ;;  %v1763_v19 = vmul.f32 %v6043_v57, %v1699_v41  ;;  %v2275_v12 = vmul.f32 %v2211_v3, %v5942_v29  ;;  %v1636_v37 = vmul.f32 1.0614054, %v6077_v50  ;;  %v986_v29 = vpop.f32.mrf.mxu1 }
 0x373   : > { %6949 = vst [vmem:[#allocation81_spill] sm:$0xff] %v6089_v59  ;;  %v2143_v26 = vmul.f32 %v5936_v11, %v2079_v17  ;;  %v6101_v25 = vsel %vm1187_vm2, -1.0, %v6844_v14  ;;  %3557 = vrcp.f32 %v1446_v7  ;;  %v6104_v21 = vand.u32 2147483647, %v6092_v53 }
 0x374   : > { %v2080_v60 = vadd.f32 0.2548296, %v2016_v36  ;;  %v1953_v27 = vadd.f32 -0.28449672, %v1889_v62  ;;  %3559 = vpow2.f32 %v2387_v45  ;;  %v6107_v9 = vand.u32 2147483647, %v6086_v58 }
 0x375   : > { %v3552_v15 = vpop.eup %3551  ;;  %v6110_v63 = vmul.f32 %v2653_v35, %v5905_v18  ;;  %v1890_v11 = vmul.f32 %v6020_v55, %v1826_v51  ;;  %v6114_v4 = vmul.f32 0.5, %v5949_v52  ;;  %v1384_v2 = vmul.f32 0.3275911, %v6104_v21  ;;  %v6951_v45 = vld [vmem:[#allocation41_spill] sm:$0xff]  ;;  %v6952_v18 = vld [vmem:[#allocation18_spill] sm:$0xff] }
 0x376   : > { %v2590_v41 = vmul.f32 %v2526_v22, %v5945_v1  ;;  %v1827_v3 = vadd.f32 1.4214138, %v1763_v19  ;;  %v2389_v17 = vmul.f32 1.442695, %v2275_v12  ;;  %v1700_v7 = vadd.f32 -1.4531521, %v1636_v37  ;;  %v988_v1 = vpop.f32.mrf.mxu1 }
 0x377   : > { %6950 = vst [vmem:[#allocation24_spill] sm:$0xff] %v6110_v63  ;;  %v2463_v36 = vmul.f32 %v3548_v23, %v2143_v26  ;;  %vm1188_vm3 = vcmp.lt.f32.partialorder %v5964_v5, 0.0  ;;  %v2212_v62 = vsub.f32 0.0, %v5983_v40  ;;  %v2763_v35 = vadd.f32 %v6952_v18, %v6951_v45  ;;  %v6954_v37 = vld [vmem:[#allocation42_spill] sm:$0xff]  ;;  %v6955_v26 = vld [vmem:[#allocation85_spill] sm:$0xff] }
 0x378   : > { %v2144_v51 = vmul.f32 %v5958_v48, %v2080_v60  ;;  %v2017_v52 = vmul.f32 %v5996_v0, %v1953_v27  ;;  %v2213_v63 = vsub.f32 0.0, %v6024_v54  ;;  %v1383_v59 = vmul.f32 0.3275911, %v6107_v9  ;;  %v6126_v22 = vpop.f32.mrf.mxu0 }
 0x379   : > { %6953 = vst [vmem:[#allocation91_spill] sm:$0xff] %v6126_v22  ;;  %v1954_v19 = vadd.f32 -0.28449672, %v1890_v11  ;;  %v1448_v23 = vadd.f32 1.0, %v1384_v2  ;;  %2970 = vmatmul.mubr.f32.gmra.mxu0 %v2763_v35  ;;  %v6129_v12 = vadd.f32 %v986_v29, %v4424_v6  ;;  %v2766_v45 = vadd.f32 %v6955_v26, %v6954_v37 }
 0x37a   : > { %v3554_v18 = vpop.eup %3553  ;;  %v2654_v48 = vadd.f32 1.0, %v2590_v41  ;;  %v1891_v60 = vmul.f32 %v6043_v57, %v1827_v3  ;;  %v6137_v27 = vsel %vm1188_vm3, -1.0, %v6844_v14  ;;  %v1764_v22 = vmul.f32 %v6077_v50, %v1700_v7  ;;  %v2908_v11 = vpop.f32.mrf.mxu0 }
 0x37b   : > { %v6140_v2 = vpop.eup %3555  ;;  %v2527_v35 = vsub.f32 1.0, %v2463_v36  ;;  %v2276_v29 = vmul.f32 %v2212_v62, %v5983_v40  ;;  %vm1189_vm4 = vcmp.lt.f32.partialorder %v6003_v47, 0.0  ;;  %2974 = vmatprep.mubr.f32.mxu0 %v2766_v45  ;;  %v6145_v41 = vadd.f32 %v988_v1, %v4429_v8  ;;  %v6959_v47 = vld [vmem:[#allocation43_spill] sm:$0xff] }
 0x37c   : > { %v2464_v3 = vmul.f32 %v3552_v15, %v2144_v51  ;;  %v2277_v37 = vmul.f32 %v2213_v63, %v6024_v54  ;;  %v1447_v5 = vadd.f32 1.0, %v1383_v59  ;;  %v6149_v26 = vmul.f32 0.70710677, %v6129_v12 }
 0x37d   : > { %6956 = vst [vmem:[#allocation25_spill] sm:$0xff] %v6145_v41  ;;  %v2081_v7 = vadd.f32 0.2548296, %v2017_v52  ;;  %v2018_v11 = vmul.f32 %v6020_v55, %v1954_v19  ;;  %3561 = vrcp.f32 %v1448_v23  ;;  %v6153_v36 = vmul.f32 0.70710677, %v6145_v41 }
 0x37e   : > { %v1955_v40 = vadd.f32 -0.28449672, %v1891_v60  ;;  %3563 = vpow2.f32 %v2389_v17  ;;  %v1828_v62 = vadd.f32 1.4214138, %v1764_v22  ;;  %v1637_v1 = vmul.f32 1.0614054, %v6140_v2 }
 0x37f   : > { %v6157_v15 = vmul.f32 %v2654_v48, %v5924_v32  ;;  %v2591_v54 = vmul.f32 %v2527_v35, %v5974_v42  ;;  %v2391_v59 = vmul.f32 1.442695, %v2276_v29  ;;  %v6161_v63 = vmul.f32 0.5, %v5986_v43  ;;  %v6960_v35 = vld [vmem:[#allocation19_spill] sm:$0xff] }
 0x380   : > { %v6163_v51 = vpop.eup %3557  ;;  %v2528_v52 = vsub.f32 1.0, %v2464_v3  ;;  %v6168_v19 = vsel %vm1189_vm4, -1.0, %v6844_v14  ;;  %3565 = vrcp.f32 %v1447_v5  ;;  %v6171_v17 = vand.u32 2147483647, %v6149_v26 }
 0x381   : > { %6957 = vst [vmem:[#allocation90_spill] sm:$0xff] %v6157_v15  ;;  %6958 = vst [vmem:[#allocation26_spill] sm:$0xff] %v6161_v63  ;;  %v3560_v32 = vpop.eup %3559  ;;  %v2145_v22 = vmul.f32 %v5996_v0, %v2081_v7  ;;  %v2082_v42 = vadd.f32 0.2548296, %v2018_v11  ;;  %v2393_v23 = vmul.f32 1.442695, %v2277_v37  ;;  %v2019_v45 = vmul.f32 %v6043_v57, %v1955_v40  ;;  %v992_v7 = vpop.f32.mrf.mxu1 }
 0x382   : > { %v6175_v43 = vand.u32 2147483647, %v6153_v36  ;;  %v1892_v48 = vmul.f32 %v6077_v50, %v1828_v62  ;;  %v1701_v60 = vadd.f32 -1.4531521, %v1637_v1  ;;  %v2765_v29 = vadd.f32 %v6960_v35, %v6959_v47 }
 0x383   : > { %v2655_v3 = vadd.f32 1.0, %v2591_v54  ;;  %v1638_v5 = vmul.f32 1.0614054, %v6163_v51  ;;  %v2214_v41 = vsub.f32 0.0, %v6048_v61  ;;  %v2592_v37 = vmul.f32 %v2528_v52, %v6008_v46 }
 0x384   : > { %v1386_v0 = vmul.f32 0.3275911, %v6175_v43  ;;  %3567 = vpow2.f32 %v2391_v59  ;;  %v6186_v11 = vmul.f32 0.5, %v6013_v13  ;;  %v1385_v40 = vmul.f32 0.3275911, %v6171_v17  ;;  %2975 = vmatmul.mubr.f32.gmra.mxu0 %v2765_v29 }
 0x385   : > { %v2465_v62 = vmul.f32 %v3554_v18, %v2145_v22  ;;  %v2146_v1 = vmul.f32 %v6020_v55, %v2082_v42  ;;  %vm1190_vm5 = vcmp.lt.f32.partialorder %v6032_v20, 0.0  ;;  %v2083_v47 = vadd.f32 0.2548296, %v2019_v45  ;;  %v994_v22 = vpop.f32.mrf.mxu1 }
 0x386   : > { %v1450_v54 = vadd.f32 1.0, %v1386_v0  ;;  %v1956_v35 = vadd.f32 -0.28449672, %v1892_v48  ;;  %v1765_v63 = vmul.f32 %v6140_v2, %v1701_v60  ;;  %v6193_v15 = vadd.f32 %v992_v7, %v4424_v6  ;;  %v6962_v48 = vld [vmem:[#allocation44_spill] sm:$0xff]  ;;  %v6963_v60 = vld [vmem:[#allocation78_spill] sm:$0xff] }
 0x387   : > { %v6196_v46 = vmul.f32 %v2655_v3, %v5961_v28  ;;  %3569 = vpow2.f32 %v2393_v23  ;;  %v1702_v13 = vadd.f32 -1.4531521, %v1638_v5  ;;  %v2278_v59 = vmul.f32 %v2214_v41, %v6048_v61  ;;  %v6965_v7 = vld [vmem:[#allocation46_spill] sm:$0xff] }
 0x388   : > { %6961 = vst [vmem:[#allocation93_spill] sm:$0xff] %v6193_v15  ;;  %v2656_v18 = vadd.f32 1.0, %v2592_v37  ;;  %v6200_v55 = vsel %vm1190_vm5, -1.0, %v6844_v14  ;;  %v6203_v20 = vmul.f32 0.5, %v6067_v30  ;;  %v1449_v52 = vadd.f32 1.0, %v1385_v40  ;;  %v6966_v37 = vld [vmem:[#allocation20_spill] sm:$0xff] }
 0x389   : > { %v2529_v42 = vsub.f32 1.0, %v2465_v62  ;;  %v2466_v45 = vmul.f32 %v3560_v32, %v2146_v1  ;;  %3571 = vrcp.f32 %v1450_v54  ;;  %v2768_v28 = vadd.f32 %v6963_v60, %v6962_v48  ;;  %v998_v60 = vpop.f32.mrf.mxu1 }
 0x38a   : > { %v6207_v29 = vpop.eup %3561  ;;  %v2147_v23 = vmul.f32 %v6043_v57, %v2083_v47  ;;  %v2020_v61 = vmul.f32 %v6077_v50, %v1956_v35  ;;  %v1829_v41 = vadd.f32 1.4214138, %v1765_v63  ;;  %v6212_v3 = vmul.f32 0.70710677, %v6193_v15 }
 0x38b   : > { %v3564_v30 = vpop.eup %3563  ;;  %v1766_v5 = vmul.f32 %v6163_v51, %v1702_v13  ;;  %v2395_v0 = vmul.f32 1.442695, %v2278_v59  ;;  %2979 = vmatprep.mubr.f32.mxu0 %v2768_v28  ;;  %v6216_v32 = vadd.f32 %v994_v22, %v4429_v8  ;;  %v2767_v40 = vadd.f32 %v6966_v37, %v6965_v7 }
 0x38c   : > { %vm1191_vm6 = vcmp.lt.f32.partialorder %v6086_v58, 0.0  ;;  %v2215_v57 = vsub.f32 0.0, %v6107_v9  ;;  %3573 = vrcp.f32 %v1449_v52  ;;  %v6223_v63 = vand.u32 2147483647, %v6212_v3 }
 0x38d   : > { %6964 = vst [vmem:[#allocation27_spill] sm:$0xff] %v6216_v32  ;;  %v6225_v62 = vpop.eup %3565  ;;  %v6228_v1 = vmul.f32 %v2656_v18, %v5993_v34  ;;  %v2593_v54 = vmul.f32 %v2529_v42, %v6040_v39  ;;  %v2530_v47 = vsub.f32 1.0, %v2466_v45  ;;  %v1640_v35 = vmul.f32 1.0614054, %v6207_v29  ;;  %2980 = vmatmul.mubr.f32.gmra.mxu0 %v2767_v40  ;;  %v6232_v13 = vpop.f32.mrf.mxu0 }
 0x38e   : > { %v2467_v59 = vmul.f32 %v3564_v30, %v2147_v23  ;;  %v2084_v22 = vadd.f32 0.2548296, %v2020_v61  ;;  %v1893_v52 = vmul.f32 %v6140_v2, %v1829_v41  ;;  %v1387_v48 = vmul.f32 0.3275911, %v6223_v63 }
 0x38f   : > { %v1830_v28 = vadd.f32 1.4214138, %v1766_v5  ;;  %3575 = vpow2.f32 %v2395_v0  ;;  %v6239_v34 = vsel %vm1191_vm6, -1.0, %v6844_v14  ;;  %v6242_v39 = vmul.f32 0.70710677, %v6216_v32  ;;  %v2913_v18 = vpop.f32.mrf.mxu0 }
 0x390   : > { %v1639_v42 = vmul.f32 1.0614054, %v6225_v62  ;;  %v2279_v45 = vmul.f32 %v2215_v57, %v6107_v9  ;;  %v2216_v23 = vsub.f32 0.0, %v6104_v21  ;;  %v1451_v61 = vadd.f32 1.0, %v1387_v48 }
 0x391   : > { %v3568_v41 = vpop.eup %3567  ;;  %v2594_v30 = vmul.f32 %v2530_v47, %v6060_v56  ;;  %v1704_v5 = vadd.f32 -1.4531521, %v1640_v35  ;;  %v6249_v0 = vand.u32 2147483647, %v6242_v39  ;;  %v6252_v58 = vadd.f32 %v998_v60, %v4424_v6 }
 0x392   : > { %v2657_v7 = vadd.f32 1.0, %v2593_v54  ;;  %v2531_v37 = vsub.f32 1.0, %v2467_v59  ;;  %v2148_v40 = vmul.f32 %v6077_v50, %v2084_v22  ;;  %v1957_v18 = vadd.f32 -0.28449672, %v1893_v52 }
 0x393   : > { %6967 = vst [vmem:[#allocation92_spill] sm:$0xff] %v6252_v58  ;;  %v1894_v9 = vmul.f32 %v6163_v51, %v1830_v28  ;;  %v6257_v57 = vmul.f32 0.5, %v6081_v31  ;;  %vm1192_vm7 = vcmp.lt.f32.partialorder %v6092_v53, 0.0  ;;  %v1388_v56 = vmul.f32 0.3275911, %v6249_v0 }
 0x394   : > { %v6261_v47 = vpop.eup %3569  ;;  %v1703_v35 = vadd.f32 -1.4531521, %v1639_v42  ;;  %v2397_v48 = vmul.f32 1.442695, %v2279_v45  ;;  %v2280_v60 = vmul.f32 %v2216_v23, %v6104_v21  ;;  %3577 = vrcp.f32 %v1451_v61 }
 0x395   : > { %v2658_v54 = vadd.f32 1.0, %v2594_v30  ;;  %v1768_v50 = vmul.f32 %v6207_v29, %v1704_v5  ;;  %v1452_v59 = vadd.f32 1.0, %v1388_v56  ;;  %v6266_v22 = vmul.f32 0.70710677, %v6252_v58 }
 0x396   : > { %v6268_v31 = vpop.eup %3571  ;;  %v6271_v52 = vmul.f32 %v2657_v7, %v6017_v16  ;;  %v2595_v28 = vmul.f32 %v2531_v37, %v6101_v25  ;;  %v2468_v15 = vmul.f32 %v3568_v41, %v2148_v40  ;;  %v2021_v42 = vmul.f32 %v6140_v2, %v1957_v18  ;;  %v1000_v40 = vpop.f32.mrf.mxu1 }
 0x397   : > { %6968 = vst [vmem:[#allocation28_spill] sm:$0xff] %v6266_v22  ;;  %v1958_v45 = vadd.f32 -0.28449672, %v1894_v9  ;;  %v2217_v21 = vsub.f32 0.0, %v6171_v17  ;;  %3579 = vrcp.f32 %v1452_v59  ;;  %v6277_v23 = vand.u32 2147483647, %v6266_v22 }
 0x398   : > { %v1767_v61 = vmul.f32 %v6225_v62, %v1703_v35  ;;  %3581 = vpow2.f32 %v2397_v48  ;;  %v6283_v16 = vsel %vm1192_vm7, -1.0, %v6844_v14  ;;  %v2399_v30 = vmul.f32 1.442695, %v2280_v60  ;;  %v6970_v59 = vld [vmem:[#allocation45_spill] sm:$0xff] }
 0x399   : > { %v6285_v25 = vpop.eup %3573  ;;  %v6288_v41 = vmul.f32 %v2658_v54, %v6056_v24  ;;  %v1832_v5 = vadd.f32 1.4214138, %v1768_v50  ;;  %v1642_v7 = vmul.f32 1.0614054, %v6268_v31  ;;  %v1389_v37 = vmul.f32 0.3275911, %v6277_v23 }
 0x39a   : > { %v2659_v18 = vadd.f32 1.0, %v2595_v28  ;;  %v2532_v9 = vsub.f32 1.0, %v2468_v15  ;;  %v2085_v56 = vadd.f32 0.2548296, %v2021_v42  ;;  %v6293_v35 = vmul.f32 0.5, %v6129_v12  ;;  %v6971_v24 = vld [vmem:[#allocation87_spill] sm:$0xff] }
 0x39b   : > { %v2022_v53 = vmul.f32 %v6163_v51, %v1958_v45  ;;  %v2281_v48 = vmul.f32 %v2217_v21, %v6171_v17  ;;  %v1453_v60 = vadd.f32 1.0, %v1389_v37  ;;  %v2770_v54 = vadd.f32 %v6971_v24, %v6970_v59  ;;  %v6299_v50 = vpop.f32.mrf.mxu0  ;;  %v6973_v17 = vld [vmem:[#allocation48_spill] sm:$0xff]  ;;  %v6974_v45 = vld [vmem:[#allocation21_spill] sm:$0xff]  ;;  %v1004_v37 = vpop.f32.mrf.mxu1 }
 0x39c   : > { %6969 = vst [vmem:[#allocation95_spill] sm:$0xff] %v6293_v35  ;;  %v3576_v58 = vpop.eup %3575  ;;  %v1831_v32 = vadd.f32 1.4214138, %v1767_v61  ;;  %vm1193_vm8 = vcmp.lt.f32.partialorder %v6149_v26, 0.0  ;;  %v1641_v15 = vmul.f32 1.0614054, %v6285_v25  ;;  %v6304_v28 = vadd.f32 %v1000_v40, %v4429_v8 }
 0x39d   : > { %v1896_v12 = vmul.f32 %v6207_v29, %v1832_v5  ;;  %v1706_v42 = vadd.f32 -1.4531521, %v1642_v7  ;;  %3583 = vrcp.f32 %v1453_v60  ;;  %2984 = vmatprep.mubr.f32.mxu0 %v2770_v54  ;;  %v2769_v21 = vadd.f32 %v6974_v45, %v6973_v17  ;;  %v2918_v59 = vpop.f32.mrf.mxu0  ;;  %v6975_v7 = vld [vmem:[#allocation47_spill] sm:$0xff]  ;;  %v6976_v60 = vld [vmem:[#allocation22_spill] sm:$0xff] }
 0x39e   : > { %6972 = vst [vmem:[#allocation29_spill] sm:$0xff] %v6304_v28  ;;  %v2596_v24 = vmul.f32 %v2532_v9, %v6137_v27  ;;  %v2149_v61 = vmul.f32 %v6140_v2, %v2085_v56  ;;  %vm1194_vm9 = vcmp.lt.f32.partialorder %v6153_v36, 0.0  ;;  %v2218_v35 = vsub.f32 0.0, %v6175_v43 }
 0x39f   : > { %v2086_v40 = vadd.f32 0.2548296, %v2022_v53  ;;  %v2401_v22 = vmul.f32 1.442695, %v2281_v48  ;;  %v6314_v5 = vmul.f32 0.70710677, %v6304_v28  ;;  %2985 = vmatmul.mubr.f32.gmra.mxu0 %v2769_v21  ;;  %v2772_v54 = vadd.f32 %v6976_v60, %v6975_v7  ;;  %v1006_v21 = vpop.f32.mrf.mxu1 }
 0x3a0   : > { %v1895_v17 = vmul.f32 %v6225_v62, %v1831_v32  ;;  %3585 = vpow2.f32 %v2399_v30  ;;  %v1705_v45 = vadd.f32 -1.4531521, %v1641_v15  ;;  %v6320_v27 = vadd.f32 %v1004_v37, %v4424_v6 }
 0x3a1   : > { %v6322_v2 = vpop.eup %3577  ;;  %v1960_v9 = vadd.f32 -0.28449672, %v1896_v12  ;;  %v6327_v56 = vsel %vm1193_vm8, -1.0, %v6844_v14  ;;  %v1770_v53 = vmul.f32 %v6268_v31, %v1706_v42  ;;  %v6331_v48 = vand.u32 2147483647, %v6314_v5  ;;  %2989 = vmatprep.mubr.f32.mxu0 %v2772_v54 }
 0x3a2   : > { %6977 = vst [vmem:[#allocation94_spill] sm:$0xff] %v6320_v27  ;;  %v6334_v32 = vmul.f32 %v2659_v18, %v6074_v49  ;;  %v2469_v6 = vmul.f32 %v6261_v47, %v2149_v61  ;;  %v6340_v30 = vsel %vm1194_vm9, -1.0, %v6844_v14  ;;  %v2282_v26 = vmul.f32 %v2218_v35, %v6175_v43 }
 0x3a3   : > { %v2660_v15 = vadd.f32 1.0, %v2596_v24  ;;  %v2150_v12 = vmul.f32 %v6163_v51, %v2086_v40  ;;  %3587 = vpow2.f32 %v2401_v22  ;;  %v1390_v42 = vmul.f32 0.3275911, %v6331_v48 }
 0x3a4   : > { %v6345_v37 = vpop.eup %3579  ;;  %v1959_v49 = vadd.f32 -0.28449672, %v1895_v17  ;;  %v1769_v18 = vmul.f32 %v6285_v25, %v1705_v45  ;;  %v1643_v47 = vmul.f32 1.0614054, %v6322_v2  ;;  %v6350_v36 = vmul.f32 0.70710677, %v6320_v27 }
 0x3a5   : > { %v6352_v59 = vpop.eup %3581  ;;  %v2024_v43 = vmul.f32 %v6207_v29, %v1960_v9  ;;  %v1834_v35 = vadd.f32 1.4214138, %v1770_v53  ;;  %v1644_v51 = vmul.f32 1.0614054, %v6345_v37  ;;  %v1454_v22 = vadd.f32 1.0, %v1390_v42  ;;  %v6356_v24 = vpop.f32.mrf.mxu0 }
 0x3a6   : > { %6978 = vst [vmem:[#allocation30_spill] sm:$0xff] %v6350_v36  ;;  %v2533_v61 = vsub.f32 1.0, %v2469_v6  ;;  %v2403_v40 = vmul.f32 1.442695, %v2282_v26  ;;  %v6359_v7 = vand.u32 2147483647, %v6350_v36  ;;  %v6362_v60 = vadd.f32 %v1006_v21, %v4429_v8 }
 0x3a7   : > { %v2470_v54 = vmul.f32 %v3576_v58, %v2150_v12  ;;  %v2219_v17 = vsub.f32 0.0, %v6223_v63  ;;  %v1708_v45 = vadd.f32 -1.4531521, %v1644_v51  ;;  %3589 = vrcp.f32 %v1454_v22  ;;  %v2923_v9 = vpop.f32.mrf.mxu0 }
 0x3a8   : > { %6979 = vst [vmem:[#allocation15_spill] sm:$0xff] %v6362_v60  ;;  %v2023_v53 = vmul.f32 %v6225_v62, %v1959_v49  ;;  %v1833_v27 = vadd.f32 1.4214138, %v1769_v18  ;;  %v1707_v42 = vadd.f32 -1.4531521, %v1643_v47  ;;  %v6368_v6 = vmul.f32 %v2660_v15, %v6114_v4 }
 0x3a9   : > { %v1391_v28 = vmul.f32 0.3275911, %v6359_v7  ;;  %v2088_v26 = vadd.f32 0.2548296, %v2024_v43  ;;  %v1898_v36 = vmul.f32 %v6268_v31, %v1834_v35  ;;  %v1772_v8 = vmul.f32 %v6345_v37, %v1708_v45  ;;  %v6982_v45 = vld [vmem:[#allocation82_spill] sm:$0xff] }
 0x3aa   : > { %v6372_v58 = vpop.eup %3583  ;;  %v6375_v12 = vmul.f32 %v2533_v61, %v6168_v19  ;;  %3591 = vpow2.f32 %v2403_v40  ;;  %v6378_v49 = vmul.f32 0.70710677, %v6362_v60  ;;  %v2534_v18 = vsub.f32 1.0, %v2470_v54 }
 0x3ab   : > { %v1455_v21 = vadd.f32 1.0, %v1391_v28  ;;  %v2283_v47 = vmul.f32 %v2219_v17, %v6223_v63  ;;  %v2220_v4 = vsub.f32 0.0, %v6249_v0  ;;  %v1645_v15 = vmul.f32 1.0614054, %v6372_v58  ;;  %v6981_v17 = vld [vmem:[#allocation50_spill] sm:$0xff] }
 0x3ac   : > { %6980 = vst [vmem:[#allocation31_spill] sm:$0xff] %v6378_v49  ;;  %v2087_v43 = vadd.f32 0.2548296, %v2023_v53  ;;  %v1897_v35 = vmul.f32 %v6285_v25, %v1833_v27  ;;  %v1771_v51 = vmul.f32 %v6322_v2, %v1707_v42  ;;  %v2152_v22 = vmul.f32 %v6207_v29, %v2088_v26  ;;  %v6983_v53 = vld [vmem:[#allocation49_spill] sm:$0xff] }
 0x3ad   : > { %3593 = vrcp.f32 %v1455_v21  ;;  %v3586_v19 = vpop.eup %3585  ;;  %v1962_v28 = vadd.f32 -0.28449672, %v1898_v36  ;;  %v1836_v61 = vadd.f32 1.4214138, %v1772_v8  ;;  %v2221_v40 = vsub.f32 0.0, %v6277_v23 }
 0x3ae   : > { %v1709_v54 = vadd.f32 -1.4531521, %v1645_v15  ;;  %v6388_v63 = vand.u32 2147483647, %v6378_v49  ;;  %v2771_v9 = vadd.f32 %v6982_v45, %v6981_v17  ;;  %v2774_v27 = vadd.f32 %v5894_v44, %v6983_v53 }
 0x3af   : > { %v2598_v42 = vmul.f32 %v2534_v18, %v6200_v55  ;;  %v2405_v21 = vmul.f32 1.442695, %v2283_v47  ;;  %v2284_v60 = vmul.f32 %v2220_v4, %v6249_v0  ;;  %v2222_v29 = vsub.f32 0.0, %v6331_v48  ;;  %v6984_v55 = vld [vmem:[#allocation51_spill] sm:$0xff] }
 0x3b0   : > { %v6397_v36 = vpop.eup %3587  ;;  %v2151_v26 = vmul.f32 %v6225_v62, %v2087_v43  ;;  %v1961_v8 = vadd.f32 -0.28449672, %v1897_v35  ;;  %v1835_v15 = vadd.f32 1.4214138, %v1771_v51  ;;  %v1392_v49 = vmul.f32 0.3275911, %v6388_v63  ;;  %2990 = vmatmul.mubr.f32.gmra.mxu0 %v2771_v9 }
 0x3b1   : > { %v2472_v17 = vmul.f32 %v3586_v19, %v2152_v22  ;;  %v1900_v45 = vmul.f32 %v6345_v37, %v1836_v61  ;;  %v2285_v44 = vmul.f32 %v2221_v40, %v6277_v23  ;;  %2994 = vmatprep.mubr.f32.mxu0 %v2774_v27  ;;  %v2776_v0 = vadd.f32 %v5967_v33, %v6984_v55  ;;  %v6985_v62 = vld [vmem:[#allocation52_spill] sm:$0xff]  ;;  %v6987_v9 = vld [vmem:[#allocation53_spill] sm:$0xff] }
 0x3b2   : > { %v2026_v18 = vmul.f32 %v6268_v31, %v1962_v28  ;;  %v1773_v47 = vmul.f32 %v6372_v58, %v1709_v54  ;;  %v1456_v4 = vadd.f32 1.0, %v1392_v49  ;;  %v6986_v43 = vld [vmem:[#allocation80_spill] sm:$0xff]  ;;  %v6409_v51 = vadd.f32 1.0, %v2598_v42  ;;  %v6988_v42 = vld [vmem:[#allocation54_spill] sm:$0xff] }
 0x3b3   : > { %v2773_v35 = vadd.f32 %v6986_v43, %v6985_v62  ;;  %3595 = vpow2.f32 %v2405_v21  ;;  %v2407_v19 = vmul.f32 1.442695, %v2284_v60  ;;  %v2286_v22 = vmul.f32 %v2222_v29, %v6331_v48 }
 0x3b4   : > { %v6412_v61 = vpop.eup %3589  ;;  %v6415_v23 = vmul.f32 %v6352_v59, %v2151_v26  ;;  %v2025_v33 = vmul.f32 %v6285_v25, %v1961_v8  ;;  %v1899_v28 = vmul.f32 %v6322_v2, %v1835_v15  ;;  %3597 = vrcp.f32 %v1456_v4 }
 0x3b5   : > { %2995 = vmatmul.mubr.f32.gmra.mxu0 %v2773_v35  ;;  %v2536_v49 = vsub.f32 1.0, %v2472_v17  ;;  %v1964_v40 = vadd.f32 -0.28449672, %v1900_v45  ;;  %v1646_v54 = vmul.f32 1.0614054, %v6412_v61  ;;  %v2778_v60 = vadd.f32 %v6029_v10, %v6987_v9  ;;  %v6991_v35 = vld [vmem:[#allocation56_spill] sm:$0xff] }
 0x3b6   : > { %2999 = vmatprep.mubr.f32.mxu0 %v2776_v0  ;;  %v2090_v48 = vadd.f32 0.2548296, %v2026_v18  ;;  %v1837_v53 = vadd.f32 1.4214138, %v1773_v47  ;;  %v2409_v27 = vmul.f32 1.442695, %v2285_v44  ;;  %v2775_v59 = vadd.f32 %v5927_v38, %v6988_v42 }
 0x3b7   : > { %v3592_v21 = vpop.eup %3591  ;;  %3599 = vpow2.f32 %v2407_v19  ;;  %v1710_v29 = vadd.f32 -1.4531521, %v1646_v54  ;;  %v2411_v26 = vmul.f32 1.442695, %v2286_v22  ;;  %v2223_v8 = vsub.f32 0.0, %v6359_v7  ;;  %v6989_v18 = vld [vmem:[#allocation55_spill] sm:$0xff] }
 0x3b8   : > { %v2535_v15 = vsub.f32 1.0, %v6415_v23  ;;  %v2089_v17 = vadd.f32 0.2548296, %v2025_v33  ;;  %v1963_v45 = vadd.f32 -0.28449672, %v1899_v28  ;;  %v2224_v55 = vsub.f32 0.0, %v6388_v63 }
 0x3b9   : > { %3000 = vmatmul.mubr.f32.gmra.mxu0 %v2775_v59  ;;  %v6430_v44 = vmul.f32 %v2536_v49, %v6283_v16  ;;  %v2028_v38 = vmul.f32 %v6345_v37, %v1964_v40  ;;  %v1774_v0 = vmul.f32 %v6412_v61, %v1710_v29  ;;  %v6990_v47 = vld [vmem:[#allocation81_spill] sm:$0xff]  ;;  %v1901_v62 = vmul.f32 %v6372_v58, %v1837_v53  ;;  %v6992_v19 = vld [vmem:[#allocation79_spill] sm:$0xff]  ;;  %v6996_v29 = vld [vmem:[#allocation90_spill] sm:$0xff] }
 0x3ba   : > { %v6427_v10 = vpop.eup %3593  ;;  %3004 = vmatprep.mubr.f32.mxu0 %v2778_v60  ;;  %v2780_v4 = vadd.f32 %v6990_v47, %v6989_v18  ;;  %3601 = vpow2.f32 %v2409_v27  ;;  %v2777_v22 = vadd.f32 %v6992_v19, %v6991_v35  ;;  %v2154_v33 = vmul.f32 %v6268_v31, %v2090_v48  ;;  %v6445_v49 = vld [vmem:[%s6671_s6] ss:$0 sm:$0xff]  ;;  %v6993_v48 = vld [vmem:[#allocation58_spill] sm:$0xff]  ;;  %v6995_v59 = vld [vmem:[#allocation57_spill] sm:$0xff] }
 0x3bb   : > { %v1647_v43 = vmul.f32 1.0614054, %v6427_v10  ;;  %v1838_v16 = vadd.f32 1.4214138, %v1774_v0  ;;  %3603 = vpow2.f32 %v2411_v26  ;;  %v2287_v28 = vmul.f32 %v2223_v8, %v6359_v7  ;;  %v6994_v7 = vld [vmem:[#allocation23_spill] sm:$0xff] }
 0x3bc   : > { %v2153_v40 = vmul.f32 %v6285_v25, %v2089_v17  ;;  %v2027_v54 = vmul.f32 %v6322_v2, %v1963_v45  ;;  %v2288_v60 = vmul.f32 %v2224_v55, %v6388_v63  ;;  %v2926_v53 = vpop.f32.mrf.mxu0  ;;  %v2092_v27 = vadd.f32 0.2548296, %v2028_v38  ;;  %v6997_v17 = vld [vmem:[#allocation91_spill] sm:$0xff] }
 0x3bd   : > { %v1711_v9 = vadd.f32 -1.4531521, %v1647_v43  ;;  %3005 = vmatmul.mubr.f32.gmra.mxu0 %v2777_v22  ;;  %v1902_v31 = vmul.f32 %v6412_v61, %v1838_v16  ;;  %v2779_v42 = vadd.f32 %v6994_v7, %v6993_v48  ;;  %v2782_v26 = vadd.f32 %v6996_v29, %v6995_v59 }
 0x3be   : > { %3009 = vmatprep.mubr.f32.mxu0 %v2780_v4  ;;  %v1965_v8 = vadd.f32 -0.28449672, %v1901_v62  ;;  %v2907_v45 = vadd.f32 %v6445_v49, %v6997_v17  ;;  %v2912_v63 = vadd.f32 %v6445_v49, %v6232_v13  ;;  %v2928_v55 = vpop.f32.mrf.mxu0  ;;  %v2474_v38 = vmul.f32 %v3592_v21, %v2154_v33  ;;  %v6998_v33 = vld [vmem:[#allocation59_spill] sm:$0xff] }
 0x3bf   : > { %v1775_v25 = vmul.f32 %v6427_v10, %v1711_v9  ;;  %v1966_v0 = vadd.f32 -0.28449672, %v1902_v31  ;;  %v2413_v18 = vmul.f32 1.442695, %v2287_v28  ;;  %v2917_v47 = vadd.f32 %v6445_v49, %v6299_v50  ;;  %v6999_v9 = vld [vmem:[#allocation60_spill] sm:$0xff] }
 0x3c0   : > { %v3596_v4 = vpop.eup %3595  ;;  %v2091_v43 = vadd.f32 0.2548296, %v2027_v54  ;;  %3065 = vst [vmem:[%s6464_s14] sm:$0xff] %v2907_v45  ;;  %3066 = vst [vmem:[%s6464_s14 + $0x8] sm:$0xff] %v2912_v63  ;;  %v2922_v13 = vadd.f32 %v6445_v49, %v6356_v24  ;;  %v2927_v21 = vadd.f32 %v6445_v49, %v2926_v53  ;;  %v2156_v62 = vmul.f32 %v6345_v37, %v2092_v27  ;;  %v7000_v53 = vld [vmem:[#allocation24_spill] sm:$0xff] }
 0x3c1   : > { %v1839_v35 = vadd.f32 1.4214138, %v1775_v25  ;;  %3010 = vmatmul.mubr.f32.gmra.mxu0 %v2779_v42  ;;  %v6471_v50 = vpop.eup %3597  ;;  %v2030_v19 = vmul.f32 %v6412_v61, %v1966_v0  ;;  %v2415_v22 = vmul.f32 1.442695, %v2288_v60  ;;  %v2784_v16 = vadd.f32 %v6228_v1, %v6998_v33  ;;  %3067 = vst [vmem:[%s6464_s14 + $0x10] sm:$0xff] %v2917_v47 }
 0x3c2   : > { %3014 = vmatprep.mubr.f32.mxu0 %v2782_v26  ;;  %v2029_v28 = vmul.f32 %v6372_v58, %v1965_v8  ;;  %v1648_v24 = vmul.f32 1.0614054, %v6471_v50  ;;  %v2781_v31 = vadd.f32 %v7000_v53, %v6999_v9  ;;  %3068 = vst [vmem:[%s6464_s14 + $0x18] sm:$0xff] %v2922_v13  ;;  %3069 = vst [vmem:[%s6464_s14 + $0x20] sm:$0xff] %v2927_v21  ;;  %v2538_v27 = vsub.f32 1.0, %v2474_v38 }
 0x3c3   : > { %v1903_v54 = vmul.f32 %v6427_v10, %v1839_v35  ;;  %v2473_v37 = vmul.f32 %v6397_v36, %v2153_v40  ;;  %v2094_v60 = vadd.f32 0.2548296, %v2030_v19  ;;  %3605 = vpow2.f32 %v2413_v18  ;;  %v2931_v48 = vpop.f32.mrf.mxu0  ;;  %v7001_v36 = vld [vmem:[#allocation61_spill] sm:$0xff]  ;;  %v7005_v19 = vld [vmem:[#allocation26_spill] sm:$0xff] }
 0x3c4   : > { %v3600_v7 = vpop.eup %3599  ;;  %vm1195_vm10 = vcmp.lt.f32.partialorder %v6212_v3, 0.0  ;;  %v2155_v1 = vmul.f32 %v6322_v2, %v2091_v43  ;;  %v1712_v59 = vadd.f32 -1.4531521, %v1648_v24  ;;  %v2932_v29 = vadd.f32 %v6445_v49, %v2931_v48  ;;  %v7002_v2 = vld [vmem:[#allocation62_spill] sm:$0xff] }
 0x3c5   : > { %v1967_v42 = vadd.f32 -0.28449672, %v1903_v54  ;;  %3015 = vmatmul.mubr.f32.gmra.mxu0 %v2781_v31  ;;  %v2476_v26 = vmul.f32 %v3600_v7, %v2156_v62  ;;  %v2158_v8 = vmul.f32 %v6412_v61, %v2094_v60  ;;  %3607 = vpow2.f32 %v2415_v22  ;;  %v2933_v25 = vpop.f32.mrf.mxu0  ;;  %v7003_v62 = vld [vmem:[#allocation63_spill] sm:$0xff]  ;;  %v7009_v7 = vld [vmem:[#allocation28_spill] sm:$0xff] }
 0x3c6   : > { %3019 = vmatprep.mubr.f32.mxu0 %v2784_v16  ;;  %v2786_v40 = vadd.f32 %v6288_v41, %v7001_v36  ;;  %v2093_v17 = vadd.f32 0.2548296, %v2029_v28  ;;  %v1776_v63 = vmul.f32 %v6471_v50, %v1712_v59  ;;  %v2783_v55 = vadd.f32 %v6196_v46, %v7002_v2  ;;  %3070 = vst [vmem:[%s6464_s14 + $0x28] sm:$0xff] %v2932_v29  ;;  %v7012_v2 = vld [vmem:[#allocation27_spill] sm:$0xff] }
 0x3c7   : > { %v2031_v45 = vmul.f32 %v6427_v10, %v1967_v42  ;;  %v3602_v38 = vpop.eup %3601  ;;  %v2661_v0 = vadd.f32 1.0, %v6375_v12  ;;  %v2726_v61 = vmul.f32 %v6409_v51, %v6186_v11  ;;  %v2599_v41 = vmul.f32 %v2535_v15, %v6239_v34  ;;  %v7004_v15 = vld [vmem:[#allocation64_spill] sm:$0xff] }
 0x3c8   : > { %vm1196_vm11 = vcmp.lt.f32.partialorder %v6242_v39, 0.0  ;;  %v3604_v18 = vpop.eup %3603  ;;  %v2664_v47 = vadd.f32 1.0, %v6430_v44  ;;  %v2537_v43 = vsub.f32 1.0, %v2473_v37  ;;  %v2475_v35 = vmul.f32 %v3596_v4, %v2155_v1  ;;  %v7007_v37 = vld [vmem:[#allocation66_spill] sm:$0xff] }
 0x3c9   : > { %v1840_v13 = vadd.f32 1.4214138, %v1776_v63  ;;  %3020 = vmatmul.mubr.f32.gmra.mxu0 %v2783_v55  ;;  %v2602_v46 = vmul.f32 %v2538_v27, %v6340_v30  ;;  %v2540_v21 = vsub.f32 1.0, %v2476_v26  ;;  %v2478_v12 = vmul.f32 %v3604_v18, %v2158_v8  ;;  %v7010_v8 = vld [vmem:[#allocation67_spill] sm:$0xff] }
 0x3ca   : > { %3024 = vmatprep.mubr.f32.mxu0 %v2786_v40  ;;  %v2788_v11 = vadd.f32 %v6368_v6, %v7003_v62  ;;  %v2157_v51 = vmul.f32 %v6372_v58, %v2093_v17  ;;  %v2095_v34 = vadd.f32 0.2548296, %v2031_v45  ;;  %v2785_v44 = vadd.f32 %v6271_v52, %v7004_v15  ;;  %v7006_v52 = vld [vmem:[#allocation65_spill] sm:$0xff]  ;;  %v7011_v45 = vld [vmem:[#allocation68_spill] sm:$0xff]  ;;  %v7015_v18 = vld [vmem:[#allocation31_spill] sm:$0xff] }
 0x3cb   : > { %v1904_v23 = vmul.f32 %v6471_v50, %v1840_v13  ;;  %v2725_v4 = vmul.f32 %v2661_v0, %v7005_v19  ;;  %v2663_v22 = vadd.f32 1.0, %v2599_v41  ;;  %v1260_v30 = vsel %vm1196_vm11, -1.0, %v6844_v14  ;;  %v7014_v0 = vld [vmem:[#allocation95_spill] sm:$0xff]  ;;  %v7016_v13 = vld [vmem:[#allocation69_spill] sm:$0xff] }
 0x3cc   : > { %vm1198_vm12 = vcmp.lt.f32.partialorder %v6314_v5, 0.0  ;;  %v2728_v33 = vmul.f32 %v2664_v47, %v6257_v57  ;;  %v2601_v6 = vmul.f32 %v2537_v43, %v6327_v56  ;;  %v2539_v58 = vsub.f32 1.0, %v2475_v35  ;;  %v7008_v56 = vld [vmem:[#allocation25_spill] sm:$0xff] }
 0x3cd   : > { %v1968_v16 = vadd.f32 -0.28449672, %v1904_v23  ;;  %3025 = vmatmul.mubr.f32.gmra.mxu0 %v2785_v44  ;;  %v2666_v28 = vadd.f32 1.0, %v2602_v46  ;;  %v2604_v54 = vmul.f32 %v2540_v21, %v1260_v30  ;;  %v2542_v24 = vsub.f32 1.0, %v2478_v12  ;;  %v7018_v15 = vld [vmem:[#allocation93_spill] sm:$0xff] }
 0x3ce   : > { %3029 = vmatprep.mubr.f32.mxu0 %v2788_v11  ;;  %v2790_v9 = vadd.f32 %v2726_v61, %v7006_v52  ;;  %v2477_v53 = vmul.f32 %v3602_v38, %v2157_v51  ;;  %v2159_v31 = vmul.f32 %v6427_v10, %v2095_v34  ;;  %v2787_v27 = vadd.f32 %v6334_v32, %v7007_v37  ;;  %v7013_v38 = vld [vmem:[#allocation30_spill] sm:$0xff]  ;;  %v7019_v19 = vld [vmem:[#allocation29_spill] sm:$0xff]  ;;  %v7023_v37 = vld [vmem:[#allocation92_spill] sm:$0xff] }
 0x3cf   : > { %v2032_v39 = vmul.f32 %v6471_v50, %v1968_v16  ;;  %v2727_v57 = vmul.f32 %v2663_v22, %v6203_v20  ;;  %v1066_v60 = vmul.f32 0.5, %v7008_v56  ;;  %v1259_v48 = vsel %vm1195_vm10, -1.0, %v6844_v14  ;;  %v7017_v51 = vld [vmem:[#allocation70_spill] sm:$0xff]  ;;  %v7020_v16 = vld [vmem:[#allocation71_spill] sm:$0xff]  ;;  %v7024_v56 = vld [vmem:[#allocation73_spill] sm:$0xff] }
 0x3d0   : > { %vm1197_vm13 = vcmp.lt.f32.partialorder %v7009_v7, 0.0  ;;  %v3606_v1 = vpop.eup %3605  ;;  %v2665_v42 = vadd.f32 1.0, %v2601_v6  ;;  %v2603_v59 = vmul.f32 %v2539_v58, %v1259_v48  ;;  %v1262_v10 = vsel %vm1198_vm12, -1.0, %v6844_v14  ;;  %v7025_v7 = vld [vmem:[#allocation74_spill] sm:$0xff] }
 0x3d1   : > { %v2096_v29 = vadd.f32 0.2548296, %v2032_v39  ;;  %3030 = vmatmul.mubr.f32.gmra.mxu0 %v2787_v27  ;;  %v2730_v32 = vmul.f32 %v2666_v28, %v1066_v60  ;;  %v2668_v26 = vadd.f32 1.0, %v2604_v54  ;;  %v2606_v20 = vmul.f32 %v2542_v24, %v1262_v10 }
 0x3d2   : > { %3034 = vmatprep.mubr.f32.mxu0 %v2790_v9  ;;  %v2792_v36 = vadd.f32 %v2728_v33, %v7010_v8  ;;  %v3608_v40 = vpop.eup %3607  ;;  %v2541_v3 = vsub.f32 1.0, %v2477_v53  ;;  %v2479_v25 = vmul.f32 %v3606_v1, %v2159_v31  ;;  %v2789_v63 = vadd.f32 %v2725_v4, %v7011_v45  ;;  %v7021_v9 = vld [vmem:[#allocation72_spill] sm:$0xff]  ;;  %v7022_v31 = vld [vmem:[#allocation15_spill] sm:$0xff] }
 0x3d3   : > { %v2160_v17 = vmul.f32 %v6471_v50, %v2096_v29  ;;  %v1068_v55 = vmul.f32 0.5, %v7012_v2  ;;  %v1261_v5 = vsel %vm1197_vm13, -1.0, %v6844_v14  ;;  %vm1199_vm14 = vcmp.lt.f32.partialorder %v7013_v38, 0.0 }
 0x3d4   : > { %v2729_v61 = vmul.f32 %v2665_v42, %v7014_v0  ;;  %v2667_v41 = vadd.f32 1.0, %v2603_v59  ;;  %vm1200_vm15 = vcmp.lt.f32.partialorder %v7015_v18, 0.0  ;;  %v2936_v43 = vpop.f32.mrf.mxu0  ;;  %v2670_v35 = vadd.f32 1.0, %v2606_v20  ;;  %v7026_v59 = vld [vmem:[#allocation94_spill] sm:$0xff] }
 0x3d5   : > { %v2480_v47 = vmul.f32 %v3608_v40, %v2160_v17  ;;  %3035 = vmatmul.mubr.f32.gmra.mxu0 %v2789_v63  ;;  %v2732_v50 = vmul.f32 %v2668_v26, %v1068_v55  ;;  %v2794_v46 = vadd.f32 %v2730_v32, %v7016_v13  ;;  %v2937_v21 = vadd.f32 %v6445_v49, %v2936_v43  ;;  %v7027_v32 = vld [vmem:[#allocation75_spill] sm:$0xff] }
 0x3d6   : > { %3039 = vmatprep.mubr.f32.mxu0 %v2792_v36  ;;  %v2605_v12 = vmul.f32 %v2541_v3, %v1261_v5  ;;  %v2543_v62 = vsub.f32 1.0, %v2479_v25  ;;  %v2791_v34 = vadd.f32 %v2727_v57, %v7017_v51  ;;  %v2938_v23 = vpop.f32.mrf.mxu0  ;;  %v1067_v44 = vmul.f32 0.5, %v7018_v15  ;;  %v7028_v36 = vld [vmem:[#allocation76_spill] sm:$0xff]  ;;  %v7029_v3 = vld [vmem:[#allocation77_spill] sm:$0xff] }
 0x3d7   : > { %v2544_v11 = vsub.f32 1.0, %v2480_v47  ;;  %v1070_v4 = vmul.f32 0.5, %v7019_v19  ;;  %v1264_v22 = vsel %vm1200_vm15, -1.0, %v6844_v14  ;;  %3071 = vst [vmem:[%s6464_s14 + $0x30] sm:$0xff] %v2937_v21  ;;  %v1263_v58 = vsel %vm1199_vm14, -1.0, %v6844_v14 }
 0x3d8   : > { %v2731_v33 = vmul.f32 %v2667_v41, %v1067_v44  ;;  %v2796_v28 = vadd.f32 %v2732_v50, %v7020_v16  ;;  %v2669_v54 = vadd.f32 1.0, %v2605_v12  ;;  %v2607_v24 = vmul.f32 %v2543_v62, %v1263_v58 }
 0x3d9   : > { %v2608_v30 = vmul.f32 %v2544_v11, %v1264_v22  ;;  %3040 = vmatmul.mubr.f32.gmra.mxu0 %v2791_v34  ;;  %v2734_v6 = vmul.f32 %v2670_v35, %v1070_v4  ;;  %v2793_v53 = vadd.f32 %v2729_v61, %v7021_v9  ;;  %v1072_v39 = vmul.f32 0.5, %v7022_v31 }
 0x3da   : > { %3044 = vmatprep.mubr.f32.mxu0 %v2794_v46  ;;  %v1069_v27 = vmul.f32 0.5, %v7023_v37  ;;  %v2671_v14 = vadd.f32 1.0, %v2607_v24  ;;  %v2795_v1 = vadd.f32 %v2731_v33, %v7025_v7  ;;  %v1071_v10 = vmul.f32 0.5, %v7026_v59 }
 0x3db   : > { %v2672_v52 = vadd.f32 1.0, %v2608_v30  ;;  %v2798_v60 = vadd.f32 %v2734_v6, %v7024_v56 }
 0x3dc   : > { %v2733_v48 = vmul.f32 %v2669_v54, %v1069_v27  ;;  %v2735_v8 = vmul.f32 %v2671_v14, %v1071_v10 }
 0x3dd   : > { %3045 = vmatmul.mubr.f32.gmra.mxu0 %v2793_v53  ;;  %v2736_v57 = vmul.f32 %v2672_v52, %v1072_v39 }
 0x3de   : > { %3049 = vmatprep.mubr.f32.mxu0 %v2796_v28  ;;  %v2797_v40 = vadd.f32 %v2733_v48, %v7028_v36  ;;  %v2799_v25 = vadd.f32 %v2735_v8, %v7029_v3 }
 0x3df   : > { %v2941_v42 = vpop.f32.mrf.mxu0  ;;  %v2800_v26 = vadd.f32 %v2736_v57, %v7027_v32 }
 0x3e0   : > { %v2942_v29 = vadd.f32 %v6445_v49, %v2941_v42 }
 0x3e1   : > { %3050 = vmatmul.mubr.f32.gmra.mxu0 %v2795_v1  ;;  %v2943_v20 = vpop.f32.mrf.mxu0 }
 0x3e2   : > { %3054 = vmatprep.mubr.f32.mxu0 %v2798_v60  ;;  %3072 = vst [vmem:[%s6464_s14 + $0x38] sm:$0xff] %v2942_v29 }
 0x3e5   : > { %3055 = vmatmul.mubr.f32.gmra.mxu0 %v2797_v40 }
 0x3e6   : > { %3059 = vmatprep.mubr.f32.mxu0 %v2800_v26 }
 0x3e9   : > { %3060 = vmatmul.mubr.f32.gmra.mxu0 %v2799_v25 }
 0x3ec   : > { %v2946_v17 = vpop.f32.mrf.mxu0 }
 0x3ed   : > { %v2947_v45 = vadd.f32 %v6445_v49, %v2946_v17 }
 0x3ee   : > { %v2948_v63 = vpop.f32.mrf.mxu0 }
 0x3ef   : > { %3073 = vst [vmem:[%s6464_s14 + $0x40] sm:$0xff] %v2947_v45 }
 0x3fd   : > { %v2951_v2 = vpop.f32.mrf.mxu0 }
 0x3fe   : > { %v2952_v55 = vadd.f32 %v6445_v49, %v2951_v2 }
 0x3ff   : > { %v2953_v5 = vpop.f32.mrf.mxu0 }
 0x400   : > { %3074 = vst [vmem:[%s6464_s14 + $0x48] sm:$0xff] %v2952_v55 }
 0x405   : > { %v2956_v38 = vpop.f32.mrf.mxu0 }
 0x406   : > { %v2957_v0 = vadd.f32 %v6445_v49, %v2956_v38 }
 0x407   : > { %v2958_v61 = vpop.f32.mrf.mxu0 }
 0x408   : > { %3075 = vst [vmem:[%s6464_s14 + $0x50] sm:$0xff] %v2957_v0 }
 0x419   : > { %v2961_v41 = vpop.f32.mrf.mxu0 }
 0x41a   : > { %v2962_v18 = vadd.f32 %v6445_v49, %v2961_v41 }
 0x41b   : > { %v2963_v47 = vpop.f32.mrf.mxu0 }
 0x41c   : > { %3076 = vst [vmem:[%s6464_s14 + $0x58] sm:$0xff] %v2962_v18 }
 0x427   : > { %v2966_v43 = vpop.f32.mrf.mxu0 }
 0x428   : > { %v2967_v50 = vadd.f32 %v6445_v49, %v2966_v43 }
 0x429   : > { %v2968_v35 = vpop.f32.mrf.mxu0 }
 0x42a   : > { %3077 = vst [vmem:[%s6464_s14 + $0x60] sm:$0xff] %v2967_v50 }
 0x439   : > { %v2971_v13 = vpop.f32.mrf.mxu0 }
 0x43a   : > { %v2972_v46 = vadd.f32 %v6445_v49, %v2971_v13 }
 0x43b   : > { %v2973_v21 = vpop.f32.mrf.mxu0 }
 0x43c   : > { %3078 = vst [vmem:[%s6464_s14 + $0x68] sm:$0xff] %v2972_v46 }
 0x444   : > { %v2976_v12 = vpop.f32.mrf.mxu0 }
 0x445   : > { %v2977_v62 = vadd.f32 %v6445_v49, %v2976_v12 }
 0x446   : > { %v2978_v11 = vpop.f32.mrf.mxu0 }
 0x447   : > { %3079 = vst [vmem:[%s6464_s14 + $0x70] sm:$0xff] %v2977_v62 }
 0x44d   : > { %v2981_v51 = vpop.f32.mrf.mxu0 }
 0x44e   : > { %v2982_v34 = vadd.f32 %v6445_v49, %v2981_v51 }
 0x44f   : > { %v2983_v23 = vpop.f32.mrf.mxu0 }
 0x450   : > { %3080 = vst [vmem:[%s6464_s14 + $0x78] sm:$0xff] %v2982_v34 }
 0x45f   : > { %v2986_v15 = vpop.f32.mrf.mxu0 }
 0x460   : > { %v2987_v44 = vadd.f32 %v6445_v49, %v2986_v15 }
 0x461   : > { %v2988_v19 = vpop.f32.mrf.mxu0 }
 0x462   : > { %3081 = vst [vmem:[%s6464_s14 + $0x80] sm:$0xff] %v2987_v44 }
 0x470   : > { %v2991_v4 = vpop.f32.mrf.mxu0 }
 0x471   : > { %v2992_v22 = vadd.f32 %v6445_v49, %v2991_v4 }
 0x472   : > { %v2993_v30 = vpop.f32.mrf.mxu0 }
 0x473   : > { %3082 = vst [vmem:[%s6464_s14 + $0x88] sm:$0xff] %v2992_v22 }
 0x475   : > { %v2996_v33 = vpop.f32.mrf.mxu0 }
 0x476   : > { %v2997_v6 = vadd.f32 %v6445_v49, %v2996_v33 }
 0x477   : > { %v2998_v58 = vpop.f32.mrf.mxu0 }
 0x478   : > { %3083 = vst [vmem:[%s6464_s14 + $0x90] sm:$0xff] %v2997_v6 }
 0x479   : > { %v3001_v16 = vpop.f32.mrf.mxu0 }
 0x47a   : > { %v3002_v28 = vadd.f32 %v6445_v49, %v3001_v16 }
 0x47b   : > { %v3003_v54 = vpop.f32.mrf.mxu0 }
 0x47c   : > { %3084 = vst [vmem:[%s6464_s14 + $0x98] sm:$0xff] %v3002_v28 }
 0x47d   : > { %v3006_v24 = vpop.f32.mrf.mxu0 }
 0x47e   : > { %v3007_v52 = vadd.f32 %v6445_v49, %v3006_v24 }
 0x47f   : > { %v3008_v9 = vpop.f32.mrf.mxu0 }
 0x480   : > { %3085 = vst [vmem:[%s6464_s14 + $0xa0] sm:$0xff] %v3007_v52 }
 0x481   : > { %v3011_v53 = vpop.f32.mrf.mxu0 }
 0x482   : > { %v3012_v31 = vadd.f32 %v6445_v49, %v3011_v53 }
 0x483   : > { %v3013_v39 = vpop.f32.mrf.mxu0 }
 0x484   : > { %3086 = vst [vmem:[%s6464_s14 + $0xa8] sm:$0xff] %v3012_v31 }
 0x485   : > { %v3016_v37 = vpop.f32.mrf.mxu0 }
 0x486   : > { %v3017_v27 = vadd.f32 %v6445_v49, %v3016_v37 }
 0x487   : > { %v3018_v57 = vpop.f32.mrf.mxu0 }
 0x488   : > { %3087 = vst [vmem:[%s6464_s14 + $0xb0] sm:$0xff] %v3017_v27 }
 0x489   : > { %v3021_v56 = vpop.f32.mrf.mxu0 }
 0x48a   : > { %v3022_v60 = vadd.f32 %v6445_v49, %v3021_v56 }
 0x48b   : > { %v3023_v48 = vpop.f32.mrf.mxu0 }
 0x48c   : > { %3088 = vst [vmem:[%s6464_s14 + $0xb8] sm:$0xff] %v3022_v60 }
 0x48d   : > { %v3026_v14 = vpop.f32.mrf.mxu0 }
 0x48e   : > { %v3027_v7 = vadd.f32 %v6445_v49, %v3026_v14 }
 0x48f   : > { %v3028_v1 = vpop.f32.mrf.mxu0 }
 0x490   : > { %3089 = vst [vmem:[%s6464_s14 + $0xc0] sm:$0xff] %v3027_v7 }
 0x491   : > { %v3031_v42 = vpop.f32.mrf.mxu0 }
 0x492   : > { %v3032_v59 = vadd.f32 %v6445_v49, %v3031_v42 }
 0x493   : > { %v3033_v10 = vpop.f32.mrf.mxu0 }
 0x494   : > { %3090 = vst [vmem:[%s6464_s14 + $0xc8] sm:$0xff] %v3032_v59 }
 0x495   : > { %v3036_v29 = vpop.f32.mrf.mxu0 }
 0x496   : > { %v3037_v32 = vadd.f32 %v6445_v49, %v3036_v29 }
 0x497   : > { %v3038_v26 = vpop.f32.mrf.mxu0 }
 0x498   : > { %3091 = vst [vmem:[%s6464_s14 + $0xd0] sm:$0xff] %v3037_v32 }
 0x499   : > { %v3041_v20 = vpop.f32.mrf.mxu0 }
 0x49a   : > { %v3042_v8 = vadd.f32 %v6445_v49, %v3041_v20 }
 0x49b   : > { %v3043_v36 = vpop.f32.mrf.mxu0 }
 0x49c   : > { %3092 = vst [vmem:[%s6464_s14 + $0xd8] sm:$0xff] %v3042_v8 }
 0x49d   : > { %v3046_v40 = vpop.f32.mrf.mxu0 }
 0x49e   : > { %v3047_v3 = vadd.f32 %v6445_v49, %v3046_v40 }
 0x49f   : > { %v3048_v25 = vpop.f32.mrf.mxu0 }
 0x4a0   : > { %3093 = vst [vmem:[%s6464_s14 + $0xe0] sm:$0xff] %v3047_v3 }
 0x4a1   : > { %v3051_v17 = vpop.f32.mrf.mxu0 }
 0x4a2   : > { %v3052_v45 = vadd.f32 %v6445_v49, %v3051_v17 }
 0x4a3   : > { %v3053_v63 = vpop.f32.mrf.mxu0 }
 0x4a4   : > { %3094 = vst [vmem:[%s6464_s14 + $0xe8] sm:$0xff] %v3052_v45 }
 0x4a5   : > { %v3056_v2 = vpop.f32.mrf.mxu0 }
 0x4a6   : > { %v3057_v55 = vadd.f32 %v6445_v49, %v3056_v2 }
 0x4a7   : > { %v3058_v5 = vpop.f32.mrf.mxu0 }
 0x4a8   : > { %3095 = vst [vmem:[%s6464_s14 + $0xf0] sm:$0xff] %v3057_v55 }
 0x4a9   : > { %v3061_v38 = vpop.f32.mrf.mxu0 }
 0x4aa   : > { %v3062_v0 = vadd.f32 %v6445_v49, %v3061_v38 }
 0x4ab   : > { %v3063_v61 = vpop.f32.mrf.mxu0 }
 0x4ac   : > { %3096 = vst [vmem:[%s6464_s14 + $0xf8] sm:$0xff] %v3062_v0 }
 0x4ad   : > { %3728 = shalt.err (!%p3725_p9)
}
 0x4ae   : > { %s3729_s10 = scalar_lea.hbm %s6618_s1, 4096  ;;  %s3733_s29 = scalar_lea.hbm %s6672_s7, 8192 }
 0x4af   : > { %p3730_p1 = scmp.ne.s32.totalorder %s6618_s1, %s3729_s10  ;;  %p3734_p11 = scmp.lt.s32.totalorder %s6618_s1, %s6672_s7 }
 0x4b0   : > { %p3735_p13 = scmp.lt.s32.totalorder %s3733_s29, %s3729_s10 }
 0x4b1   : > { %p3731_p8 = pnand %p3730_p1, %p7030_p6 }
 0x4b2   : > { %p3736_p2 = por %p3735_p13, %p3734_p11 }
 0x4b3   : > { %p3732_p10 = pneg %p3731_p8 }
 0x4b5   : > { %p3737_p4 = pnand %p3736_p2, %p3732_p10 }
 0x4b7   : > { %3740 = shalt.err (!%p3737_p4)
}
 0x4b8   : > { %s3800_s11 = smov 128   ;;  %s3801_s23 = smov 8  }
 0x4b9   : > { %3282 = dma.vmem_to_hbm [thread:$0]  (%p7030_p6), %s6620_s22, 4096, %s6618_s1, %s3098_s16, %s3800_s11, %s3800_s11, %s3801_s23  }
 0x4ba PF: > { %s3126_s28 = sand.u32 1, %s3775_s24   ;;  %p7031_p12 = scmp.ne.s32.totalorder %s6763_s8, 0 }
 0x4bb   : > { %p7032_p0 = scmp.ge.s32.totalorder %s3787_s27, 2  ;;  %s3127_s18 = scalar_lea.sflag [#allocation4], %s3126_s28 }
 0x4bd   : > { %p3299_p5 = pnand %p7032_p0, %p7031_p12 }
 0x4bf   : > { %p3300_p3 = pneg %p3299_p5 }
 0x4c1   : > { %3770 = dma.done.wait (%p3300_p3), %s3127_s18, 4096  }
 0x4c2   : > { %3772 = vsyncadd (%p3300_p3), %s3127_s18, 4294963200  ;;  %p22_p7 = scmp.ge.s32.totalorder %s3925_s17, 4   ;;  %s7033_s24 = smov %s3779_s25 }
 0x4c3   : > { %s7034_s25 = smov %s3783_s26  ;;  %s7035_s26 = smov %s3935_s20 }
 0x4c4   : > { %s7036_s27 = smov %s3925_s17  ;;  %24 = sbr.rel (!%p22_p7) target bundleno = 9 (0x9), region = 105 }
 0x4c9   :  { %3132 = vsyncpa [#allocation3], 1 }
 0x4ca   :  { %3134 = vsyncpa [#allocation3 + $0x1], 1 }
 0x4cb   :  { %3135 = vsyncpa [#allocation6], 1 }
 0x4cc   :  { %3136 = vsyncpa [#allocation9], 1 }
 0x4cd   :  { %3137 = vsyncpa [#allocation4], 1 }
 0x4ce   :  { %3139 = vsyncpa [#allocation4 + $0x1], 1 }

</bundles_post_ra>
